<compile_context>
chip_gen: v5e
topology: v5e:2x2
jax: 0.10.0
libtpu: 0.0.40
codegen_flags: <defaults>
</compile_context>

<pallas_src>
import functools

import numpy as np

import jax
import jax.numpy as jnp
from jax.experimental import pallas as pl
from jax.experimental.pallas import tpu as pltpu


def _round_up(x, m):
    return (x + m - 1) // m * m


# ---------------------------------------------------------------------------
# Pallas kernel: 4x (Linear(+folded BN) -> LeakyReLU(0.2)) -> Linear head
# ---------------------------------------------------------------------------
def _mlp_kernel(x_ref, bias_ref,
                w1_hbm, w2_hbm, w3_hbm, w4_hbm, wo_hbm,
                out_ref,
                w1_v, w2_v, w3_v, w4_v, wo_v, sems,
                *, hidden, out_pad):
    first = pl.program_id(0) == 0
    hbm = (w1_hbm, w2_hbm, w3_hbm, w4_hbm, wo_hbm)
    vmem = (w1_v, w2_v, w3_v, w4_v, wo_v)

    @pl.when(first)
    def _():
        # Kick off all 5 weight DMAs up front; the waits are interleaved per
        # layer below so later layers' weight traffic hides behind earlier
        # layers' matmuls.
        for i in range(5):
            pltpu.make_async_copy(hbm[i], vmem[i], sems.at[i]).start()

    def layer(h, idx, n_cols, act):
        @pl.when(first)
        def _():
            pltpu.make_async_copy(hbm[idx], vmem[idx], sems.at[idx]).wait()
        z = (jnp.dot(h, vmem[idx][...], preferred_element_type=jnp.float32)
             + bias_ref[idx:idx + 1, :n_cols])
        if act:
            # LeakyReLU(0.2) == max(z, 0.2*z) for slope < 1
            z = jnp.maximum(z, 0.2 * z)
            return z.astype(vmem[idx].dtype)       # bf16 for the next MXU pass
        return z

    h = x_ref[...]                       # already bf16 (cast in the wrapper)
    h = layer(h, 0, hidden, True)        # fc1 + bn1 + lrelu   (dropout1 = id)
    h = layer(h, 1, hidden, True)        # fc2 + bn2 + lrelu   (dropout2 = id)
    h = layer(h, 2, hidden, True)        # fc3 + bn3 + lrelu   (dropout3 = id)
    h = layer(h, 3, hidden, True)        # fc4 + bn4 + lrelu
    out_ref[...] = layer(h, 4, out_pad, False)     # lane-dense padded head


# ---------------------------------------------------------------------------
# Wrapper: fold BN, pad to (8,128)-friendly shapes, call the kernel
# ---------------------------------------------------------------------------
def _fold_params(params, in_pad, out_pad, weight_dtype):
    """Fold BN into Linear weights; pad fc1's K dim and the head; pack biases."""
    def fold(w, b, s, t):
        return (w * s).astype(weight_dtype), (b * s + t).astype(jnp.float32)

    w1, b1 = fold(params["w1"], params["b1"], params["s1"], params["t1"])
    w2, b2 = fold(params["w2"], params["b2"], params["s2"], params["t2"])
    w3, b3 = fold(params["w3"], params["b3"], params["s3"], params["t3"])
    w4, b4 = fold(params["w4"], params["b4"], params["s4"], params["t4"])

    IN, H = w1.shape
    if in_pad > IN:                         # zero-pad fc1 contraction dim
        w1 = jnp.pad(w1, ((0, in_pad - IN), (0, 0)))

    wo = params["wo"].astype(weight_dtype)
    bo = params["bo"].astype(jnp.float32)
    OUT = wo.shape[1]
    if out_pad > OUT:                       # lane-dense output head
        wo = jnp.pad(wo, ((0, 0), (0, out_pad - OUT)))
        bo = jnp.pad(bo, ((0, 0), (0, out_pad - OUT)))

    # Single lane/sublane-dense bias operand: rows 0-3 = b1..b4, row 4 = bo.
    hb = _round_up(max(H, out_pad), 128)

    def row(b):
        return jnp.pad(b, ((0, 0), (0, hb - b.shape[1])))

    bias = jnp.concatenate(
        [row(b1), row(b2), row(b3), row(b4), row(bo),
         jnp.zeros((3, hb), jnp.float32)], axis=0)
    return (w1, w2, w3, w4, wo), bias


def aff_smirk_forward(smirk_features, params, *, batch_tile=256,
                      weight_dtype=jnp.bfloat16):
    """smirk_features: (B, input_size) f32.  Returns (valence, arousal, expression)."""
    B, IN = smirk_features.shape
    H = params["w1"].shape[1]
    OUT = params["wo"].shape[1]

    in_pad = _round_up(IN, 128)
    out_pad = _round_up(OUT, 128)
    batch_tile = max(8, min(_round_up(batch_tile, 8), _round_up(B, 8)))
    b_pad = _round_up(B, batch_tile)
    wbytes = np.dtype(weight_dtype).itemsize

    x = smirk_features.astype(weight_dtype)
    x = jnp.pad(x, ((0, b_pad - B), (0, in_pad - IN)))

    weights, bias = _fold_params(params, in_pad, out_pad, weight_dtype)
    hb = bias.shape[1]

    # --- exact VMEM budget: single-buffered resident weights + pipelined
    #     x/out tiles + packed biases + live activations + ~2 MiB headroom,
    #     capped at the chip's real per-core capacity. ---
    weights_b = (in_pad * H + 3 * H * H + H * out_pad) * wbytes
    bias_b = 8 * hb * 4 * 2
    io_b = batch_tile * (in_pad * wbytes + out_pad * 4) * 2
    act_b = batch_tile * H * 4 * 3
    need = weights_b + bias_b + io_b + act_b + (2 << 20)
    try:
        vmem_cap = int(pltpu.get_tpu_info().vmem_capacity_bytes)
    except Exception:
        vmem_cap = 64 << 20                      # v7x per-TC capacity (safe floor)
    vmem_limit = int(min(max(need, 32 << 20), vmem_cap - (2 << 20)))

    kernel = functools.partial(_mlp_kernel, hidden=H, out_pad=out_pad)

    grid_spec = pltpu.PrefetchScalarGridSpec(
        num_scalar_prefetch=0,
        grid=(b_pad // batch_tile,),
        in_specs=[
            pl.BlockSpec((batch_tile, in_pad), lambda i: (i, 0)),  # x tile
            pl.BlockSpec((8, hb), lambda i: (0, 0)),               # packed biases
            pl.BlockSpec(memory_space=pl.ANY),   # w1  (HBM; manual resident DMA)
            pl.BlockSpec(memory_space=pl.ANY),   # w2
            pl.BlockSpec(memory_space=pl.ANY),   # w3
            pl.BlockSpec(memory_space=pl.ANY),   # w4
            pl.BlockSpec(memory_space=pl.ANY),   # wo
        ],
        out_specs=pl.BlockSpec((batch_tile, out_pad), lambda i: (i, 0)),
        scratch_shapes=[
            pltpu.VMEM((in_pad, H), weight_dtype),   # resident w1
            pltpu.VMEM((H, H), weight_dtype),        # resident w2
            pltpu.VMEM((H, H), weight_dtype),        # resident w3
            pltpu.VMEM((H, H), weight_dtype),        # resident w4
            pltpu.VMEM((H, out_pad), weight_dtype),  # resident wo
            pltpu.SemaphoreType.DMA((5,)),
        ],
    )

    out = pl.pallas_call(
        kernel,
        out_shape=jax.ShapeDtypeStruct((b_pad, out_pad), jnp.float32),
        grid_spec=grid_spec,
        compiler_params=pltpu.CompilerParams(
            dimension_semantics=("arbitrary",),
            vmem_limit_bytes=vmem_limit),
    )(x, bias, *weights)

    out = out[:B]
    expression = out[:, :8]
    arousal = out[:, 8]
    valence = out[:, 9]
    return valence, arousal, expression


# ---------------------------------------------------------------------------
# Deterministic parameter construction (synthetic init, no checkpoint load)
# ---------------------------------------------------------------------------
def make_params(key, input_size, hidden_size, output_size, eps=1e-5):
    keys = jax.random.split(key, 16)

    def linear(kw, kb, fan_in, fan_out):
        w = jax.random.normal(kw, (fan_in, fan_out), jnp.float32) * (fan_in ** -0.5)
        b = jax.random.normal(kb, (1, fan_out), jnp.float32) * 0.01
        return w, b

    def bn(kg, kb, n):
        gamma = 1.0 + 0.1 * jax.random.normal(kg, (1, n), jnp.float32)
        beta = 0.1 * jax.random.normal(kb, (1, n), jnp.float32)
        mean = 0.05 * jnp.arange(n, dtype=jnp.float32).reshape(1, n) / n
        var = 1.0 + 0.01 * jnp.arange(n, dtype=jnp.float32).reshape(1, n) / n
        scale = gamma / jnp.sqrt(var + eps)
        shift = beta - mean * scale
        return scale, shift

    w1, b1 = linear(keys[0], keys[1], input_size, hidden_size)
    s1, t1 = bn(keys[2], keys[3], hidden_size)
    w2, b2 = linear(keys[4], keys[5], hidden_size, hidden_size)
    s2, t2 = bn(keys[6], keys[7], hidden_size)
    w3, b3 = linear(keys[8], keys[9], hidden_size, hidden_size)
    s3, t3 = bn(keys[10], keys[11], hidden_size)
    w4, b4 = linear(keys[12], keys[13], hidden_size, hidden_size)
    s4, t4 = bn(keys[14], keys[15], hidden_size)
    wo, bo = linear(jax.random.PRNGKey(123), jax.random.PRNGKey(456),
                    hidden_size, output_size)

    return dict(w1=w1, b1=b1, s1=s1, t1=t1,
                w2=w2, b2=b2, s2=s2, t2=t2,
                w3=w3, b3=b3, s3=s3, t3=t3,
                w4=w4, b4=b4, s4=s4, t4=t4,
                wo=wo, bo=bo)


# Pure-JAX reference (same bf16 compute / f32 accumulate precision path)
def reference_forward(x, p, compute_dtype=jnp.bfloat16):
    def block(h, w, b, s, t):
        wf = (w * s).astype(compute_dtype)
        bf = b * s + t
        z = jnp.dot(h.astype(compute_dtype), wf,
                    preferred_element_type=jnp.float32) + bf
        return jnp.maximum(z, 0.2 * z)

    h = block(x, p["w1"], p["b1"], p["s1"], p["t1"])
    h = block(h, p["w2"], p["b2"], p["s2"], p["t2"])
    h = block(h, p["w3"], p["b3"], p["s3"], p["t3"])
    h = block(h, p["w4"], p["b4"], p["s4"], p["t4"])
    out = (jnp.dot(h.astype(compute_dtype), p["wo"].astype(compute_dtype),
                   preferred_element_type=jnp.float32) + p["bo"])
    return out[:, 9], out[:, 8], out[:, :8]


if __name__ == "__main__":
    # Small shapes consistent with the module (defaults 358/2048/10, scaled
    # down).  B=256 gives a single full 256-row MXU tile.
    B = 256
    INPUT_SIZE = 64
    HIDDEN = 256
    OUTPUT = 10

    key = jax.random.PRNGKey(0)
    k_feat, k_param = jax.random.split(key)

    # Mimic the smirk_feature dict-of-lists -> stack(dim=1) -> cat(dim=1) glue
    # (pure data plumbing, done in plain JAX outside the kernel).
    n_pose, n_expr, n_shape = 16, 32, 16
    kf = jax.random.split(k_feat, 3)
    smirk_feature = {
        "pose": [jax.random.normal(k, (B,), jnp.float32)
                 for k in jax.random.split(kf[0], n_pose)],
        "expression": [jax.random.normal(k, (B,), jnp.float32)
                       for k in jax.random.split(kf[1], n_expr)],
        "shape": [jax.random.normal(k, (B,), jnp.float32)
                  for k in jax.random.split(kf[2], n_shape)],
    }
    smirk_features_list = [jnp.stack(smirk_feature[key_], axis=1)
                           for key_ in smirk_feature]
    smirk_features = jnp.concatenate(smirk_features_list, axis=1).astype(jnp.float32)
    assert smirk_features.shape == (B, INPUT_SIZE)

    params = make_params(k_param, INPUT_SIZE, HIDDEN, OUTPUT)

    valence, arousal, expression = aff_smirk_forward(smirk_features, params)
    jax.block_until_ready((valence, arousal, expression))

    v_ref, a_ref, e_ref = reference_forward(smirk_features, params)
    assert valence.shape == (B,) and arousal.shape == (B,) and expression.shape == (B, 8)
    assert jnp.allclose(valence, v_ref, atol=3e-2, rtol=3e-2)
    assert jnp.allclose(arousal, a_ref, atol=3e-2, rtol=3e-2)
    assert jnp.allclose(expression, e_ref, atol=3e-2, rtol=3e-2)

    print("KERNEL_OK")
</pallas_src>

<mosaic_0001>
module attributes {stable_mosaic.version = 11 : i64} {
  func.func @_mlp_kernel(%arg0: i32, %arg1: memref<256x128xbf16, #tpu.memory_space<vmem>>, %arg2: memref<8x256xf32, #tpu.memory_space<vmem>>, %arg3: memref<128x256xbf16, #tpu.memory_space<any>>, %arg4: memref<256x256xbf16, #tpu.memory_space<any>>, %arg5: memref<256x256xbf16, #tpu.memory_space<any>>, %arg6: memref<256x256xbf16, #tpu.memory_space<any>>, %arg7: memref<256x128xbf16, #tpu.memory_space<any>>, %arg8: memref<256x128xf32, #tpu.memory_space<vmem>>, %arg9: memref<128x256xbf16, #tpu.memory_space<vmem>>, %arg10: memref<256x256xbf16, #tpu.memory_space<vmem>>, %arg11: memref<256x256xbf16, #tpu.memory_space<vmem>>, %arg12: memref<256x256xbf16, #tpu.memory_space<vmem>>, %arg13: memref<256x128xbf16, #tpu.memory_space<vmem>>, %arg14: memref<5x!tpu.dma_semaphore, #tpu.memory_space<semaphore_mem>>) attributes {dimension_semantics = [#tpu.dimension_semantics<arbitrary>], iteration_bounds = array<i64: 1>, scalar_prefetch = 0 : i64, scratch_operands = 6 : i64, tpu.core_type = #tpu.core_type<tc>, window_params = [{transform_indices = @transform_0, window_bounds = array<i64: 256, 128>}, {pipeline_mode = #tpu.pipeline_mode<synchronous>, transform_indices = @transform_1, window_bounds = array<i64: 8, 256>}, {}, {}, {}, {}, {}, {transform_indices = @transform_7, window_bounds = array<i64: 256, 128>}]} {
    %c0_i32 = arith.constant 0 : i32
    %0 = arith.cmpi eq, %arg0, %c0_i32 : i32
    %1 = arith.extui %0 : i1 to i32
    %c0_i32_0 = arith.constant 0 : i32
    %2 = arith.cmpi ne, %1, %c0_i32_0 : i32
    scf.if %2 {
      %c0_i32_33 = arith.constant 0 : i32
      %56 = tpu.memref_slice %arg14[%c0_i32_33] : memref<5x!tpu.dma_semaphore, #tpu.memory_space<semaphore_mem>> -> memref<1x!tpu.dma_semaphore, #tpu.memory_space<semaphore_mem>>
      %57 = tpu.memref_squeeze %56 : memref<1x!tpu.dma_semaphore, #tpu.memory_space<semaphore_mem>> -> memref<!tpu.dma_semaphore, #tpu.memory_space<semaphore_mem>>
      tpu.enqueue_dma source(%arg3 : memref<128x256xbf16, #tpu.memory_space<any>>) target(%arg9 : memref<128x256xbf16, #tpu.memory_space<vmem>>) target_semaphore(%57 : memref<!tpu.dma_semaphore, #tpu.memory_space<semaphore_mem>>)
      %c1_i32 = arith.constant 1 : i32
      %58 = tpu.memref_slice %arg14[%c1_i32] : memref<5x!tpu.dma_semaphore, #tpu.memory_space<semaphore_mem>> -> memref<1x!tpu.dma_semaphore, #tpu.memory_space<semaphore_mem>>
      %59 = tpu.memref_squeeze %58 : memref<1x!tpu.dma_semaphore, #tpu.memory_space<semaphore_mem>> -> memref<!tpu.dma_semaphore, #tpu.memory_space<semaphore_mem>>
      tpu.enqueue_dma source(%arg4 : memref<256x256xbf16, #tpu.memory_space<any>>) target(%arg10 : memref<256x256xbf16, #tpu.memory_space<vmem>>) target_semaphore(%59 : memref<!tpu.dma_semaphore, #tpu.memory_space<semaphore_mem>>)
      %c2_i32 = arith.constant 2 : i32
      %60 = tpu.memref_slice %arg14[%c2_i32] : memref<5x!tpu.dma_semaphore, #tpu.memory_space<semaphore_mem>> -> memref<1x!tpu.dma_semaphore, #tpu.memory_space<semaphore_mem>>
      %61 = tpu.memref_squeeze %60 : memref<1x!tpu.dma_semaphore, #tpu.memory_space<semaphore_mem>> -> memref<!tpu.dma_semaphore, #tpu.memory_space<semaphore_mem>>
      tpu.enqueue_dma source(%arg5 : memref<256x256xbf16, #tpu.memory_space<any>>) target(%arg11 : memref<256x256xbf16, #tpu.memory_space<vmem>>) target_semaphore(%61 : memref<!tpu.dma_semaphore, #tpu.memory_space<semaphore_mem>>)
      %c3_i32 = arith.constant 3 : i32
      %62 = tpu.memref_slice %arg14[%c3_i32] : memref<5x!tpu.dma_semaphore, #tpu.memory_space<semaphore_mem>> -> memref<1x!tpu.dma_semaphore, #tpu.memory_space<semaphore_mem>>
      %63 = tpu.memref_squeeze %62 : memref<1x!tpu.dma_semaphore, #tpu.memory_space<semaphore_mem>> -> memref<!tpu.dma_semaphore, #tpu.memory_space<semaphore_mem>>
      tpu.enqueue_dma source(%arg6 : memref<256x256xbf16, #tpu.memory_space<any>>) target(%arg12 : memref<256x256xbf16, #tpu.memory_space<vmem>>) target_semaphore(%63 : memref<!tpu.dma_semaphore, #tpu.memory_space<semaphore_mem>>)
      %c4_i32 = arith.constant 4 : i32
      %64 = tpu.memref_slice %arg14[%c4_i32] : memref<5x!tpu.dma_semaphore, #tpu.memory_space<semaphore_mem>> -> memref<1x!tpu.dma_semaphore, #tpu.memory_space<semaphore_mem>>
      %65 = tpu.memref_squeeze %64 : memref<1x!tpu.dma_semaphore, #tpu.memory_space<semaphore_mem>> -> memref<!tpu.dma_semaphore, #tpu.memory_space<semaphore_mem>>
      tpu.enqueue_dma source(%arg7 : memref<256x128xbf16, #tpu.memory_space<any>>) target(%arg13 : memref<256x128xbf16, #tpu.memory_space<vmem>>) target_semaphore(%65 : memref<!tpu.dma_semaphore, #tpu.memory_space<semaphore_mem>>)
    } else {
    }
    %c0 = arith.constant 0 : index
    %c0_1 = arith.constant 0 : index
    %3 = vector.load %arg1[%c0, %c0_1] : memref<256x128xbf16, #tpu.memory_space<vmem>>, vector<256x128xbf16>
    %4 = arith.extui %0 : i1 to i32
    %c0_i32_2 = arith.constant 0 : i32
    %5 = arith.cmpi ne, %4, %c0_i32_2 : i32
    scf.if %5 {
      %c0_i32_33 = arith.constant 0 : i32
      %56 = tpu.memref_slice %arg14[%c0_i32_33] : memref<5x!tpu.dma_semaphore, #tpu.memory_space<semaphore_mem>> -> memref<1x!tpu.dma_semaphore, #tpu.memory_space<semaphore_mem>>
      %57 = tpu.memref_squeeze %56 : memref<1x!tpu.dma_semaphore, #tpu.memory_space<semaphore_mem>> -> memref<!tpu.dma_semaphore, #tpu.memory_space<semaphore_mem>>
      tpu.wait_dma2 semaphore(%57 : memref<!tpu.dma_semaphore, #tpu.memory_space<semaphore_mem>>) src(%arg3 : memref<128x256xbf16, #tpu.memory_space<any>>) dst(%arg9 : memref<128x256xbf16, #tpu.memory_space<vmem>>)
    } else {
    }
    %c0_3 = arith.constant 0 : index
    %c0_4 = arith.constant 0 : index
    %6 = vector.load %arg9[%c0_3, %c0_4] : memref<128x256xbf16, #tpu.memory_space<vmem>>, vector<128x256xbf16>
    %cst = arith.constant dense<0.000000e+00> : vector<256x256xf32>
    %7 = tpu.matmul %3, %6, %cst {dimension_numbers = #tpu.dot_dimension_numbers<[1], [0], [0], [1], [0, 0, 1, 1], [], []>} : vector<256x128xbf16>, vector<128x256xbf16>, vector<256x256xf32> -> vector<256x256xf32>
    %c0_5 = arith.constant 0 : index
    %c0_6 = arith.constant 0 : index
    %8 = vector.load %arg2[%c0_5, %c0_6] : memref<8x256xf32, #tpu.memory_space<vmem>>, vector<1x256xf32>
    %9 = vector.broadcast %8 : vector<1x256xf32> to vector<256x256xf32>
    %10 = arith.addf %7, %9 : vector<256x256xf32>
    %cst_7 = arith.constant 2.000000e-01 : f32
    %11 = vector.broadcast %cst_7 : f32 to vector<256x256xf32>
    %12 = arith.mulf %11, %10 : vector<256x256xf32>
    %13 = arith.maximumf %10, %12 : vector<256x256xf32>
    %14 = arith.truncf %13 : vector<256x256xf32> to vector<256x256xbf16>
    %15 = arith.extui %0 : i1 to i32
    %c0_i32_8 = arith.constant 0 : i32
    %16 = arith.cmpi ne, %15, %c0_i32_8 : i32
    scf.if %16 {
      %c1_i32 = arith.constant 1 : i32
      %56 = tpu.memref_slice %arg14[%c1_i32] : memref<5x!tpu.dma_semaphore, #tpu.memory_space<semaphore_mem>> -> memref<1x!tpu.dma_semaphore, #tpu.memory_space<semaphore_mem>>
      %57 = tpu.memref_squeeze %56 : memref<1x!tpu.dma_semaphore, #tpu.memory_space<semaphore_mem>> -> memref<!tpu.dma_semaphore, #tpu.memory_space<semaphore_mem>>
      tpu.wait_dma2 semaphore(%57 : memref<!tpu.dma_semaphore, #tpu.memory_space<semaphore_mem>>) src(%arg4 : memref<256x256xbf16, #tpu.memory_space<any>>) dst(%arg10 : memref<256x256xbf16, #tpu.memory_space<vmem>>)
    } else {
    }
    %c0_9 = arith.constant 0 : index
    %c0_10 = arith.constant 0 : index
    %17 = vector.load %arg10[%c0_9, %c0_10] : memref<256x256xbf16, #tpu.memory_space<vmem>>, vector<256x256xbf16>
    %cst_11 = arith.constant dense<0.000000e+00> : vector<256x256xf32>
    %18 = tpu.matmul %14, %17, %cst_11 {dimension_numbers = #tpu.dot_dimension_numbers<[1], [0], [0], [1], [0, 0, 1, 1], [], []>} : vector<256x256xbf16>, vector<256x256xbf16>, vector<256x256xf32> -> vector<256x256xf32>
    %c1 = arith.constant 1 : index
    %c0_12 = arith.constant 0 : index
    %19 = vector.load %arg2[%c1, %c0_12] : memref<8x256xf32, #tpu.memory_space<vmem>>, vector<1x256xf32>
    %20 = vector.broadcast %19 : vector<1x256xf32> to vector<256x256xf32>
    %21 = arith.addf %18, %20 : vector<256x256xf32>
    %cst_13 = arith.constant 2.000000e-01 : f32
    %22 = vector.broadcast %cst_13 : f32 to vector<256x256xf32>
    %23 = arith.mulf %22, %21 : vector<256x256xf32>
    %24 = arith.maximumf %21, %23 : vector<256x256xf32>
    %25 = arith.truncf %24 : vector<256x256xf32> to vector<256x256xbf16>
    %26 = arith.extui %0 : i1 to i32
    %c0_i32_14 = arith.constant 0 : i32
    %27 = arith.cmpi ne, %26, %c0_i32_14 : i32
    scf.if %27 {
      %c2_i32 = arith.constant 2 : i32
      %56 = tpu.memref_slice %arg14[%c2_i32] : memref<5x!tpu.dma_semaphore, #tpu.memory_space<semaphore_mem>> -> memref<1x!tpu.dma_semaphore, #tpu.memory_space<semaphore_mem>>
      %57 = tpu.memref_squeeze %56 : memref<1x!tpu.dma_semaphore, #tpu.memory_space<semaphore_mem>> -> memref<!tpu.dma_semaphore, #tpu.memory_space<semaphore_mem>>
      tpu.wait_dma2 semaphore(%57 : memref<!tpu.dma_semaphore, #tpu.memory_space<semaphore_mem>>) src(%arg5 : memref<256x256xbf16, #tpu.memory_space<any>>) dst(%arg11 : memref<256x256xbf16, #tpu.memory_space<vmem>>)
    } else {
    }
    %c0_15 = arith.constant 0 : index
    %c0_16 = arith.constant 0 : index
    %28 = vector.load %arg11[%c0_15, %c0_16] : memref<256x256xbf16, #tpu.memory_space<vmem>>, vector<256x256xbf16>
    %cst_17 = arith.constant dense<0.000000e+00> : vector<256x256xf32>
    %29 = tpu.matmul %25, %28, %cst_17 {dimension_numbers = #tpu.dot_dimension_numbers<[1], [0], [0], [1], [0, 0, 1, 1], [], []>} : vector<256x256xbf16>, vector<256x256xbf16>, vector<256x256xf32> -> vector<256x256xf32>
    %c2 = arith.constant 2 : index
    %c0_18 = arith.constant 0 : index
    %30 = vector.load %arg2[%c2, %c0_18] : memref<8x256xf32, #tpu.memory_space<vmem>>, vector<1x256xf32>
    %31 = vector.broadcast %30 : vector<1x256xf32> to vector<256x256xf32>
    %32 = arith.addf %29, %31 : vector<256x256xf32>
    %cst_19 = arith.constant 2.000000e-01 : f32
    %33 = vector.broadcast %cst_19 : f32 to vector<256x256xf32>
    %34 = arith.mulf %33, %32 : vector<256x256xf32>
    %35 = arith.maximumf %32, %34 : vector<256x256xf32>
    %36 = arith.truncf %35 : vector<256x256xf32> to vector<256x256xbf16>
    %37 = arith.extui %0 : i1 to i32
    %c0_i32_20 = arith.constant 0 : i32
    %38 = arith.cmpi ne, %37, %c0_i32_20 : i32
    scf.if %38 {
      %c3_i32 = arith.constant 3 : i32
      %56 = tpu.memref_slice %arg14[%c3_i32] : memref<5x!tpu.dma_semaphore, #tpu.memory_space<semaphore_mem>> -> memref<1x!tpu.dma_semaphore, #tpu.memory_space<semaphore_mem>>
      %57 = tpu.memref_squeeze %56 : memref<1x!tpu.dma_semaphore, #tpu.memory_space<semaphore_mem>> -> memref<!tpu.dma_semaphore, #tpu.memory_space<semaphore_mem>>
      tpu.wait_dma2 semaphore(%57 : memref<!tpu.dma_semaphore, #tpu.memory_space<semaphore_mem>>) src(%arg6 : memref<256x256xbf16, #tpu.memory_space<any>>) dst(%arg12 : memref<256x256xbf16, #tpu.memory_space<vmem>>)
    } else {
    }
    %c0_21 = arith.constant 0 : index
    %c0_22 = arith.constant 0 : index
    %39 = vector.load %arg12[%c0_21, %c0_22] : memref<256x256xbf16, #tpu.memory_space<vmem>>, vector<256x256xbf16>
    %cst_23 = arith.constant dense<0.000000e+00> : vector<256x256xf32>
    %40 = tpu.matmul %36, %39, %cst_23 {dimension_numbers = #tpu.dot_dimension_numbers<[1], [0], [0], [1], [0, 0, 1, 1], [], []>} : vector<256x256xbf16>, vector<256x256xbf16>, vector<256x256xf32> -> vector<256x256xf32>
    %c3 = arith.constant 3 : index
    %c0_24 = arith.constant 0 : index
    %41 = vector.load %arg2[%c3, %c0_24] : memref<8x256xf32, #tpu.memory_space<vmem>>, vector<1x256xf32>
    %42 = vector.broadcast %41 : vector<1x256xf32> to vector<256x256xf32>
    %43 = arith.addf %40, %42 : vector<256x256xf32>
    %cst_25 = arith.constant 2.000000e-01 : f32
    %44 = vector.broadcast %cst_25 : f32 to vector<256x256xf32>
    %45 = arith.mulf %44, %43 : vector<256x256xf32>
    %46 = arith.maximumf %43, %45 : vector<256x256xf32>
    %47 = arith.truncf %46 : vector<256x256xf32> to vector<256x256xbf16>
    %48 = arith.extui %0 : i1 to i32
    %c0_i32_26 = arith.constant 0 : i32
    %49 = arith.cmpi ne, %48, %c0_i32_26 : i32
    scf.if %49 {
      %c4_i32 = arith.constant 4 : i32
      %56 = tpu.memref_slice %arg14[%c4_i32] : memref<5x!tpu.dma_semaphore, #tpu.memory_space<semaphore_mem>> -> memref<1x!tpu.dma_semaphore, #tpu.memory_space<semaphore_mem>>
      %57 = tpu.memref_squeeze %56 : memref<1x!tpu.dma_semaphore, #tpu.memory_space<semaphore_mem>> -> memref<!tpu.dma_semaphore, #tpu.memory_space<semaphore_mem>>
      tpu.wait_dma2 semaphore(%57 : memref<!tpu.dma_semaphore, #tpu.memory_space<semaphore_mem>>) src(%arg7 : memref<256x128xbf16, #tpu.memory_space<any>>) dst(%arg13 : memref<256x128xbf16, #tpu.memory_space<vmem>>)
    } else {
    }
    %c0_27 = arith.constant 0 : index
    %c0_28 = arith.constant 0 : index
    %50 = vector.load %arg13[%c0_27, %c0_28] : memref<256x128xbf16, #tpu.memory_space<vmem>>, vector<256x128xbf16>
    %cst_29 = arith.constant dense<0.000000e+00> : vector<256x128xf32>
    %51 = tpu.matmul %47, %50, %cst_29 {dimension_numbers = #tpu.dot_dimension_numbers<[1], [0], [0], [1], [0, 0, 1, 1], [], []>} : vector<256x256xbf16>, vector<256x128xbf16>, vector<256x128xf32> -> vector<256x128xf32>
    %c4 = arith.constant 4 : index
    %c0_30 = arith.constant 0 : index
    %52 = vector.load %arg2[%c4, %c0_30] : memref<8x256xf32, #tpu.memory_space<vmem>>, vector<1x128xf32>
    %53 = vector.broadcast %52 : vector<1x128xf32> to vector<256x128xf32>
    %54 = arith.addf %51, %53 : vector<256x128xf32>
    %c0_31 = arith.constant 0 : index
    %c0_32 = arith.constant 0 : index
    %55 = vector.load %arg8[%c0_31, %c0_32] : memref<256x128xf32, #tpu.memory_space<vmem>>, vector<256x128xf32>
    tpu.vector_store %arg8[%c0_31, %c0_32], %54 {strides = array<i32>} : memref<256x128xf32, #tpu.memory_space<vmem>>, vector<256x128xf32>,
    return
  }
  func.func @transform_0(%arg0: i32) -> (i32, i32) {
    %c0_i32 = arith.constant 0 : i32
    %c0_i32_0 = arith.constant 0 : i32
    return %arg0, %c0_i32 : i32, i32
  }
  func.func @transform_1(%arg0: i32) -> (i32, i32) {
    %c0_i32 = arith.constant 0 : i32
    %c0_i32_0 = arith.constant 0 : i32
    %c0_i32_1 = arith.constant 0 : i32
    return %c0_i32, %c0_i32_0 : i32, i32
  }
  func.func @transform_7(%arg0: i32) -> (i32, i32) {
    %c0_i32 = arith.constant 0 : i32
    %c0_i32_0 = arith.constant 0 : i32
    return %arg0, %c0_i32 : i32, i32
  }
}

</mosaic_0001>

<bundles_post_ra>
// kernel: tpu_custom_call.1
= control target key start
LH: loop header
LB: loop body
LE: loop exit
PB: predicated region body
PF: predicated region fallthrough
CT: control target
= control target key end

     0   :  { %12 = vsyncpa [#allocation9], 0  ;;  %s5175_s0 = inlined_call_operand.hbm [shape: bf16[256,128], index: 0, kind: input, shape index: {}]   ;;  %s5176_s1 = inlined_call_operand.hbm [shape: f32[8,256], index: 1, kind: input, shape index: {}]   ;;  %s5177_s2 = inlined_call_operand.hbm [shape: bf16[128,256], index: 2, kind: input, shape index: {}]   ;;  %s5178_s3 = inlined_call_operand.hbm [shape: bf16[256,256], index: 3, kind: input, shape index: {}]   ;;  %s5179_s4 = inlined_call_operand.hbm [shape: bf16[256,256], index: 4, kind: input, shape index: {}]   ;;  %s5180_s5 = inlined_call_operand.hbm [shape: bf16[256,256], index: 5, kind: input, shape index: {}]   ;;  %s5181_s6 = inlined_call_operand.hbm [shape: bf16[256,128], index: 6, kind: input, shape index: {}]   ;;  %s5182_s7 = inlined_call_operand.hbm [shape: f32[256,128], index: 7, kind: output, shape index: {}]  }
   0x1   :  { %13 = vsyncpa [#allocation12], 0 }
   0x2   :  { %14 = vsyncpa [#allocation10], 0  ;;  %s19_s26 = sshll.u32 %s5175_s0, 4  ;;  %s4210_s27 = smov [#allocation8]   ;;  %s20_s26 = int_to_ptr.hbm [resolvable:$true] %s19_s26 }
   0x3   :  { %s21_s28 = sshll.u32 %s4210_s27, 4  ;;  %s33_s8 = sshll.u32 %s5176_s1, 4  ;;  %s22_s28 = int_to_ptr.vmem [resolvable:$true] %s21_s28  ;;  %s34_s8 = int_to_ptr.hbm [resolvable:$true] %s33_s8 }
   0x4   :  { %s4211_s9 = smov 64   ;;  %s4212_s10 = smov 4  }
   0x5   :  { %27 = dma.hbm_to_vmem [thread:$0]  %s20_s26, 2048, %s22_s28, [#allocation9], %s4211_s9, %s4211_s9, %s4212_s10  }
   0x6   :  { %s4213_s11 = smov [#allocation11]  }
   0x7   :  { %s35_s12 = sshll.u32 %s4213_s11, 4  ;;  %s36_s12 = int_to_ptr.vmem [resolvable:$true] %s35_s12 }
   0x8   :  { %38 = dma.hbm_to_vmem [thread:$0]  %s34_s8, 256, %s36_s12, [#allocation12]  }
   0x9   :  { %4194 = dma.done.wait [#allocation9], 2048  }
   0xa   :  { %4195 = vsyncadd [#allocation9], 4294965248 }
   0xb   :  { %4196 = dma.done.wait [#allocation12], 256  }
   0xc   :  { %4197 = vsyncadd [#allocation12], 4294967040  ;;  %s58_s14 = sshll.u32 %s5177_s2, 4  ;;  %s4214_s15 = smov [#allocation2]   ;;  %v4279_v0 = vld [vmem:[#allocation8] sm:$0xf]  ;;  %s59_s14 = int_to_ptr.hbm [resolvable:$true] %s58_s14 }
   0xd   :  { %s60_s16 = sshll.u32 %s4214_s15, 4  ;;  %s72_s18 = sshll.u32 %s5178_s3, 4  ;;  %v4281_v1 = vld [vmem:[#allocation8] sm:$0xf0]  ;;  %v4283_v2 = vld [vmem:[#allocation8 + $0x8] sm:$0xf]  ;;  %s61_s16 = int_to_ptr.vmem [resolvable:$true] %s60_s16  ;;  %s73_s18 = int_to_ptr.hbm [resolvable:$true] %s72_s18 }
   0xe   :  { %63 = dma.hbm_to_vmem [thread:$0]  %s59_s14, 2048, %s61_s16, [#allocation7]  ;;  %v4285_v3 = vld [vmem:[#allocation8 + $0x8] sm:$0xf0]  ;;  %v4287_v4 = vld [vmem:[#allocation8 + $0x10] sm:$0xf] }
   0xf   :  { %s4215_s19 = smov [#allocation3]   ;;  %s86_s23 = sshll.u32 %s5179_s4, 4  ;;  %v4289_v5 = vld [vmem:[#allocation8 + $0x10] sm:$0xf0]  ;;  %v4291_v6 = vld [vmem:[#allocation8 + $0x18] sm:$0xf]  ;;  %s87_s23 = int_to_ptr.hbm [resolvable:$true] %s86_s23 }
  0x10   :  { %s4274_s20 = sshll.u32 %s4215_s19, 4  ;;  %v4293_v7 = vld [vmem:[#allocation8 + $0x18] sm:$0xf0]  ;;  %v4295_v8 = vld [vmem:[#allocation8 + $0x20] sm:$0xf]  ;;  %s100_s26 = sshll.u32 %s5180_s5, 4  ;;  %s75_s20 = int_to_ptr.vmem [resolvable:$true] %s4274_s20  ;;  %s101_s26 = int_to_ptr.hbm [resolvable:$true] %s100_s26 }
  0x11   :  { %v4297_v9 = vld [vmem:[#allocation8 + $0x20] sm:$0xf0]  ;;  %v4299_v10 = vld [vmem:[#allocation8 + $0x28] sm:$0xf]  ;;  %v4301_v11 = vld [vmem:[#allocation8 + $0x28] sm:$0xf0] }
  0x12   :  { %v4303_v12 = vld [vmem:[#allocation8 + $0x30] sm:$0xf]  ;;  %v4305_v13 = vld [vmem:[#allocation8 + $0x30] sm:$0xf0]  ;;  %v4307_v14 = vld [vmem:[#allocation8 + $0x38] sm:$0xf] }
  0x13   :  { %v4309_v15 = vld [vmem:[#allocation8 + $0x38] sm:$0xf0]  ;;  %v4311_v16 = vld [vmem:[#allocation8 + $0x40] sm:$0xf]  ;;  %v4313_v17 = vld [vmem:[#allocation8 + $0x40] sm:$0xf0] }
  0x14   :  { %v4315_v18 = vld [vmem:[#allocation8 + $0x48] sm:$0xf]  ;;  %v4317_v19 = vld [vmem:[#allocation8 + $0x48] sm:$0xf0]  ;;  %v4319_v20 = vld [vmem:[#allocation8 + $0x50] sm:$0xf] }
  0x15   :  { %v4321_v21 = vld [vmem:[#allocation8 + $0x50] sm:$0xf0]  ;;  %v4323_v22 = vld [vmem:[#allocation8 + $0x58] sm:$0xf]  ;;  %v4325_v23 = vld [vmem:[#allocation8 + $0x58] sm:$0xf0] }
  0x16   :  { %v4328_v24 = vld [vmem:[#allocation8 + $0x60] sm:$0xf]  ;;  %v4330_v25 = vld [vmem:[#allocation8 + $0x60] sm:$0xf0]  ;;  %v4332_v26 = vld [vmem:[#allocation8 + $0x68] sm:$0xf] }
  0x17   :  { %v4334_v27 = vld [vmem:[#allocation8 + $0x68] sm:$0xf0]  ;;  %v4336_v28 = vld [vmem:[#allocation8 + $0x70] sm:$0xf]  ;;  %v4338_v29 = vld [vmem:[#allocation8 + $0x70] sm:$0xf0] }
  0x18   :  { %v4344_v30 = vld [vmem:[#allocation8 + $0x78] sm:$0xf]  ;;  %v4346_v31 = vld [vmem:[#allocation8 + $0x78] sm:$0xf0]  ;;  %77 = dma.hbm_to_vmem [thread:$0]  %s73_s18, 4096, %s75_s20, [#allocation7 + $0x1] }
  0x19   :  { %s4216_s27 = smov [#allocation4]   ;;  %s4217_s29 = smov [#allocation5]  }
  0x1a   :  { %s88_s28 = sshll.u32 %s4216_s27, 4  ;;  %s102_s30 = sshll.u32 %s4217_s29, 4  ;;  %s89_s28 = int_to_ptr.vmem [resolvable:$true] %s88_s28  ;;  %s103_s30 = int_to_ptr.vmem [resolvable:$true] %s102_s30 }
  0x1b   :  { %91 = dma.hbm_to_vmem [thread:$0]  %s87_s23, 4096, %s89_s28, [#allocation7 + $0x2] }
  0x1c   :  { %s114_s4 = sshll.u32 %s5181_s6, 4  ;;  %s4218_s10 = smov [#allocation6]   ;;  %s115_s4 = int_to_ptr.hbm [resolvable:$true] %s114_s4 }
  0x1d   :  { %105 = dma.hbm_to_vmem [thread:$0]  %s101_s26, 4096, %s103_s30, [#allocation7 + $0x3] }
  0x1e   :  { %s116_s11 = sshll.u32 %s4218_s10, 4  ;;  %s117_s11 = int_to_ptr.vmem [resolvable:$true] %s116_s11 }
  0x1f   :  { %119 = dma.hbm_to_vmem [thread:$0]  %s115_s4, 2048, %s117_s11, [#allocation7 + $0x4] }
  0x20   :  { %4198 = dma.done.wait [#allocation7], 2048 }
  0x21   :  { %4199 = vsyncadd [#allocation7], 4294965248  ;;  %v3387_v32 = vld [vmem:[#allocation2 + $0x70] sm:$0xf]  ;;  %v3877_v33 = vld [vmem:[#allocation2 + $0x74] sm:$0xf0] }
  0x22   :  { %v3876_v34 = vld [vmem:[#allocation2 + $0x74] sm:$0xf]  ;;  %v3388_v35 = vor.u32 %v3877_v33, %v3387_v32  ;;  %v3389_v36 = vld [vmem:[#allocation2 + $0x78] sm:$0xf0]  ;;  %v3379_v37 = vld [vmem:[#allocation2 + $0x60] sm:$0xf] }
  0x23   :  { %v3875_v38 = vld [vmem:[#allocation2 + $0x64] sm:$0xf0]  ;;  %v3392_v39 = vor.u32 %v3876_v34, %v3389_v36  ;;  %v3874_v40 = vld [vmem:[#allocation2 + $0x64] sm:$0xf]  ;;  %v3381_v41 = vld [vmem:[#allocation2 + $0x68] sm:$0xf0] }
  0x24   :  { %357 = vmatpush.bf16.msra.mxu0 %v3388_v35  ;;  %v3380_v42 = vor.u32 %v3875_v38, %v3379_v37  ;;  %v3384_v43 = vor.u32 %v3874_v40, %v3381_v41  ;;  %v3371_v44 = vld [vmem:[#allocation2 + $0x50] sm:$0xf]  ;;  %v3873_v45 = vld [vmem:[#allocation2 + $0x54] sm:$0xf0]  ;;  %v3872_v46 = vld [vmem:[#allocation2 + $0x54] sm:$0xf] }
  0x25   :  { %446 = vmatpush.bf16.msra.mxu1 %v3392_v39  ;;  %v3373_v47 = vld [vmem:[#allocation2 + $0x58] sm:$0xf0]  ;;  %v3372_v48 = vor.u32 %v3873_v45, %v3371_v44  ;;  %v3363_v50 = vld [vmem:[#allocation2 + $0x40] sm:$0xf]  ;;  %v3871_v51 = vld [vmem:[#allocation2 + $0x44] sm:$0xf0] }
  0x26   :  { %v3376_v49 = vor.u32 %v3872_v46, %v3373_v47  ;;  %v3870_v52 = vld [vmem:[#allocation2 + $0x44] sm:$0xf]  ;;  %v3365_v53 = vld [vmem:[#allocation2 + $0x48] sm:$0xf0]  ;;  %v3364_v54 = vor.u32 %v3871_v51, %v3363_v50  ;;  %v3355_v56 = vld [vmem:[#allocation2 + $0x30] sm:$0xf]  ;;  %v3276_v50 = vor.u32 %v4289_v5, %v4287_v4  ;;  %v3280_v51 = vor.u32 %v4293_v7, %v4291_v6 }
  0x27   :  { %v3368_v55 = vor.u32 %v3870_v52, %v3365_v53  ;;  %v3869_v57 = vld [vmem:[#allocation2 + $0x34] sm:$0xf0]  ;;  %v3868_v58 = vld [vmem:[#allocation2 + $0x34] sm:$0xf]  ;;  %v3357_v59 = vld [vmem:[#allocation2 + $0x38] sm:$0xf0]  ;;  %v3300_v5 = vor.u32 %v4313_v17, %v4311_v16 }
  0x28   :  { %358 = vmatpush.bf16.msra.mxu0 %v3380_v42  ;;  %v3356_v60 = vor.u32 %v3869_v57, %v3355_v56  ;;  %v3360_v61 = vor.u32 %v3868_v58, %v3357_v59  ;;  %v3347_v62 = vld [vmem:[#allocation2 + $0x20] sm:$0xf]  ;;  %v3867_v63 = vld [vmem:[#allocation2 + $0x24] sm:$0xf0]  ;;  %v3866_v32 = vld [vmem:[#allocation2 + $0x24] sm:$0xf]  ;;  %v3304_v59 = vor.u32 %v4317_v19, %v4315_v18 }
  0x29   :  { %447 = vmatpush.bf16.msra.mxu1 %v3384_v43  ;;  %v3349_v33 = vld [vmem:[#allocation2 + $0x28] sm:$0xf0]  ;;  %v3348_v34 = vor.u32 %v3867_v63, %v3347_v62  ;;  %v3339_v36 = vld [vmem:[#allocation2 + $0x10] sm:$0xf]  ;;  %v3865_v37 = vld [vmem:[#allocation2 + $0x14] sm:$0xf0] }
  0x2a   :  { %v3352_v35 = vor.u32 %v3866_v32, %v3349_v33  ;;  %v3864_v38 = vld [vmem:[#allocation2 + $0x14] sm:$0xf]  ;;  %v3341_v39 = vld [vmem:[#allocation2 + $0x18] sm:$0xf0]  ;;  %v3340_v40 = vor.u32 %v3865_v37, %v3339_v36  ;;  %v3331_v42 = vld [vmem:[#allocation2] sm:$0xf] }
  0x2b   :  { %v3344_v41 = vor.u32 %v3864_v38, %v3341_v39  ;;  %v3863_v43 = vld [vmem:[#allocation2 + $0x4] sm:$0xf0]  ;;  %v3862_v44 = vld [vmem:[#allocation2 + $0x4] sm:$0xf]  ;;  %v3333_v45 = vld [vmem:[#allocation2 + $0x8] sm:$0xf0] }
  0x2c   :  { %359 = vmatpush.bf16.msra.mxu0 %v3372_v48  ;;  %v3332_v46 = vor.u32 %v3863_v43, %v3331_v42  ;;  %v3336_v47 = vor.u32 %v3862_v44, %v3333_v45  ;;  %v3268_v48 = vor.u32 %v4281_v1, %v4279_v0  ;;  %v3284_v0 = vor.u32 %v4297_v9, %v4295_v8  ;;  %v175_v4 = vld [vmem:[#allocation11] ss:$8 sm:$0x3] }
  0x2d   :  { %448 = vmatpush.bf16.msra.mxu1 %v3376_v49  ;;  %v3272_v49 = vor.u32 %v4285_v3, %v4283_v2  ;;  %v3288_v1 = vor.u32 %v4301_v11, %v4299_v10  ;;  %v3292_v2 = vor.u32 %v4305_v13, %v4303_v12  ;;  %v3296_v3 = vor.u32 %v4309_v15, %v4307_v14 }
  0x2e   :  { %v4372_v7 = vperm.slane %v175_v4, 0  ;;  %v4374_v9 = vperm.slane %v175_v4, 1  ;;  %v3308_v44 = vor.u32 %v4321_v21, %v4319_v20 }
  0x30   :  { %360 = vmatpush.bf16.msra.mxu0 %v3364_v54 }
  0x31   :  { %449 = vmatpush.bf16.msra.mxu1 %v3368_v55 }
  0x34   :  { %361 = vmatpush.bf16.msra.mxu0 %v3356_v60 }
  0x35   :  { %450 = vmatpush.bf16.msra.mxu1 %v3360_v61 }
  0x38   :  { %362 = vmatpush.bf16.msra.mxu0 %v3348_v34 }
  0x39   :  { %451 = vmatpush.bf16.msra.mxu1 %v3352_v35 }
  0x3c   :  { %363 = vmatpush.bf16.msra.mxu0 %v3340_v40 }
  0x3d   :  { %452 = vmatpush.bf16.msra.mxu1 %v3344_v41 }
  0x40   :  { %364 = vmatpush.bf16.msra.mxu0 %v3332_v46 }
  0x41   :  { %453 = vmatpush.bf16.msra.mxu1 %v3336_v47 }
  0x43   :  { %365 = vmatmul.bf16.vlgmr.msra.gmra.mxu0 %v3268_v48 }
  0x44   :  { %454 = vmatmul.bf16.vlgmr.msra.gmra.mxu1 %v3268_v48 }
  0x53   :  { %370 = vmatmul.bf16.gmra.mxu0 %v3272_v49 }
  0x54   :  { %459 = vmatmul.bf16.gmra.mxu1 %v3272_v49 }
  0x63   :  { %375 = vmatmul.bf16.gmra.mxu0 %v3276_v50 }
  0x64   :  { %464 = vmatmul.bf16.gmra.mxu1 %v3276_v50 }
  0x73   :  { %380 = vmatmul.bf16.gmra.mxu0 %v3280_v51 }
  0x74   :  { %469 = vmatmul.bf16.gmra.mxu1 %v3280_v51 }
  0x83   :  { %385 = vmatmul.bf16.gmra.mxu0 %v3284_v0 }
  0x84   :  { %474 = vmatmul.bf16.gmra.mxu1 %v3284_v0 }
  0x93   :  { %390 = vmatmul.bf16.gmra.mxu0 %v3288_v1 }
  0x94   :  { %479 = vmatmul.bf16.gmra.mxu1 %v3288_v1 }
  0xa3   :  { %395 = vmatmul.bf16.gmra.mxu0 %v3292_v2 }
  0xa4   :  { %484 = vmatmul.bf16.gmra.mxu1 %v3292_v2 }
  0xb3   :  { %400 = vmatmul.bf16.gmra.mxu0 %v3296_v3 }
  0xb4   :  { %489 = vmatmul.bf16.gmra.mxu1 %v3296_v3 }
  0xc0   :  { %v366_v6 = vpop.f32.mrf.mxu0 }
  0xc1   :  { %v455_v8 = vpop.f32.mrf.mxu1  ;;  %v367_v10 = vadd.f32 %v366_v6, %v4372_v7 }
  0xc2   :  { %v456_v11 = vadd.f32 %v455_v8, %v4374_v9 }
  0xc3   :  { %405 = vmatmul.bf16.gmra.mxu0 %v3300_v5  ;;  %v535_v13 = vmul.f32 0.2, %v367_v10 }
  0xc4   :  { %494 = vmatmul.bf16.gmra.mxu1 %v3300_v5  ;;  %v536_v52 = vmul.f32 0.2, %v456_v11 }
  0xc5   :  { %v599_v54 = vmax.f32 %v367_v10, %v535_v13 }
  0xc6   :  { %v600_v56 = vmax.f32 %v456_v11, %v536_v52  ;;  %v3312_v11 = vor.u32 %v4325_v23, %v4323_v22 }
  0xc8   :  { %v368_v12 = vpop.f32.mrf.mxu0 }
  0xc9   :  { %v369_v14 = vadd.f32 %v368_v12, %v4372_v7  ;;  %v457_v15 = vpop.f32.mrf.mxu1 }
  0xca   :  { %v458_v16 = vadd.f32 %v457_v15, %v4374_v9 }
  0xcb   :  { %v537_v17 = vmul.f32 0.2, %v369_v14 }
  0xcc   :  { %v538_v53 = vmul.f32 0.2, %v458_v16 }
  0xcd   :  { %v601_v55 = vmax.f32 %v369_v14, %v537_v17 }
  0xce   :  { %v602_v57 = vmax.f32 %v458_v16, %v538_v53 }
  0xcf   :  { %v4380_v58 = vpack.c.bf16 %v601_v55, %v599_v54 }
  0xd0   :  { %v4384_v60 = vpack.c.bf16 %v602_v57, %v600_v56  ;;  %v371_v61 = vpop.f32.mrf.mxu0 }
  0xd1   :  { %v460_v62 = vpop.f32.mrf.mxu1  ;;  %v372_v63 = vadd.f32 %v371_v61, %v4372_v7 }
  0xd2   :  { %v461_v32 = vadd.f32 %v460_v62, %v4374_v9 }
  0xd3   :  { %410 = vmatmul.bf16.gmra.mxu0 %v3304_v59  ;;  %v539_v34 = vmul.f32 0.2, %v372_v63 }
  0xd4   :  { %499 = vmatmul.bf16.gmra.mxu1 %v3304_v59  ;;  %v540_v37 = vmul.f32 0.2, %v461_v32 }
  0xd5   :  { %v603_v19 = vmax.f32 %v372_v63, %v539_v34 }
  0xd6   :  { %v604_v41 = vmax.f32 %v461_v32, %v540_v37  ;;  %v3316_v32 = vor.u32 %v4330_v25, %v4328_v24 }
  0xd8   :  { %v373_v33 = vpop.f32.mrf.mxu0 }
  0xd9   :  { %v374_v35 = vadd.f32 %v373_v33, %v4372_v7  ;;  %v462_v36 = vpop.f32.mrf.mxu1 }
  0xda   :  { %v463_v38 = vadd.f32 %v462_v36, %v4374_v9 }
  0xdb   :  { %v541_v39 = vmul.f32 0.2, %v374_v35 }
  0xdc   :  { %v542_v18 = vmul.f32 0.2, %v463_v38 }
  0xdd   :  { %v605_v40 = vmax.f32 %v374_v35, %v541_v39 }
  0xde   :  { %v606_v42 = vmax.f32 %v463_v38, %v542_v18 }
  0xdf   :  { %v4390_v43 = vpack.c.bf16 %v605_v40, %v603_v19 }
  0xe0   :  { %v4394_v45 = vpack.c.bf16 %v606_v42, %v604_v41  ;;  %v376_v46 = vpop.f32.mrf.mxu0 }
  0xe1   :  { %v465_v47 = vpop.f32.mrf.mxu1  ;;  %v377_v48 = vadd.f32 %v376_v46, %v4372_v7 }
  0xe2   :  { %v466_v49 = vadd.f32 %v465_v47, %v4374_v9 }
  0xe3   :  { %415 = vmatmul.bf16.gmra.mxu0 %v3308_v44  ;;  %v543_v51 = vmul.f32 0.2, %v377_v48 }
  0xe4   :  { %504 = vmatmul.bf16.gmra.mxu1 %v3308_v44  ;;  %v544_v2 = vmul.f32 0.2, %v466_v49 }
  0xe5   :  { %v607_v21 = vmax.f32 %v377_v48, %v543_v51 }
  0xe6   :  { %v608_v6 = vmax.f32 %v466_v49, %v544_v2  ;;  %v3320_v49 = vor.u32 %v4334_v27, %v4332_v26 }
  0xe8   :  { %v378_v50 = vpop.f32.mrf.mxu0 }
  0xe9   :  { %v379_v0 = vadd.f32 %v378_v50, %v4372_v7  ;;  %v467_v1 = vpop.f32.mrf.mxu1 }
  0xea   :  { %v468_v3 = vadd.f32 %v467_v1, %v4374_v9 }
  0xeb   :  { %v545_v4 = vmul.f32 0.2, %v379_v0 }
  0xec   :  { %v546_v20 = vmul.f32 0.2, %v468_v3 }
  0xed   :  { %v609_v5 = vmax.f32 %v379_v0, %v545_v4 }
  0xee   :  { %v610_v8 = vmax.f32 %v468_v3, %v546_v20 }
  0xef   :  { %v4400_v10 = vpack.c.bf16 %v609_v5, %v607_v21 }
  0xf0   :  { %v4404_v12 = vpack.c.bf16 %v610_v8, %v608_v6  ;;  %v381_v13 = vpop.f32.mrf.mxu0 }
  0xf1   :  { %v470_v14 = vpop.f32.mrf.mxu1  ;;  %v382_v15 = vadd.f32 %v381_v13, %v4372_v7 }
  0xf2   :  { %v471_v52 = vadd.f32 %v470_v14, %v4374_v9 }
  0xf3   :  { %420 = vmatmul.bf16.gmra.mxu0 %v3312_v11  ;;  %v547_v17 = vmul.f32 0.2, %v382_v15 }
  0xf4   :  { %509 = vmatmul.bf16.gmra.mxu1 %v3312_v11  ;;  %v548_v55 = vmul.f32 0.2, %v471_v52 }
  0xf5   :  { %v611_v23 = vmax.f32 %v382_v15, %v547_v17 }
  0xf6   :  { %v612_v61 = vmax.f32 %v471_v52, %v548_v55  ;;  %v3324_v52 = vor.u32 %v4338_v29, %v4336_v28 }
  0xf8   :  { %v383_v16 = vpop.f32.mrf.mxu0 }
  0xf9   :  { %v384_v53 = vadd.f32 %v383_v16, %v4372_v7  ;;  %v472_v54 = vpop.f32.mrf.mxu1 }
  0xfa   :  { %v473_v56 = vadd.f32 %v472_v54, %v4374_v9 }
  0xfb   :  { %v549_v57 = vmul.f32 0.2, %v384_v53 }
  0xfc   :  { %v550_v22 = vmul.f32 0.2, %v473_v56 }
  0xfd   :  { %v613_v59 = vmax.f32 %v384_v53, %v549_v57 }
  0xfe   :  { %v614_v62 = vmax.f32 %v473_v56, %v550_v22 }
  0xff   :  { %v4410_v63 = vpack.c.bf16 %v613_v59, %v611_v23 }
 0x100   :  { %v4414_v33 = vpack.c.bf16 %v614_v62, %v612_v61  ;;  %v386_v34 = vpop.f32.mrf.mxu0 }
 0x101   :  { %v475_v35 = vpop.f32.mrf.mxu1  ;;  %v387_v36 = vadd.f32 %v386_v34, %v4372_v7 }
 0x102   :  { %v476_v37 = vadd.f32 %v475_v35, %v4374_v9 }
 0x103   :  { %425 = vmatmul.bf16.gmra.mxu0 %v3316_v32  ;;  %v551_v39 = vmul.f32 0.2, %v387_v36 }
 0x104   :  { %514 = vmatmul.bf16.gmra.mxu1 %v3316_v32  ;;  %v552_v40 = vmul.f32 0.2, %v476_v37 }
 0x105   :  { %v615_v25 = vmax.f32 %v387_v36, %v551_v39 }
 0x106   :  { %v616_v46 = vmax.f32 %v476_v37, %v552_v40  ;;  %v3328_v37 = vor.u32 %v4346_v31, %v4344_v30 }
 0x108   :  { %v388_v38 = vpop.f32.mrf.mxu0 }
 0x109   :  { %v389_v18 = vadd.f32 %v388_v38, %v4372_v7  ;;  %v477_v19 = vpop.f32.mrf.mxu1 }
 0x10a   :  { %v478_v41 = vadd.f32 %v477_v19, %v4374_v9 }
 0x10b   :  { %v553_v42 = vmul.f32 0.2, %v389_v18 }
 0x10c   :  { %v554_v24 = vmul.f32 0.2, %v478_v41 }
 0x10d   :  { %v617_v44 = vmax.f32 %v389_v18, %v553_v42 }
 0x10e   :  { %v618_v47 = vmax.f32 %v478_v41, %v554_v24 }
 0x10f   :  { %v4420_v48 = vpack.c.bf16 %v617_v44, %v615_v25 }
 0x110   :  { %v4424_v50 = vpack.c.bf16 %v618_v47, %v616_v46  ;;  %v391_v51 = vpop.f32.mrf.mxu0 }
 0x111   :  { %v480_v0 = vpop.f32.mrf.mxu1  ;;  %v392_v1 = vadd.f32 %v391_v51, %v4372_v7 }
 0x112   :  { %v481_v2 = vadd.f32 %v480_v0, %v4374_v9 }
 0x113   :  { %430 = vmatmul.bf16.gmra.mxu0 %v3320_v49  ;;  %v555_v4 = vmul.f32 0.2, %v392_v1 }
 0x114   :  { %519 = vmatmul.bf16.gmra.mxu1 %v3320_v49  ;;  %v556_v5 = vmul.f32 0.2, %v481_v2 }
 0x115   :  { %v619_v27 = vmax.f32 %v392_v1, %v555_v4 }
 0x116   :  { %v620_v13 = vmax.f32 %v481_v2, %v556_v5 }
 0x118   :  { %v393_v3 = vpop.f32.mrf.mxu0 }
 0x119   :  { %v394_v20 = vadd.f32 %v393_v3, %v4372_v7  ;;  %v482_v21 = vpop.f32.mrf.mxu1 }
 0x11a   :  { %v483_v6 = vadd.f32 %v482_v21, %v4374_v9 }
 0x11b   :  { %v557_v8 = vmul.f32 0.2, %v394_v20 }
 0x11c   :  { %v558_v26 = vmul.f32 0.2, %v483_v6 }
 0x11d   :  { %v621_v11 = vmax.f32 %v394_v20, %v557_v8 }
 0x11e   :  { %v622_v14 = vmax.f32 %v483_v6, %v558_v26 }
 0x11f   :  { %v4430_v15 = vpack.c.bf16 %v621_v11, %v619_v27 }
 0x120   :  { %v4434_v16 = vpack.c.bf16 %v622_v14, %v620_v13  ;;  %v396_v17 = vpop.f32.mrf.mxu0 }
 0x121   :  { %v485_v53 = vpop.f32.mrf.mxu1  ;;  %v397_v54 = vadd.f32 %v396_v17, %v4372_v7 }
 0x122   :  { %v486_v55 = vadd.f32 %v485_v53, %v4374_v9 }
 0x123   :  { %435 = vmatmul.bf16.gmra.mxu0 %v3324_v52  ;;  %v559_v57 = vmul.f32 0.2, %v397_v54 }
 0x124   :  { %524 = vmatmul.bf16.gmra.mxu1 %v3324_v52  ;;  %v560_v59 = vmul.f32 0.2, %v486_v55 }
 0x125   :  { %v623_v29 = vmax.f32 %v397_v54, %v559_v57 }
 0x126   :  { %v624_v34 = vmax.f32 %v486_v55, %v560_v59 }
 0x128   :  { %v398_v56 = vpop.f32.mrf.mxu0 }
 0x129   :  { %v399_v22 = vadd.f32 %v398_v56, %v4372_v7  ;;  %v487_v23 = vpop.f32.mrf.mxu1 }
 0x12a   :  { %v488_v61 = vadd.f32 %v487_v23, %v4374_v9 }
 0x12b   :  { %v561_v62 = vmul.f32 0.2, %v399_v22 }
 0x12c   :  { %v562_v28 = vmul.f32 0.2, %v488_v61 }
 0x12d   :  { %v625_v32 = vmax.f32 %v399_v22, %v561_v62 }
 0x12e   :  { %v626_v35 = vmax.f32 %v488_v61, %v562_v28 }
 0x12f   :  { %v4440_v36 = vpack.c.bf16 %v625_v32, %v623_v29 }
 0x130   :  { %v4444_v38 = vpack.c.bf16 %v626_v35, %v624_v34  ;;  %v401_v39 = vpop.f32.mrf.mxu0 }
 0x131   :  { %v490_v18 = vpop.f32.mrf.mxu1  ;;  %v402_v19 = vadd.f32 %v401_v39, %v4372_v7 }
 0x132   :  { %v491_v40 = vadd.f32 %v490_v18, %v4374_v9 }
 0x133   :  { %440 = vmatmul.bf16.gmra.mxu0 %v3328_v37  ;;  %v563_v42 = vmul.f32 0.2, %v402_v19 }
 0x134   :  { %529 = vmatmul.bf16.gmra.mxu1 %v3328_v37  ;;  %v564_v44 = vmul.f32 0.2, %v491_v40 }
 0x135   :  { %v627_v31 = vmax.f32 %v402_v19, %v563_v42 }
 0x136   :  { %v628_v51 = vmax.f32 %v491_v40, %v564_v44 }
 0x138   :  { %v403_v41 = vpop.f32.mrf.mxu0 }
 0x139   :  { %v404_v24 = vadd.f32 %v403_v41, %v4372_v7  ;;  %v492_v25 = vpop.f32.mrf.mxu1 }
 0x13a   :  { %v493_v46 = vadd.f32 %v492_v25, %v4374_v9 }
 0x13b   :  { %v565_v47 = vmul.f32 0.2, %v404_v24 }
 0x13c   :  { %v566_v30 = vmul.f32 0.2, %v493_v46 }
 0x13d   :  { %v629_v49 = vmax.f32 %v404_v24, %v565_v47 }
 0x13e   :  { %v630_v0 = vmax.f32 %v493_v46, %v566_v30 }
 0x13f   :  { %v4450_v1 = vpack.c.bf16 %v629_v49, %v627_v31 }
 0x140   :  { %v4452_v2 = vpack.c.bf16 %v630_v0, %v628_v51  ;;  %v406_v3 = vpop.f32.mrf.mxu0 }
 0x141   :  { %v495_v4 = vpop.f32.mrf.mxu1  ;;  %v407_v20 = vadd.f32 %v406_v3, %v4372_v7 }
 0x142   :  { %v496_v21 = vadd.f32 %v495_v4, %v4374_v9 }
 0x143   :  { %v567_v6 = vmul.f32 0.2, %v407_v20 }
 0x144   :  { %v568_v27 = vmul.f32 0.2, %v496_v21 }
 0x145   :  { %v631_v52 = vmax.f32 %v407_v20, %v567_v6 }
 0x146   :  { %v632_v53 = vmax.f32 %v496_v21, %v568_v27 }
 0x148   :  { %v408_v5 = vpop.f32.mrf.mxu0 }
 0x149   :  { %v409_v8 = vadd.f32 %v408_v5, %v4372_v7  ;;  %v497_v26 = vpop.f32.mrf.mxu1 }
 0x14a   :  { %v498_v11 = vadd.f32 %v497_v26, %v4374_v9 }
 0x14b   :  { %v569_v13 = vmul.f32 0.2, %v409_v8 }
 0x14c   :  { %v570_v14 = vmul.f32 0.2, %v498_v11 }
 0x14d   :  { %v633_v17 = vmax.f32 %v409_v8, %v569_v13 }
 0x14e   :  { %v634_v54 = vmax.f32 %v498_v11, %v570_v14 }
 0x14f   :  { %v4458_v55 = vpack.c.bf16 %v633_v17, %v631_v52 }
 0x150   :  { %v4460_v56 = vpack.c.bf16 %v634_v54, %v632_v53  ;;  %v411_v57 = vpop.f32.mrf.mxu0 }
 0x151   :  { %v500_v22 = vpop.f32.mrf.mxu1  ;;  %v412_v23 = vadd.f32 %v411_v57, %v4372_v7 }
 0x152   :  { %v501_v59 = vadd.f32 %v500_v22, %v4374_v9 }
 0x153   :  { %v571_v62 = vmul.f32 0.2, %v412_v23 }
 0x154   :  { %v572_v32 = vmul.f32 0.2, %v501_v59 }
 0x155   :  { %v635_v39 = vmax.f32 %v412_v23, %v571_v62 }
 0x156   :  { %v636_v19 = vmax.f32 %v501_v59, %v572_v32 }
 0x158   :  { %v413_v61 = vpop.f32.mrf.mxu0 }
 0x159   :  { %v414_v28 = vadd.f32 %v413_v61, %v4372_v7  ;;  %v502_v29 = vpop.f32.mrf.mxu1 }
 0x15a   :  { %v503_v34 = vadd.f32 %v502_v29, %v4374_v9 }
 0x15b   :  { %v573_v35 = vmul.f32 0.2, %v414_v28 }
 0x15c   :  { %v574_v37 = vmul.f32 0.2, %v503_v34 }
 0x15d   :  { %v637_v18 = vmax.f32 %v414_v28, %v573_v35 }
 0x15e   :  { %v638_v40 = vmax.f32 %v503_v34, %v574_v37 }
 0x15f   :  { %v4466_v41 = vpack.c.bf16 %v637_v18, %v635_v39 }
 0x160   :  { %v4468_v42 = vpack.c.bf16 %v638_v40, %v636_v19  ;;  %v416_v24 = vpop.f32.mrf.mxu0 }
 0x161   :  { %v505_v25 = vpop.f32.mrf.mxu1  ;;  %v417_v44 = vadd.f32 %v416_v24, %v4372_v7 }
 0x162   :  { %v506_v46 = vadd.f32 %v505_v25, %v4374_v9 }
 0x163   :  { %v575_v30 = vmul.f32 0.2, %v417_v44 }
 0x164   :  { %v576_v51 = vmul.f32 0.2, %v506_v46 }
 0x165   :  { %v639_v20 = vmax.f32 %v417_v44, %v575_v30 }
 0x166   :  { %v640_v5 = vmax.f32 %v506_v46, %v576_v51 }
 0x168   :  { %v418_v47 = vpop.f32.mrf.mxu0 }
 0x169   :  { %v419_v31 = vadd.f32 %v418_v47, %v4372_v7  ;;  %v507_v49 = vpop.f32.mrf.mxu1 }
 0x16a   :  { %v508_v0 = vadd.f32 %v507_v49, %v4374_v9 }
 0x16b   :  { %v577_v3 = vmul.f32 0.2, %v419_v31 }
 0x16c   :  { %v578_v4 = vmul.f32 0.2, %v508_v0 }
 0x16d   :  { %v641_v21 = vmax.f32 %v419_v31, %v577_v3 }
 0x16e   :  { %v642_v6 = vmax.f32 %v508_v0, %v578_v4 }
 0x16f   :  { %v4474_v8 = vpack.c.bf16 %v641_v21, %v639_v20 }
 0x170   :  { %v4476_v26 = vpack.c.bf16 %v642_v6, %v640_v5  ;;  %v421_v27 = vpop.f32.mrf.mxu0 }
 0x171   :  { %v510_v11 = vpop.f32.mrf.mxu1  ;;  %v422_v13 = vadd.f32 %v421_v27, %v4372_v7 }
 0x172   :  { %v511_v14 = vadd.f32 %v510_v11, %v4374_v9 }
 0x173   :  { %v579_v17 = vmul.f32 0.2, %v422_v13 }
 0x174   :  { %v580_v57 = vmul.f32 0.2, %v511_v14 }
 0x175   :  { %v643_v61 = vmax.f32 %v422_v13, %v579_v17 }
 0x176   :  { %v644_v28 = vmax.f32 %v511_v14, %v580_v57 }
 0x178   :  { %v423_v52 = vpop.f32.mrf.mxu0 }
 0x179   :  { %v424_v53 = vadd.f32 %v423_v52, %v4372_v7  ;;  %v512_v54 = vpop.f32.mrf.mxu1 }
 0x17a   :  { %v513_v22 = vadd.f32 %v512_v54, %v4374_v9 }
 0x17b   :  { %v581_v23 = vmul.f32 0.2, %v424_v53 }
 0x17c   :  { %v582_v59 = vmul.f32 0.2, %v513_v22 }
 0x17d   :  { %v645_v62 = vmax.f32 %v424_v53, %v581_v23 }
 0x17e   :  { %v646_v29 = vmax.f32 %v513_v22, %v582_v59 }
 0x17f   :  { %v4482_v32 = vpack.c.bf16 %v645_v62, %v643_v61 }
 0x180   :  { %v4484_v34 = vpack.c.bf16 %v646_v29, %v644_v28  ;;  %v426_v35 = vpop.f32.mrf.mxu0 }
 0x181   :  { %v515_v37 = vpop.f32.mrf.mxu1  ;;  %v427_v39 = vadd.f32 %v426_v35, %v4372_v7 }
 0x182   :  { %v516_v18 = vadd.f32 %v515_v37, %v4374_v9 }
 0x183   :  { %v583_v40 = vmul.f32 0.2, %v427_v39 }
 0x184   :  { %v584_v44 = vmul.f32 0.2, %v516_v18 }
 0x185   :  { %v647_v31 = vmax.f32 %v427_v39, %v583_v40 }
 0x186   :  { %v648_v51 = vmax.f32 %v516_v18, %v584_v44 }
 0x188   :  { %v428_v19 = vpop.f32.mrf.mxu0 }
 0x189   :  { %v429_v24 = vadd.f32 %v428_v19, %v4372_v7  ;;  %v517_v25 = vpop.f32.mrf.mxu1 }
 0x18a   :  { %v518_v46 = vadd.f32 %v517_v25, %v4374_v9 }
 0x18b   :  { %v585_v47 = vmul.f32 0.2, %v429_v24 }
 0x18c   :  { %v586_v30 = vmul.f32 0.2, %v518_v46 }
 0x18d   :  { %v649_v49 = vmax.f32 %v429_v24, %v585_v47 }
 0x18e   :  { %v650_v0 = vmax.f32 %v518_v46, %v586_v30 }
 0x18f   :  { %v4490_v3 = vpack.c.bf16 %v649_v49, %v647_v31 }
 0x190   :  { %v4492_v4 = vpack.c.bf16 %v650_v0, %v648_v51  ;;  %v431_v20 = vpop.f32.mrf.mxu0 }
 0x191   :  { %v520_v21 = vpop.f32.mrf.mxu1  ;;  %v432_v5 = vadd.f32 %v431_v20, %v4372_v7 }
 0x192   :  { %v521_v6 = vadd.f32 %v520_v21, %v4374_v9 }
 0x193   :  { %v587_v11 = vmul.f32 0.2, %v432_v5 }
 0x194   :  { %v588_v52 = vmul.f32 0.2, %v521_v6 }
 0x195   :  { %v651_v57 = vmax.f32 %v432_v5, %v587_v11 }
 0x196   :  { %v652_v23 = vmax.f32 %v521_v6, %v588_v52 }
 0x198   :  { %v433_v27 = vpop.f32.mrf.mxu0 }
 0x199   :  { %v434_v13 = vadd.f32 %v433_v27, %v4372_v7  ;;  %v522_v14 = vpop.f32.mrf.mxu1 }
 0x19a   :  { %v523_v17 = vadd.f32 %v522_v14, %v4374_v9 }
 0x19b   :  { %v589_v53 = vmul.f32 0.2, %v434_v13 }
 0x19c   :  { %v590_v54 = vmul.f32 0.2, %v523_v17 }
 0x19d   :  { %v653_v22 = vmax.f32 %v434_v13, %v589_v53 }
 0x19e   :  { %v654_v59 = vmax.f32 %v523_v17, %v590_v54 }
 0x19f   :  { %v4498_v61 = vpack.c.bf16 %v653_v22, %v651_v57 }
 0x1a0   :  { %v4500_v62 = vpack.c.bf16 %v654_v59, %v652_v23  ;;  %v436_v28 = vpop.f32.mrf.mxu0 }
 0x1a1   :  { %v525_v29 = vpop.f32.mrf.mxu1  ;;  %v437_v35 = vadd.f32 %v436_v28, %v4372_v7 }
 0x1a2   :  { %v526_v37 = vadd.f32 %v525_v29, %v4374_v9 }
 0x1a3   :  { %v591_v18 = vmul.f32 0.2, %v437_v35 }
 0x1a4   :  { %v592_v24 = vmul.f32 0.2, %v526_v37 }
 0x1a5   :  { %v655_v47 = vmax.f32 %v437_v35, %v591_v18 }
 0x1a6   :  { %v656_v31 = vmax.f32 %v526_v37, %v592_v24 }
 0x1a8   :  { %v438_v39 = vpop.f32.mrf.mxu0 }
 0x1a9   :  { %v439_v19 = vadd.f32 %v438_v39, %v4372_v7  ;;  %v527_v40 = vpop.f32.mrf.mxu1 }
 0x1aa   :  { %v528_v25 = vadd.f32 %v527_v40, %v4374_v9 }
 0x1ab   :  { %v593_v44 = vmul.f32 0.2, %v439_v19 }
 0x1ac   :  { %v594_v46 = vmul.f32 0.2, %v528_v25 }
 0x1ad   :  { %v657_v30 = vmax.f32 %v439_v19, %v593_v44 }
 0x1ae   :  { %v658_v49 = vmax.f32 %v528_v25, %v594_v46 }
 0x1af   :  { %v4506_v51 = vpack.c.bf16 %v657_v30, %v655_v47 }
 0x1b0   :  { %v4508_v0 = vpack.c.bf16 %v658_v49, %v656_v31  ;;  %v441_v20 = vpop.f32.mrf.mxu0 }
 0x1b1   :  { %v530_v21 = vpop.f32.mrf.mxu1  ;;  %v442_v5 = vadd.f32 %v441_v20, %v4372_v7 }
 0x1b2   :  { %v531_v6 = vadd.f32 %v530_v21, %v4374_v9 }
 0x1b3   :  { %v595_v11 = vmul.f32 0.2, %v442_v5 }
 0x1b4   :  { %v596_v52 = vmul.f32 0.2, %v531_v6 }
 0x1b5   :  { %v659_v57 = vmax.f32 %v442_v5, %v595_v11 }
 0x1b6   :  { %v660_v23 = vmax.f32 %v531_v6, %v596_v52 }
 0x1b8   :  { %v443_v27 = vpop.f32.mrf.mxu0 }
 0x1b9   :  { %v444_v13 = vadd.f32 %v443_v27, %v4372_v7  ;;  %v532_v14 = vpop.f32.mrf.mxu1 }
 0x1ba   :  { %v533_v17 = vadd.f32 %v532_v14, %v4374_v9 }
 0x1bb   :  { %v597_v53 = vmul.f32 0.2, %v444_v13 }
 0x1bc   :  { %v598_v54 = vmul.f32 0.2, %v533_v17 }
 0x1bd   :  { %v661_v22 = vmax.f32 %v444_v13, %v597_v53 }
 0x1be   :  { %v662_v59 = vmax.f32 %v533_v17, %v598_v54 }
 0x1bf   :  { %v4514_v28 = vpack.c.bf16 %v661_v22, %v659_v57 }
 0x1c0   :  { %v4516_v29 = vpack.c.bf16 %v662_v59, %v660_v23 }
 0x1c1   :  { %4200 = dma.done.wait [#allocation7 + $0x1], 4096 }
 0x1c2   :  { %4201 = vsyncadd [#allocation7 + $0x1], 4294963200  ;;  %v3451_v35 = vld [vmem:[#allocation3 + $0x70] sm:$0xf]  ;;  %v3893_v37 = vld [vmem:[#allocation3 + $0x74] sm:$0xf0] }
 0x1c3   :  { %v3515_v39 = vld [vmem:[#allocation3 + $0xf0] sm:$0xf]  ;;  %v3452_v7 = vor.u32 %v3893_v37, %v3451_v35  ;;  %v3909_v18 = vld [vmem:[#allocation3 + $0xf4] sm:$0xf0]  ;;  %v3892_v19 = vld [vmem:[#allocation3 + $0x74] sm:$0xf] }
 0x1c4   :  { %v3453_v40 = vld [vmem:[#allocation3 + $0x78] sm:$0xf0]  ;;  %v3516_v9 = vor.u32 %v3909_v18, %v3515_v39  ;;  %v3908_v25 = vld [vmem:[#allocation3 + $0xf4] sm:$0xf]  ;;  %v3443_v46 = vld [vmem:[#allocation3 + $0x60] sm:$0xf] }
 0x1c5   :  { %v3456_v24 = vor.u32 %v3892_v19, %v3453_v40  ;;  %v3517_v44 = vld [vmem:[#allocation3 + $0xf8] sm:$0xf0]  ;;  %902 = vmatpush.bf16.msra.mxu2 %v3452_v7  ;;  %v3891_v30 = vld [vmem:[#allocation3 + $0x64] sm:$0xf0]  ;;  %v3507_v31 = vld [vmem:[#allocation3 + $0xe0] sm:$0xf] }
 0x1c6   :  { %v3520_v47 = vor.u32 %v3908_v25, %v3517_v44  ;;  %v3907_v49 = vld [vmem:[#allocation3 + $0xe4] sm:$0xf0]  ;;  %991 = vmatpush.bf16.msra.mxu3 %v3516_v9  ;;  %v3444_v20 = vor.u32 %v3891_v30, %v3443_v46  ;;  %v3890_v5 = vld [vmem:[#allocation3 + $0x64] sm:$0xf]  ;;  %v3445_v6 = vld [vmem:[#allocation3 + $0x68] sm:$0xf0] }
 0x1c7   :  { %1080 = vmatpush.bf16.msrb.mxu0 %v3456_v24  ;;  %v3508_v21 = vor.u32 %v3907_v49, %v3507_v31  ;;  %v3906_v27 = vld [vmem:[#allocation3 + $0xe4] sm:$0xf]  ;;  %v3448_v11 = vor.u32 %v3890_v5, %v3445_v6  ;;  %v3509_v13 = vld [vmem:[#allocation3 + $0xe8] sm:$0xf0]  ;;  %v3435_v14 = vld [vmem:[#allocation3 + $0x50] sm:$0xf] }
 0x1c8   :  { %1169 = vmatpush.bf16.msrb.mxu1 %v3520_v47  ;;  %v3889_v52 = vld [vmem:[#allocation3 + $0x54] sm:$0xf0]  ;;  %v3512_v17 = vor.u32 %v3906_v27, %v3509_v13  ;;  %v3499_v53 = vld [vmem:[#allocation3 + $0xd0] sm:$0xf]  ;;  %v3888_v57 = vld [vmem:[#allocation3 + $0x54] sm:$0xf] }
 0x1c9   :  { %v3905_v54 = vld [vmem:[#allocation3 + $0xd4] sm:$0xf0]  ;;  %903 = vmatpush.bf16.msra.mxu2 %v3444_v20  ;;  %v3436_v22 = vor.u32 %v3889_v52, %v3435_v14  ;;  %v3437_v23 = vld [vmem:[#allocation3 + $0x58] sm:$0xf0]  ;;  %v3904_v59 = vld [vmem:[#allocation3 + $0xd4] sm:$0xf] }
 0x1ca   :  { %v3501_v35 = vld [vmem:[#allocation3 + $0xd8] sm:$0xf0]  ;;  %992 = vmatpush.bf16.msra.mxu3 %v3508_v21  ;;  %v3500_v37 = vor.u32 %v3905_v54, %v3499_v53  ;;  %v3440_v39 = vor.u32 %v3888_v57, %v3437_v23  ;;  %v3427_v7 = vld [vmem:[#allocation3 + $0x40] sm:$0xf]  ;;  %v3887_v18 = vld [vmem:[#allocation3 + $0x44] sm:$0xf0] }
 0x1cb   :  { %1081 = vmatpush.bf16.msrb.mxu0 %v3448_v11  ;;  %v3491_v19 = vld [vmem:[#allocation3 + $0xc0] sm:$0xf]  ;;  %v3504_v40 = vor.u32 %v3904_v59, %v3501_v35  ;;  %v3903_v9 = vld [vmem:[#allocation3 + $0xc4] sm:$0xf0]  ;;  %v3886_v24 = vld [vmem:[#allocation3 + $0x44] sm:$0xf]  ;;  %v3428_v47 = vor.u32 %v3887_v18, %v3427_v7 }
 0x1cc   :  { %1170 = vmatpush.bf16.msrb.mxu1 %v3512_v17  ;;  %v3429_v25 = vld [vmem:[#allocation3 + $0x48] sm:$0xf0]  ;;  %v3902_v44 = vld [vmem:[#allocation3 + $0xc4] sm:$0xf]  ;;  %v3492_v30 = vor.u32 %v3903_v9, %v3491_v19  ;;  %v3419_v49 = vld [vmem:[#allocation3 + $0x30] sm:$0xf] }
 0x1cd   :  { %v3493_v46 = vld [vmem:[#allocation3 + $0xc8] sm:$0xf0]  ;;  %904 = vmatpush.bf16.msra.mxu2 %v3436_v22  ;;  %v3432_v31 = vor.u32 %v3886_v24, %v3429_v25  ;;  %v3885_v20 = vld [vmem:[#allocation3 + $0x34] sm:$0xf0]  ;;  %v3483_v21 = vld [vmem:[#allocation3 + $0xb0] sm:$0xf] }
 0x1ce   :  { %993 = vmatpush.bf16.msra.mxu3 %v3500_v37  ;;  %v3496_v5 = vor.u32 %v3902_v44, %v3493_v46  ;;  %v3901_v6 = vld [vmem:[#allocation3 + $0xb4] sm:$0xf0]  ;;  %v3884_v27 = vld [vmem:[#allocation3 + $0x34] sm:$0xf]  ;;  %v3421_v11 = vld [vmem:[#allocation3 + $0x38] sm:$0xf0]  ;;  %v3420_v52 = vor.u32 %v3885_v20, %v3419_v49 }
 0x1cf   :  { %1082 = vmatpush.bf16.msrb.mxu0 %v3440_v39  ;;  %v3900_v13 = vld [vmem:[#allocation3 + $0xb4] sm:$0xf]  ;;  %v3485_v14 = vld [vmem:[#allocation3 + $0xb8] sm:$0xf0]  ;;  %v3484_v17 = vor.u32 %v3901_v6, %v3483_v21  ;;  %v3424_v53 = vor.u32 %v3884_v27, %v3421_v11  ;;  %v3411_v54 = vld [vmem:[#allocation3 + $0x20] sm:$0xf] }
 0x1d0   :  { %1171 = vmatpush.bf16.msrb.mxu1 %v3504_v40  ;;  %v3883_v57 = vld [vmem:[#allocation3 + $0x24] sm:$0xf0]  ;;  %v3475_v22 = vld [vmem:[#allocation3 + $0xa0] sm:$0xf]  ;;  %v3488_v23 = vor.u32 %v3900_v13, %v3485_v14  ;;  %v3882_v35 = vld [vmem:[#allocation3 + $0x24] sm:$0xf] }
 0x1d1   :  { %905 = vmatpush.bf16.msra.mxu2 %v3428_v47  ;;  %v3899_v59 = vld [vmem:[#allocation3 + $0xa4] sm:$0xf0]  ;;  %v3413_v37 = vld [vmem:[#allocation3 + $0x28] sm:$0xf0]  ;;  %v3898_v39 = vld [vmem:[#allocation3 + $0xa4] sm:$0xf]  ;;  %v3412_v18 = vor.u32 %v3883_v57, %v3411_v54 }
 0x1d2   :  { %994 = vmatpush.bf16.msra.mxu3 %v3492_v30  ;;  %v3477_v7 = vld [vmem:[#allocation3 + $0xa8] sm:$0xf0]  ;;  %v3476_v19 = vor.u32 %v3899_v59, %v3475_v22  ;;  %v3416_v40 = vor.u32 %v3882_v35, %v3413_v37  ;;  %v3403_v9 = vld [vmem:[#allocation3 + $0x10] sm:$0xf]  ;;  %v3881_v24 = vld [vmem:[#allocation3 + $0x14] sm:$0xf0] }
 0x1d3   :  { %1083 = vmatpush.bf16.msrb.mxu0 %v3432_v31  ;;  %v3467_v25 = vld [vmem:[#allocation3 + $0x90] sm:$0xf]  ;;  %v3480_v44 = vor.u32 %v3898_v39, %v3477_v7  ;;  %v3897_v46 = vld [vmem:[#allocation3 + $0x94] sm:$0xf0]  ;;  %v3880_v47 = vld [vmem:[#allocation3 + $0x14] sm:$0xf]  ;;  %v3404_v20 = vor.u32 %v3881_v24, %v3403_v9 }
 0x1d4   :  { %1172 = vmatpush.bf16.msrb.mxu1 %v3496_v5  ;;  %v3405_v30 = vld [vmem:[#allocation3 + $0x18] sm:$0xf0]  ;;  %v3896_v31 = vld [vmem:[#allocation3 + $0x94] sm:$0xf]  ;;  %v3468_v21 = vor.u32 %v3897_v46, %v3467_v25  ;;  %v3395_v6 = vld [vmem:[#allocation3] sm:$0xf] }
 0x1d5   :  { %906 = vmatpush.bf16.msra.mxu2 %v3420_v52  ;;  %v3469_v49 = vld [vmem:[#allocation3 + $0x98] sm:$0xf0]  ;;  %v3408_v5 = vor.u32 %v3880_v47, %v3405_v30  ;;  %v3879_v27 = vld [vmem:[#allocation3 + $0x4] sm:$0xf0]  ;;  %v3459_v11 = vld [vmem:[#allocation3 + $0x80] sm:$0xf] }
 0x1d6   :  { %995 = vmatpush.bf16.msra.mxu3 %v3484_v17  ;;  %v3472_v13 = vor.u32 %v3896_v31, %v3469_v49  ;;  %v3895_v14 = vld [vmem:[#allocation3 + $0x84] sm:$0xf0]  ;;  %v3878_v52 = vld [vmem:[#allocation3 + $0x4] sm:$0xf]  ;;  %v3397_v17 = vld [vmem:[#allocation3 + $0x8] sm:$0xf0]  ;;  %v3396_v57 = vor.u32 %v3879_v27, %v3395_v6 }
 0x1d7   :  { %1084 = vmatpush.bf16.msrb.mxu0 %v3424_v53  ;;  %v3894_v53 = vld [vmem:[#allocation3 + $0x84] sm:$0xf]  ;;  %v3461_v54 = vld [vmem:[#allocation3 + $0x88] sm:$0xf0]  ;;  %v3460_v22 = vor.u32 %v3895_v14, %v3459_v11 }
 0x1d8   :  { %1173 = vmatpush.bf16.msrb.mxu1 %v3488_v23  ;;  %v3400_v23 = vor.u32 %v3878_v52, %v3397_v17  ;;  %v3464_v59 = vor.u32 %v3894_v53, %v3461_v54 }
 0x1d9   :  { %907 = vmatpush.bf16.msra.mxu2 %v3412_v18 }
 0x1da   :  { %996 = vmatpush.bf16.msra.mxu3 %v3476_v19 }
 0x1db   :  { %1085 = vmatpush.bf16.msrb.mxu0 %v3416_v40 }
 0x1dc   :  { %1174 = vmatpush.bf16.msrb.mxu1 %v3480_v44 }
 0x1dd   :  { %908 = vmatpush.bf16.msra.mxu2 %v3404_v20 }
 0x1de   :  { %997 = vmatpush.bf16.msra.mxu3 %v3468_v21 }
 0x1df   :  { %1086 = vmatpush.bf16.msrb.mxu0 %v3408_v5 }
 0x1e0   :  { %1175 = vmatpush.bf16.msrb.mxu1 %v3472_v13 }
 0x1e1   :  { %909 = vmatpush.bf16.msra.mxu2 %v3396_v57 }
 0x1e2   :  { %998 = vmatpush.bf16.msra.mxu3 %v3460_v22 }
 0x1e3   :  { %1087 = vmatpush.bf16.msrb.mxu0 %v3400_v23 }
 0x1e4   :  { %1176 = vmatpush.bf16.msrb.mxu1 %v3464_v59  ;;  %910 = vmatmul.bf16.vlgmr.msra.gmra.mxu2 %v4380_v58 }
 0x1e5   :  { %999 = vmatmul.bf16.vlgmr.msra.gmra.mxu3 %v4384_v60 }
 0x1e6   :  { %1088 = vmatmul.bf16.vlgmr.msrb.gmra.mxu0 %v4380_v58  ;;  %v736_v58 = vld [vmem:[#allocation11 + $0x1] ss:$8 sm:$0x3] }
 0x1e7   :  { %1177 = vmatmul.bf16.vlgmr.msrb.gmra.mxu1 %v4384_v60  ;;  %v4550_v60 = vperm.slane %v736_v58, 1 }
 0x1f4   :  { %915 = vmatmul.bf16.gmra.mxu2 %v4390_v43 }
 0x1f5   :  { %1004 = vmatmul.bf16.gmra.mxu3 %v4394_v45 }
 0x1f6   :  { %1093 = vmatmul.bf16.gmra.mxu0 %v4390_v43 }
 0x1f7   :  { %1182 = vmatmul.bf16.gmra.mxu1 %v4394_v45 }
 0x204   :  { %920 = vmatmul.bf16.gmra.mxu2 %v4400_v10 }
 0x205   :  { %1009 = vmatmul.bf16.gmra.mxu3 %v4404_v12 }
 0x206   :  { %1098 = vmatmul.bf16.gmra.mxu0 %v4400_v10 }
 0x207   :  { %1187 = vmatmul.bf16.gmra.mxu1 %v4404_v12  ;;  %v4554_v12 = vperm.slane %v736_v58, 0 }
 0x214   :  { %925 = vmatmul.bf16.gmra.mxu2 %v4410_v63 }
 0x215   :  { %1014 = vmatmul.bf16.gmra.mxu3 %v4414_v33 }
 0x216   :  { %1103 = vmatmul.bf16.gmra.mxu0 %v4410_v63 }
 0x217   :  { %1192 = vmatmul.bf16.gmra.mxu1 %v4414_v33 }
 0x224   :  { %930 = vmatmul.bf16.gmra.mxu2 %v4420_v48 }
 0x225   :  { %1019 = vmatmul.bf16.gmra.mxu3 %v4424_v50 }
 0x226   :  { %1108 = vmatmul.bf16.gmra.mxu0 %v4420_v48 }
 0x227   :  { %1197 = vmatmul.bf16.gmra.mxu1 %v4424_v50 }
 0x234   :  { %935 = vmatmul.bf16.gmra.mxu2 %v4430_v15 }
 0x235   :  { %1024 = vmatmul.bf16.gmra.mxu3 %v4434_v16 }
 0x236   :  { %1113 = vmatmul.bf16.gmra.mxu0 %v4430_v15 }
 0x237   :  { %1202 = vmatmul.bf16.gmra.mxu1 %v4434_v16 }
 0x244   :  { %940 = vmatmul.bf16.gmra.mxu2 %v4440_v36 }
 0x245   :  { %1029 = vmatmul.bf16.gmra.mxu3 %v4444_v38 }
 0x246   :  { %1118 = vmatmul.bf16.gmra.mxu0 %v4440_v36 }
 0x247   :  { %1207 = vmatmul.bf16.gmra.mxu1 %v4444_v38 }
 0x254   :  { %945 = vmatmul.bf16.gmra.mxu2 %v4450_v1 }
 0x255   :  { %1034 = vmatmul.bf16.gmra.mxu3 %v4452_v2 }
 0x256   :  { %1123 = vmatmul.bf16.gmra.mxu0 %v4450_v1 }
 0x257   :  { %1212 = vmatmul.bf16.gmra.mxu1 %v4452_v2 }
 0x263   :  { %v1089_v43 = vpop.f32.mrf.mxu0 }
 0x264   :  { %v1090_v45 = vadd.f32 %v1089_v43, %v4550_v60  ;;  %v1178_v10 = vpop.f32.mrf.mxu1  ;;  %950 = vmatmul.bf16.gmra.mxu2 %v4458_v55 }
 0x265   :  { %1039 = vmatmul.bf16.gmra.mxu3 %v4460_v56 }
 0x266   :  { %v1179_v63 = vadd.f32 %v1178_v10, %v1090_v45  ;;  %1128 = vmatmul.bf16.gmra.mxu0 %v4458_v55 }
 0x267   :  { %1217 = vmatmul.bf16.gmra.mxu1 %v4460_v56  ;;  %v911_v33 = vpop.f32.mrf.mxu2 }
 0x268   :  { %v912_v48 = vadd.f32 %v911_v33, %v4554_v12  ;;  %v1000_v50 = vpop.f32.mrf.mxu3  ;;  %v1259_v1 = vmul.f32 0.2, %v1179_v63 }
 0x26a   :  { %v1001_v15 = vadd.f32 %v1000_v50, %v912_v48  ;;  %v1323_v18 = vmax.f32 %v1179_v63, %v1259_v1 }
 0x26b   :  { %v1091_v16 = vpop.f32.mrf.mxu0 }
 0x26c   :  { %v1092_v36 = vadd.f32 %v1091_v16, %v4550_v60  ;;  %v1180_v38 = vpop.f32.mrf.mxu1  ;;  %v1258_v19 = vmul.f32 0.2, %v1001_v15 }
 0x26e   :  { %v1181_v2 = vadd.f32 %v1180_v38, %v1092_v36  ;;  %v1322_v47 = vmax.f32 %v1001_v15, %v1258_v19 }
 0x26f   :  { %v913_v37 = vpop.f32.mrf.mxu2 }
 0x270   :  { %v1261_v35 = vmul.f32 0.2, %v1181_v2  ;;  %v914_v39 = vadd.f32 %v913_v37, %v4554_v12  ;;  %v1002_v7 = vpop.f32.mrf.mxu3 }
 0x272   :  { %v1325_v55 = vmax.f32 %v1181_v2, %v1261_v35  ;;  %v1003_v56 = vadd.f32 %v1002_v7, %v914_v39 }
 0x273   :  { %v1094_v40 = vpop.f32.mrf.mxu0 }
 0x274   :  { %v4562_v9 = vpack.c.bf16 %v1325_v55, %v1323_v18  ;;  %v1095_v24 = vadd.f32 %v1094_v40, %v4550_v60  ;;  %v1183_v25 = vpop.f32.mrf.mxu1  ;;  %v1260_v44 = vmul.f32 0.2, %v1003_v56  ;;  %955 = vmatmul.bf16.gmra.mxu2 %v4466_v41 }
 0x275   :  { %1044 = vmatmul.bf16.gmra.mxu3 %v4468_v42 }
 0x276   :  { %v1184_v46 = vadd.f32 %v1183_v25, %v1095_v24  ;;  %1133 = vmatmul.bf16.gmra.mxu0 %v4466_v41  ;;  %v1324_v30 = vmax.f32 %v1003_v56, %v1260_v44 }
 0x277   :  { %1222 = vmatmul.bf16.gmra.mxu1 %v4468_v42  ;;  %v916_v31 = vpop.f32.mrf.mxu2 }
 0x278   :  { %v4569_v49 = vpack.c.bf16 %v1324_v30, %v1322_v47  ;;  %v917_v20 = vadd.f32 %v916_v31, %v4554_v12  ;;  %v1005_v21 = vpop.f32.mrf.mxu3  ;;  %v1263_v13 = vmul.f32 0.2, %v1184_v46 }
 0x27a   :  { %v1006_v5 = vadd.f32 %v1005_v21, %v917_v20  ;;  %v1327_v54 = vmax.f32 %v1184_v46, %v1263_v13 }
 0x27b   :  { %v1096_v6 = vpop.f32.mrf.mxu0 }
 0x27c   :  { %v1097_v27 = vadd.f32 %v1096_v6, %v4550_v60  ;;  %v1185_v11 = vpop.f32.mrf.mxu1  ;;  %v1262_v57 = vmul.f32 0.2, %v1006_v5 }
 0x27e   :  { %v1186_v14 = vadd.f32 %v1185_v11, %v1097_v27  ;;  %v1326_v63 = vmax.f32 %v1006_v5, %v1262_v57 }
 0x27f   :  { %v918_v17 = vpop.f32.mrf.mxu2 }
 0x280   :  { %v1265_v52 = vmul.f32 0.2, %v1186_v14  ;;  %v919_v41 = vadd.f32 %v918_v17, %v4554_v12  ;;  %v1007_v53 = vpop.f32.mrf.mxu3 }
 0x282   :  { %v1329_v42 = vmax.f32 %v1186_v14, %v1265_v52  ;;  %v1008_v22 = vadd.f32 %v1007_v53, %v919_v41 }
 0x283   :  { %v1099_v23 = vpop.f32.mrf.mxu0 }
 0x284   :  { %v4574_v59 = vpack.c.bf16 %v1329_v42, %v1327_v54  ;;  %v1100_v58 = vadd.f32 %v1099_v23, %v4550_v60  ;;  %v1188_v43 = vpop.f32.mrf.mxu1  ;;  %v1264_v45 = vmul.f32 0.2, %v1008_v22  ;;  %960 = vmatmul.bf16.gmra.mxu2 %v4474_v8 }
 0x285   :  { %1049 = vmatmul.bf16.gmra.mxu3 %v4476_v26 }
 0x286   :  { %v1189_v10 = vadd.f32 %v1188_v43, %v1100_v58  ;;  %1138 = vmatmul.bf16.gmra.mxu0 %v4474_v8  ;;  %v1328_v33 = vmax.f32 %v1008_v22, %v1264_v45 }
 0x287   :  { %1227 = vmatmul.bf16.gmra.mxu1 %v4476_v26  ;;  %v921_v48 = vpop.f32.mrf.mxu2 }
 0x288   :  { %v4581_v50 = vpack.c.bf16 %v1328_v33, %v1326_v63  ;;  %v922_v15 = vadd.f32 %v921_v48, %v4554_v12  ;;  %v1010_v16 = vpop.f32.mrf.mxu3  ;;  %v1267_v35 = vmul.f32 0.2, %v1189_v10 }
 0x28a   :  { %v1011_v36 = vadd.f32 %v1010_v16, %v922_v15  ;;  %v1331_v55 = vmax.f32 %v1189_v10, %v1267_v35 }
 0x28b   :  { %v1101_v38 = vpop.f32.mrf.mxu0 }
 0x28c   :  { %v1102_v1 = vadd.f32 %v1101_v38, %v4550_v60  ;;  %v1190_v2 = vpop.f32.mrf.mxu1  ;;  %v1266_v19 = vmul.f32 0.2, %v1011_v36 }
 0x28e   :  { %v1191_v37 = vadd.f32 %v1190_v2, %v1102_v1  ;;  %v1330_v30 = vmax.f32 %v1011_v36, %v1266_v19 }
 0x28f   :  { %v923_v7 = vpop.f32.mrf.mxu2 }
 0x290   :  { %v1269_v39 = vmul.f32 0.2, %v1191_v37  ;;  %v924_v8 = vadd.f32 %v923_v7, %v4554_v12  ;;  %v1012_v18 = vpop.f32.mrf.mxu3 }
 0x292   :  { %v1333_v26 = vmax.f32 %v1191_v37, %v1269_v39  ;;  %v1013_v56 = vadd.f32 %v1012_v18, %v924_v8 }
 0x293   :  { %v1104_v40 = vpop.f32.mrf.mxu0 }
 0x294   :  { %v4586_v24 = vpack.c.bf16 %v1333_v26, %v1331_v55  ;;  %v1105_v25 = vadd.f32 %v1104_v40, %v4550_v60  ;;  %v1193_v44 = vpop.f32.mrf.mxu1  ;;  %v1268_v46 = vmul.f32 0.2, %v1013_v56  ;;  %965 = vmatmul.bf16.gmra.mxu2 %v4482_v32 }
 0x295   :  { %1054 = vmatmul.bf16.gmra.mxu3 %v4484_v34 }
 0x296   :  { %v1194_v47 = vadd.f32 %v1193_v44, %v1105_v25  ;;  %1143 = vmatmul.bf16.gmra.mxu0 %v4482_v32  ;;  %v1332_v31 = vmax.f32 %v1013_v56, %v1268_v46 }
 0x297   :  { %1232 = vmatmul.bf16.gmra.mxu1 %v4484_v34  ;;  %v926_v20 = vpop.f32.mrf.mxu2 }
 0x298   :  { %v4593_v21 = vpack.c.bf16 %v1332_v31, %v1330_v30  ;;  %v927_v5 = vadd.f32 %v926_v20, %v4554_v12  ;;  %v1015_v6 = vpop.f32.mrf.mxu3  ;;  %v1271_v52 = vmul.f32 0.2, %v1194_v47 }
 0x29a   :  { %v1016_v27 = vadd.f32 %v1015_v6, %v927_v5  ;;  %v1335_v42 = vmax.f32 %v1194_v47, %v1271_v52 }
 0x29b   :  { %v1106_v11 = vpop.f32.mrf.mxu0 }
 0x29c   :  { %v1107_v13 = vadd.f32 %v1106_v11, %v4550_v60  ;;  %v1195_v14 = vpop.f32.mrf.mxu1  ;;  %v1270_v57 = vmul.f32 0.2, %v1016_v27 }
 0x29e   :  { %v1196_v17 = vadd.f32 %v1195_v14, %v1107_v13  ;;  %v1334_v33 = vmax.f32 %v1016_v27, %v1270_v57 }
 0x29f   :  { %v928_v53 = vpop.f32.mrf.mxu2 }
 0x2a0   :  { %v1273_v41 = vmul.f32 0.2, %v1196_v17  ;;  %v929_v32 = vadd.f32 %v928_v53, %v4554_v12  ;;  %v1017_v54 = vpop.f32.mrf.mxu3 }
 0x2a2   :  { %v1337_v34 = vmax.f32 %v1196_v17, %v1273_v41  ;;  %v1018_v22 = vadd.f32 %v1017_v54, %v929_v32 }
 0x2a3   :  { %v1109_v23 = vpop.f32.mrf.mxu0 }
 0x2a4   :  { %v4598_v58 = vpack.c.bf16 %v1337_v34, %v1335_v42  ;;  %v1110_v43 = vadd.f32 %v1109_v23, %v4550_v60  ;;  %v1198_v45 = vpop.f32.mrf.mxu1  ;;  %v1272_v10 = vmul.f32 0.2, %v1018_v22  ;;  %970 = vmatmul.bf16.gmra.mxu2 %v4490_v3 }
 0x2a5   :  { %1059 = vmatmul.bf16.gmra.mxu3 %v4492_v4 }
 0x2a6   :  { %v1199_v63 = vadd.f32 %v1198_v45, %v1110_v43  ;;  %1148 = vmatmul.bf16.gmra.mxu0 %v4490_v3  ;;  %v1336_v48 = vmax.f32 %v1018_v22, %v1272_v10 }
 0x2a7   :  { %1237 = vmatmul.bf16.gmra.mxu1 %v4492_v4  ;;  %v931_v15 = vpop.f32.mrf.mxu2 }
 0x2a8   :  { %v4605_v16 = vpack.c.bf16 %v1336_v48, %v1334_v33  ;;  %v932_v36 = vadd.f32 %v931_v15, %v4554_v12  ;;  %v1020_v38 = vpop.f32.mrf.mxu3  ;;  %v1275_v39 = vmul.f32 0.2, %v1199_v63 }
 0x2aa   :  { %v1021_v1 = vadd.f32 %v1020_v38, %v932_v36  ;;  %v1339_v26 = vmax.f32 %v1199_v63, %v1275_v39 }
 0x2ab   :  { %v1111_v2 = vpop.f32.mrf.mxu0 }
 0x2ac   :  { %v1112_v35 = vadd.f32 %v1111_v2, %v4550_v60  ;;  %v1200_v37 = vpop.f32.mrf.mxu1  ;;  %v1274_v19 = vmul.f32 0.2, %v1021_v1 }
 0x2ae   :  { %v1201_v7 = vadd.f32 %v1200_v37, %v1112_v35  ;;  %v1338_v31 = vmax.f32 %v1021_v1, %v1274_v19 }
 0x2af   :  { %v933_v18 = vpop.f32.mrf.mxu2 }
 0x2b0   :  { %v1277_v8 = vmul.f32 0.2, %v1201_v7  ;;  %v934_v3 = vadd.f32 %v933_v18, %v4554_v12  ;;  %v1022_v55 = vpop.f32.mrf.mxu3 }
 0x2b2   :  { %v1341_v4 = vmax.f32 %v1201_v7, %v1277_v8  ;;  %v1023_v56 = vadd.f32 %v1022_v55, %v934_v3 }
 0x2b3   :  { %v1114_v40 = vpop.f32.mrf.mxu0 }
 0x2b4   :  { %v4610_v25 = vpack.c.bf16 %v1341_v4, %v1339_v26  ;;  %v1115_v44 = vadd.f32 %v1114_v40, %v4550_v60  ;;  %v1203_v46 = vpop.f32.mrf.mxu1  ;;  %v1276_v47 = vmul.f32 0.2, %v1023_v56  ;;  %975 = vmatmul.bf16.gmra.mxu2 %v4498_v61 }
 0x2b5   :  { %1064 = vmatmul.bf16.gmra.mxu3 %v4500_v62 }
 0x2b6   :  { %v1204_v30 = vadd.f32 %v1203_v46, %v1115_v44  ;;  %1153 = vmatmul.bf16.gmra.mxu0 %v4498_v61  ;;  %v1340_v20 = vmax.f32 %v1023_v56, %v1276_v47 }
 0x2b7   :  { %1242 = vmatmul.bf16.gmra.mxu1 %v4500_v62  ;;  %v936_v5 = vpop.f32.mrf.mxu2 }
 0x2b8   :  { %v4617_v6 = vpack.c.bf16 %v1340_v20, %v1338_v31  ;;  %v937_v27 = vadd.f32 %v936_v5, %v4554_v12  ;;  %v1025_v11 = vpop.f32.mrf.mxu3  ;;  %v1279_v41 = vmul.f32 0.2, %v1204_v30 }
 0x2ba   :  { %v1026_v13 = vadd.f32 %v1025_v11, %v937_v27  ;;  %v1343_v34 = vmax.f32 %v1204_v30, %v1279_v41 }
 0x2bb   :  { %v1116_v14 = vpop.f32.mrf.mxu0 }
 0x2bc   :  { %v1117_v52 = vadd.f32 %v1116_v14, %v4550_v60  ;;  %v1205_v17 = vpop.f32.mrf.mxu1  ;;  %v1278_v57 = vmul.f32 0.2, %v1026_v13 }
 0x2be   :  { %v1206_v53 = vadd.f32 %v1205_v17, %v1117_v52  ;;  %v1342_v48 = vmax.f32 %v1026_v13, %v1278_v57 }
 0x2bf   :  { %v938_v54 = vpop.f32.mrf.mxu2 }
 0x2c0   :  { %v1281_v32 = vmul.f32 0.2, %v1206_v53  ;;  %v939_v61 = vadd.f32 %v938_v54, %v4554_v12  ;;  %v1027_v42 = vpop.f32.mrf.mxu3 }
 0x2c2   :  { %v1345_v62 = vmax.f32 %v1206_v53, %v1281_v32  ;;  %v1028_v22 = vadd.f32 %v1027_v42, %v939_v61 }
 0x2c3   :  { %v1119_v23 = vpop.f32.mrf.mxu0 }
 0x2c4   :  { %v4622_v43 = vpack.c.bf16 %v1345_v62, %v1343_v34  ;;  %v1120_v45 = vadd.f32 %v1119_v23, %v4550_v60  ;;  %v1208_v10 = vpop.f32.mrf.mxu1  ;;  %v1280_v63 = vmul.f32 0.2, %v1028_v22  ;;  %980 = vmatmul.bf16.gmra.mxu2 %v4506_v51 }
 0x2c5   :  { %1069 = vmatmul.bf16.gmra.mxu3 %v4508_v0 }
 0x2c6   :  { %v1209_v33 = vadd.f32 %v1208_v10, %v1120_v45  ;;  %1158 = vmatmul.bf16.gmra.mxu0 %v4506_v51  ;;  %v1344_v15 = vmax.f32 %v1028_v22, %v1280_v63 }
 0x2c7   :  { %1247 = vmatmul.bf16.gmra.mxu1 %v4508_v0  ;;  %v941_v36 = vpop.f32.mrf.mxu2 }
 0x2c8   :  { %v4629_v38 = vpack.c.bf16 %v1344_v15, %v1342_v48  ;;  %v942_v1 = vadd.f32 %v941_v36, %v4554_v12  ;;  %v1030_v2 = vpop.f32.mrf.mxu3  ;;  %v1283_v8 = vmul.f32 0.2, %v1209_v33 }
 0x2ca   :  { %v1031_v35 = vadd.f32 %v1030_v2, %v942_v1  ;;  %v1347_v4 = vmax.f32 %v1209_v33, %v1283_v8 }
 0x2cb   :  { %v1121_v37 = vpop.f32.mrf.mxu0 }
 0x2cc   :  { %v1122_v39 = vadd.f32 %v1121_v37, %v4550_v60  ;;  %v1210_v7 = vpop.f32.mrf.mxu1  ;;  %v1282_v19 = vmul.f32 0.2, %v1031_v35 }
 0x2ce   :  { %v1211_v18 = vadd.f32 %v1210_v7, %v1122_v39  ;;  %v1346_v20 = vmax.f32 %v1031_v35, %v1282_v19 }
 0x2cf   :  { %v943_v55 = vpop.f32.mrf.mxu2 }
 0x2d0   :  { %v1285_v3 = vmul.f32 0.2, %v1211_v18  ;;  %v944_v51 = vadd.f32 %v943_v55, %v4554_v12  ;;  %v1032_v26 = vpop.f32.mrf.mxu3 }
 0x2d2   :  { %v1349_v0 = vmax.f32 %v1211_v18, %v1285_v3  ;;  %v1033_v56 = vadd.f32 %v1032_v26, %v944_v51 }
 0x2d3   :  { %v1124_v40 = vpop.f32.mrf.mxu0 }
 0x2d4   :  { %v4634_v44 = vpack.c.bf16 %v1349_v0, %v1347_v4  ;;  %v1125_v46 = vadd.f32 %v1124_v40, %v4550_v60  ;;  %v1213_v47 = vpop.f32.mrf.mxu1  ;;  %v1284_v30 = vmul.f32 0.2, %v1033_v56  ;;  %985 = vmatmul.bf16.gmra.mxu2 %v4514_v28 }
 0x2d5   :  { %1074 = vmatmul.bf16.gmra.mxu3 %v4516_v29 }
 0x2d6   :  { %v1214_v31 = vadd.f32 %v1213_v47, %v1125_v46  ;;  %1163 = vmatmul.bf16.gmra.mxu0 %v4514_v28  ;;  %v1348_v5 = vmax.f32 %v1033_v56, %v1284_v30 }
 0x2d7   :  { %1252 = vmatmul.bf16.gmra.mxu1 %v4516_v29  ;;  %v946_v27 = vpop.f32.mrf.mxu2 }
 0x2d8   :  { %v4641_v11 = vpack.c.bf16 %v1348_v5, %v1346_v20  ;;  %v947_v13 = vadd.f32 %v946_v27, %v4554_v12  ;;  %v1035_v14 = vpop.f32.mrf.mxu3  ;;  %v1287_v32 = vmul.f32 0.2, %v1214_v31 }
 0x2da   :  { %v1036_v52 = vadd.f32 %v1035_v14, %v947_v13  ;;  %v1351_v62 = vmax.f32 %v1214_v31, %v1287_v32 }
 0x2db   :  { %v1126_v17 = vpop.f32.mrf.mxu0 }
 0x2dc   :  { %v1127_v41 = vadd.f32 %v1126_v17, %v4550_v60  ;;  %v1215_v53 = vpop.f32.mrf.mxu1  ;;  %v1286_v57 = vmul.f32 0.2, %v1036_v52 }
 0x2de   :  { %v1216_v54 = vadd.f32 %v1215_v53, %v1127_v41  ;;  %v1350_v15 = vmax.f32 %v1036_v52, %v1286_v57 }
 0x2df   :  { %v948_v42 = vpop.f32.mrf.mxu2 }
 0x2e0   :  { %v1289_v61 = vmul.f32 0.2, %v1216_v54  ;;  %v949_v28 = vadd.f32 %v948_v42, %v4554_v12  ;;  %v1037_v34 = vpop.f32.mrf.mxu3 }
 0x2e2   :  { %v1353_v29 = vmax.f32 %v1216_v54, %v1289_v61  ;;  %v1038_v22 = vadd.f32 %v1037_v34, %v949_v28 }
 0x2e3   :  { %v1129_v23 = vpop.f32.mrf.mxu0 }
 0x2e4   :  { %v4646_v45 = vpack.c.bf16 %v1353_v29, %v1351_v62  ;;  %v1130_v10 = vadd.f32 %v1129_v23, %v4550_v60  ;;  %v1218_v63 = vpop.f32.mrf.mxu1  ;;  %v1288_v33 = vmul.f32 0.2, %v1038_v22 }
 0x2e6   :  { %v1219_v48 = vadd.f32 %v1218_v63, %v1130_v10  ;;  %v1352_v36 = vmax.f32 %v1038_v22, %v1288_v33 }
 0x2e7   :  { %v951_v1 = vpop.f32.mrf.mxu2 }
 0x2e8   :  { %v4649_v2 = vpack.c.bf16 %v1352_v36, %v1350_v15  ;;  %v952_v35 = vadd.f32 %v951_v1, %v4554_v12  ;;  %v1040_v37 = vpop.f32.mrf.mxu3  ;;  %v1291_v3 = vmul.f32 0.2, %v1219_v48 }
 0x2ea   :  { %v1041_v39 = vadd.f32 %v1040_v37, %v952_v35  ;;  %v1355_v19 = vmax.f32 %v1219_v48, %v1291_v3 }
 0x2eb   :  { %v1131_v7 = vpop.f32.mrf.mxu0 }
 0x2ec   :  { %v1132_v8 = vadd.f32 %v1131_v7, %v4550_v60  ;;  %v1220_v18 = vpop.f32.mrf.mxu1  ;;  %v1290_v40 = vmul.f32 0.2, %v1041_v39 }
 0x2ee   :  { %v1221_v55 = vadd.f32 %v1220_v18, %v1132_v8  ;;  %v1354_v13 = vmax.f32 %v1041_v39, %v1290_v40 }
 0x2ef   :  { %v953_v26 = vpop.f32.mrf.mxu2 }
 0x2f0   :  { %v1293_v51 = vmul.f32 0.2, %v1221_v55  ;;  %v954_v4 = vadd.f32 %v953_v26, %v4554_v12  ;;  %v1042_v0 = vpop.f32.mrf.mxu3 }
 0x2f2   :  { %v1357_v56 = vmax.f32 %v1221_v55, %v1293_v51  ;;  %v1043_v46 = vadd.f32 %v1042_v0, %v954_v4 }
 0x2f3   :  { %v1134_v47 = vpop.f32.mrf.mxu0 }
 0x2f4   :  { %v4654_v30 = vpack.c.bf16 %v1357_v56, %v1355_v19  ;;  %v1135_v31 = vadd.f32 %v1134_v47, %v4550_v60  ;;  %v1223_v20 = vpop.f32.mrf.mxu1  ;;  %v1292_v5 = vmul.f32 0.2, %v1043_v46 }
 0x2f6   :  { %v1224_v27 = vadd.f32 %v1223_v20, %v1135_v31  ;;  %v1356_v14 = vmax.f32 %v1043_v46, %v1292_v5 }
 0x2f7   :  { %v956_v52 = vpop.f32.mrf.mxu2 }
 0x2f8   :  { %v4657_v17 = vpack.c.bf16 %v1356_v14, %v1354_v13  ;;  %v957_v41 = vadd.f32 %v956_v52, %v4554_v12  ;;  %v1045_v53 = vpop.f32.mrf.mxu3  ;;  %v1295_v28 = vmul.f32 0.2, %v1224_v27 }
 0x2fa   :  { %v1046_v32 = vadd.f32 %v1045_v53, %v957_v41  ;;  %v1359_v23 = vmax.f32 %v1224_v27, %v1295_v28 }
 0x2fb   :  { %v1136_v54 = vpop.f32.mrf.mxu0 }
 0x2fc   :  { %v1137_v61 = vadd.f32 %v1136_v54, %v4550_v60  ;;  %v1225_v42 = vpop.f32.mrf.mxu1  ;;  %v1294_v63 = vmul.f32 0.2, %v1046_v32 }
 0x2fe   :  { %v1226_v34 = vadd.f32 %v1225_v42, %v1137_v61  ;;  %v1358_v39 = vmax.f32 %v1046_v32, %v1294_v63 }
 0x2ff   :  { %v958_v29 = vpop.f32.mrf.mxu2 }
 0x300   :  { %v1297_v62 = vmul.f32 0.2, %v1226_v34  ;;  %v959_v57 = vadd.f32 %v958_v29, %v4554_v12  ;;  %v1047_v22 = vpop.f32.mrf.mxu3 }
 0x302   :  { %v1361_v10 = vmax.f32 %v1226_v34, %v1297_v62  ;;  %v1048_v33 = vadd.f32 %v1047_v22, %v959_v57 }
 0x303   :  { %v1139_v48 = vpop.f32.mrf.mxu0 }
 0x304   :  { %v4662_v15 = vpack.c.bf16 %v1361_v10, %v1359_v23  ;;  %v1140_v36 = vadd.f32 %v1139_v48, %v4550_v60  ;;  %v1228_v1 = vpop.f32.mrf.mxu1  ;;  %v1296_v35 = vmul.f32 0.2, %v1048_v33 }
 0x306   :  { %v1229_v37 = vadd.f32 %v1228_v1, %v1140_v36  ;;  %v1360_v7 = vmax.f32 %v1048_v33, %v1296_v35 }
 0x307   :  { %v961_v8 = vpop.f32.mrf.mxu2 }
 0x308   :  { %v4665_v18 = vpack.c.bf16 %v1360_v7, %v1358_v39  ;;  %v962_v3 = vadd.f32 %v961_v8, %v4554_v12  ;;  %v1050_v55 = vpop.f32.mrf.mxu3  ;;  %v1299_v19 = vmul.f32 0.2, %v1229_v37 }
 0x30a   :  { %v1051_v51 = vadd.f32 %v1050_v55, %v962_v3  ;;  %v1363_v20 = vmax.f32 %v1229_v37, %v1299_v19 }
 0x30b   :  { %v1141_v26 = vpop.f32.mrf.mxu0 }
 0x30c   :  { %v1142_v4 = vadd.f32 %v1141_v26, %v4550_v60  ;;  %v1230_v0 = vpop.f32.mrf.mxu1  ;;  %v1298_v27 = vmul.f32 0.2, %v1051_v51 }
 0x30e   :  { %v1231_v56 = vadd.f32 %v1230_v0, %v1142_v4  ;;  %v1362_v61 = vmax.f32 %v1051_v51, %v1298_v27 }
 0x30f   :  { %v963_v46 = vpop.f32.mrf.mxu2 }
 0x310   :  { %v1301_v40 = vmul.f32 0.2, %v1231_v56  ;;  %v964_v47 = vadd.f32 %v963_v46, %v4554_v12  ;;  %v1052_v31 = vpop.f32.mrf.mxu3 }
 0x312   :  { %v1365_v5 = vmax.f32 %v1231_v56, %v1301_v40  ;;  %v1053_v13 = vadd.f32 %v1052_v31, %v964_v47 }
 0x313   :  { %v1144_v14 = vpop.f32.mrf.mxu0 }
 0x314   :  { %v4670_v52 = vpack.c.bf16 %v1365_v5, %v1363_v20  ;;  %v1145_v41 = vadd.f32 %v1144_v14, %v4550_v60  ;;  %v1233_v53 = vpop.f32.mrf.mxu1  ;;  %v1300_v32 = vmul.f32 0.2, %v1053_v13 }
 0x316   :  { %v1234_v54 = vadd.f32 %v1233_v53, %v1145_v41  ;;  %v1364_v42 = vmax.f32 %v1053_v13, %v1300_v32 }
 0x317   :  { %v966_v28 = vpop.f32.mrf.mxu2 }
 0x318   :  { %v4673_v34 = vpack.c.bf16 %v1364_v42, %v1362_v61  ;;  %v967_v62 = vadd.f32 %v966_v28, %v4554_v12  ;;  %v1055_v29 = vpop.f32.mrf.mxu3  ;;  %v1303_v63 = vmul.f32 0.2, %v1234_v54 }
 0x31a   :  { %v1056_v57 = vadd.f32 %v1055_v29, %v967_v62  ;;  %v1367_v37 = vmax.f32 %v1234_v54, %v1303_v63 }
 0x31b   :  { %v1146_v22 = vpop.f32.mrf.mxu0 }
 0x31c   :  { %v1147_v23 = vadd.f32 %v1146_v22, %v4550_v60  ;;  %v1235_v10 = vpop.f32.mrf.mxu1  ;;  %v1302_v7 = vmul.f32 0.2, %v1056_v57 }
 0x31e   :  { %v1236_v33 = vadd.f32 %v1235_v10, %v1147_v23  ;;  %v1366_v0 = vmax.f32 %v1056_v57, %v1302_v7 }
 0x31f   :  { %v968_v36 = vpop.f32.mrf.mxu2 }
 0x320   :  { %v1305_v48 = vmul.f32 0.2, %v1236_v33  ;;  %v969_v1 = vadd.f32 %v968_v36, %v4554_v12  ;;  %v1057_v35 = vpop.f32.mrf.mxu3 }
 0x322   :  { %v1369_v39 = vmax.f32 %v1236_v33, %v1305_v48  ;;  %v1058_v8 = vadd.f32 %v1057_v35, %v969_v1 }
 0x323   :  { %v1149_v3 = vpop.f32.mrf.mxu0 }
 0x324   :  { %v4678_v55 = vpack.c.bf16 %v1369_v39, %v1367_v37  ;;  %v1238_v51 = vpop.f32.mrf.mxu1  ;;  %v1304_v26 = vmul.f32 0.2, %v1058_v8  ;;  %v1150_v4 = vadd.f32 %v1149_v3, %v4550_v60 }
 0x326   :  { %v1368_v19 = vmax.f32 %v1058_v8, %v1304_v26  ;;  %v1239_v47 = vadd.f32 %v1238_v51, %v1150_v4 }
 0x327   :  { %v971_v56 = vpop.f32.mrf.mxu2 }
 0x328   :  { %v4681_v40 = vpack.c.bf16 %v1368_v19, %v1366_v0  ;;  %v1060_v46 = vpop.f32.mrf.mxu3  ;;  %v972_v31 = vadd.f32 %v971_v56, %v4554_v12  ;;  %v1307_v13 = vmul.f32 0.2, %v1239_v47 }
 0x32a   :  { %v1061_v41 = vadd.f32 %v1060_v46, %v972_v31  ;;  %v1371_v42 = vmax.f32 %v1239_v47, %v1307_v13 }
 0x32b   :  { %v1151_v20 = vpop.f32.mrf.mxu0 }
 0x32c   :  { %v1152_v5 = vadd.f32 %v1151_v20, %v4550_v60  ;;  %v1240_v27 = vpop.f32.mrf.mxu1  ;;  %v1306_v62 = vmul.f32 0.2, %v1061_v41 }
 0x32e   :  { %v1241_v14 = vadd.f32 %v1240_v27, %v1152_v5  ;;  %v1370_v33 = vmax.f32 %v1061_v41, %v1306_v62 }
 0x32f   :  { %v973_v32 = vpop.f32.mrf.mxu2 }
 0x330   :  { %v1309_v53 = vmul.f32 0.2, %v1241_v14  ;;  %v974_v54 = vadd.f32 %v973_v32, %v4554_v12  ;;  %v1062_v61 = vpop.f32.mrf.mxu3 }
 0x332   :  { %v1373_v28 = vmax.f32 %v1241_v14, %v1309_v53  ;;  %v1063_v29 = vadd.f32 %v1062_v61, %v974_v54 }
 0x333   :  { %v1154_v57 = vpop.f32.mrf.mxu0 }
 0x334   :  { %v4686_v22 = vpack.c.bf16 %v1373_v28, %v1371_v42  ;;  %v1243_v23 = vpop.f32.mrf.mxu1  ;;  %v1308_v10 = vmul.f32 0.2, %v1063_v29  ;;  %v1155_v63 = vadd.f32 %v1154_v57, %v4550_v60 }
 0x336   :  { %v1372_v48 = vmax.f32 %v1063_v29, %v1308_v10  ;;  %v1244_v37 = vadd.f32 %v1243_v23, %v1155_v63 }
 0x337   :  { %v976_v36 = vpop.f32.mrf.mxu2 }
 0x338   :  { %v4689_v1 = vpack.c.bf16 %v1372_v48, %v1370_v33  ;;  %v1065_v35 = vpop.f32.mrf.mxu3  ;;  %v977_v39 = vadd.f32 %v976_v36, %v4554_v12  ;;  %v1311_v51 = vmul.f32 0.2, %v1244_v37 }
 0x33a   :  { %v1066_v4 = vadd.f32 %v1065_v35, %v977_v39  ;;  %v1375_v47 = vmax.f32 %v1244_v37, %v1311_v51 }
 0x33b   :  { %v1156_v7 = vpop.f32.mrf.mxu0 }
 0x33c   :  { %v1157_v8 = vadd.f32 %v1156_v7, %v4550_v60  ;;  %v1245_v3 = vpop.f32.mrf.mxu1  ;;  %v1310_v20 = vmul.f32 0.2, %v1066_v4 }
 0x33e   :  { %v1246_v26 = vadd.f32 %v1245_v3, %v1157_v8  ;;  %v1374_v32 = vmax.f32 %v1066_v4, %v1310_v20 }
 0x33f   :  { %v978_v19 = vpop.f32.mrf.mxu2 }
 0x340   :  { %v1313_v0 = vmul.f32 0.2, %v1246_v26  ;;  %v979_v56 = vadd.f32 %v978_v19, %v4554_v12  ;;  %v1067_v46 = vpop.f32.mrf.mxu3 }
 0x342   :  { %v1377_v31 = vmax.f32 %v1246_v26, %v1313_v0  ;;  %v1068_v5 = vadd.f32 %v1067_v46, %v979_v56 }
 0x343   :  { %v1159_v27 = vpop.f32.mrf.mxu0 }
 0x344   :  { %v4694_v13 = vpack.c.bf16 %v1377_v31, %v1375_v47  ;;  %v1248_v14 = vpop.f32.mrf.mxu1  ;;  %v1312_v41 = vmul.f32 0.2, %v1068_v5  ;;  %v1160_v53 = vadd.f32 %v1159_v27, %v4550_v60 }
 0x346   :  { %v1376_v54 = vmax.f32 %v1068_v5, %v1312_v41  ;;  %v1249_v62 = vadd.f32 %v1248_v14, %v1160_v53 }
 0x347   :  { %v981_v61 = vpop.f32.mrf.mxu2 }
 0x348   :  { %v4697_v42 = vpack.c.bf16 %v1376_v54, %v1374_v32  ;;  %v1070_v28 = vpop.f32.mrf.mxu3  ;;  %v982_v29 = vadd.f32 %v981_v61, %v4554_v12  ;;  %v1315_v63 = vmul.f32 0.2, %v1249_v62 }
 0x34a   :  { %v1071_v48 = vadd.f32 %v1070_v28, %v982_v29  ;;  %v1379_v7 = vmax.f32 %v1249_v62, %v1315_v63 }
 0x34b   :  { %v1161_v57 = vpop.f32.mrf.mxu0 }
 0x34c   :  { %v1162_v23 = vadd.f32 %v1161_v57, %v4550_v60  ;;  %v1250_v10 = vpop.f32.mrf.mxu1  ;;  %v1314_v3 = vmul.f32 0.2, %v1071_v48 }
 0x34e   :  { %v1251_v33 = vadd.f32 %v1250_v10, %v1162_v23  ;;  %v1378_v46 = vmax.f32 %v1071_v48, %v1314_v3 }
 0x34f   :  { %v983_v35 = vpop.f32.mrf.mxu2 }
 0x350   :  { %v1317_v36 = vmul.f32 0.2, %v1251_v33  ;;  %v984_v37 = vadd.f32 %v983_v35, %v4554_v12  ;;  %v1072_v39 = vpop.f32.mrf.mxu3 }
 0x352   :  { %v1381_v8 = vmax.f32 %v1251_v33, %v1317_v36  ;;  %v1073_v51 = vadd.f32 %v1072_v39, %v984_v37 }
 0x353   :  { %v1164_v26 = vpop.f32.mrf.mxu0 }
 0x354   :  { %v4702_v4 = vpack.c.bf16 %v1381_v8, %v1379_v7  ;;  %v1253_v0 = vpop.f32.mrf.mxu1  ;;  %v1316_v19 = vmul.f32 0.2, %v1073_v51  ;;  %v1165_v56 = vadd.f32 %v1164_v26, %v4550_v60 }
 0x356   :  { %v1380_v47 = vmax.f32 %v1073_v51, %v1316_v19  ;;  %v1254_v27 = vadd.f32 %v1253_v0, %v1165_v56 }
 0x357   :  { %v986_v31 = vpop.f32.mrf.mxu2 }
 0x358   :  { %v4705_v20 = vpack.c.bf16 %v1380_v47, %v1378_v46  ;;  %v1075_v5 = vpop.f32.mrf.mxu3  ;;  %v987_v14 = vadd.f32 %v986_v31, %v4554_v12  ;;  %v1319_v54 = vmul.f32 0.2, %v1254_v27 }
 0x35a   :  { %v1076_v28 = vadd.f32 %v1075_v5, %v987_v14  ;;  %v1383_v23 = vmax.f32 %v1254_v27, %v1319_v54 }
 0x35b   :  { %v1166_v41 = vpop.f32.mrf.mxu0 }
 0x35c   :  { %v1167_v53 = vadd.f32 %v1166_v41, %v4550_v60  ;;  %v1255_v32 = vpop.f32.mrf.mxu1  ;;  %v1318_v33 = vmul.f32 0.2, %v1076_v28 }
 0x35e   :  { %v1256_v61 = vadd.f32 %v1255_v32, %v1167_v53  ;;  %v1382_v37 = vmax.f32 %v1076_v28, %v1318_v33 }
 0x35f   :  { %v988_v29 = vpop.f32.mrf.mxu2 }
 0x360   :  { %v1321_v62 = vmul.f32 0.2, %v1256_v61  ;;  %v989_v57 = vadd.f32 %v988_v29, %v4554_v12  ;;  %v1077_v63 = vpop.f32.mrf.mxu3 }
 0x362   :  { %v1385_v10 = vmax.f32 %v1256_v61, %v1321_v62  ;;  %v1078_v48 = vadd.f32 %v1077_v63, %v989_v57 }
 0x364   :  { %v4710_v36 = vpack.c.bf16 %v1385_v10, %v1383_v23  ;;  %v1320_v35 = vmul.f32 0.2, %v1078_v48 }
 0x366   :  { %v1384_v39 = vmax.f32 %v1078_v48, %v1320_v35 }
 0x368   :  { %v4712_v7 = vpack.c.bf16 %v1384_v39, %v1382_v37 }
 0x369   :  { %4202 = dma.done.wait [#allocation7 + $0x2], 4096 }
 0x36a   :  { %4203 = vsyncadd [#allocation7 + $0x2], 4294963200  ;;  %v3579_v60 = vld [vmem:[#allocation4 + $0x70] sm:$0xf]  ;;  %v3925_v8 = vld [vmem:[#allocation4 + $0x74] sm:$0xf0] }
 0x36b   :  { %v3643_v3 = vld [vmem:[#allocation4 + $0xf0] sm:$0xf]  ;;  %v3580_v51 = vor.u32 %v3925_v8, %v3579_v60  ;;  %v3941_v26 = vld [vmem:[#allocation4 + $0xf4] sm:$0xf0]  ;;  %v3924_v12 = vld [vmem:[#allocation4 + $0x74] sm:$0xf] }
 0x36c   :  { %v3581_v0 = vld [vmem:[#allocation4 + $0x78] sm:$0xf0]  ;;  %v3644_v19 = vor.u32 %v3941_v26, %v3643_v3  ;;  %v3940_v46 = vld [vmem:[#allocation4 + $0xf4] sm:$0xf]  ;;  %v3571_v31 = vld [vmem:[#allocation4 + $0x60] sm:$0xf] }
 0x36d   :  { %v3584_v56 = vor.u32 %v3924_v12, %v3581_v0  ;;  %v3645_v47 = vld [vmem:[#allocation4 + $0xf8] sm:$0xf0]  ;;  %1625 = vmatpush.bf16.msrb.mxu2 %v3580_v51  ;;  %v3923_v27 = vld [vmem:[#allocation4 + $0x64] sm:$0xf0]  ;;  %v3635_v14 = vld [vmem:[#allocation4 + $0xe0] sm:$0xf] }
 0x36e   :  { %v3648_v5 = vor.u32 %v3940_v46, %v3645_v47  ;;  %v3939_v41 = vld [vmem:[#allocation4 + $0xe4] sm:$0xf0]  ;;  %1714 = vmatpush.bf16.msrb.mxu3 %v3644_v19  ;;  %v3572_v53 = vor.u32 %v3923_v27, %v3571_v31  ;;  %v3922_v54 = vld [vmem:[#allocation4 + $0x64] sm:$0xf]  ;;  %v3573_v61 = vld [vmem:[#allocation4 + $0x68] sm:$0xf0] }
 0x36f   :  { %1803 = vmatpush.bf16.msra.mxu0 %v3584_v56  ;;  %v3636_v32 = vor.u32 %v3939_v41, %v3635_v14  ;;  %v3938_v28 = vld [vmem:[#allocation4 + $0xe4] sm:$0xf]  ;;  %v3576_v62 = vor.u32 %v3922_v54, %v3573_v61  ;;  %v3637_v29 = vld [vmem:[#allocation4 + $0xe8] sm:$0xf0]  ;;  %v3563_v57 = vld [vmem:[#allocation4 + $0x50] sm:$0xf] }
 0x370   :  { %1892 = vmatpush.bf16.msra.mxu1 %v3648_v5  ;;  %v3921_v23 = vld [vmem:[#allocation4 + $0x54] sm:$0xf0]  ;;  %v3640_v10 = vor.u32 %v3938_v28, %v3637_v29  ;;  %v3627_v63 = vld [vmem:[#allocation4 + $0xd0] sm:$0xf]  ;;  %v3920_v48 = vld [vmem:[#allocation4 + $0x54] sm:$0xf] }
 0x371   :  { %v3937_v33 = vld [vmem:[#allocation4 + $0xd4] sm:$0xf0]  ;;  %1626 = vmatpush.bf16.msrb.mxu2 %v3572_v53  ;;  %v3564_v35 = vor.u32 %v3921_v23, %v3563_v57  ;;  %v3565_v37 = vld [vmem:[#allocation4 + $0x58] sm:$0xf0]  ;;  %v3936_v39 = vld [vmem:[#allocation4 + $0xd4] sm:$0xf] }
 0x372   :  { %v3629_v60 = vld [vmem:[#allocation4 + $0xd8] sm:$0xf0]  ;;  %1715 = vmatpush.bf16.msrb.mxu3 %v3636_v32  ;;  %v3628_v8 = vor.u32 %v3937_v33, %v3627_v63  ;;  %v3568_v3 = vor.u32 %v3920_v48, %v3565_v37  ;;  %v3555_v51 = vld [vmem:[#allocation4 + $0x40] sm:$0xf]  ;;  %v3919_v26 = vld [vmem:[#allocation4 + $0x44] sm:$0xf0] }
 0x373   :  { %1804 = vmatpush.bf16.msra.mxu0 %v3576_v62  ;;  %v3619_v12 = vld [vmem:[#allocation4 + $0xc0] sm:$0xf]  ;;  %v3632_v0 = vor.u32 %v3936_v39, %v3629_v60  ;;  %v3935_v19 = vld [vmem:[#allocation4 + $0xc4] sm:$0xf0]  ;;  %v3918_v56 = vld [vmem:[#allocation4 + $0x44] sm:$0xf]  ;;  %v3556_v5 = vor.u32 %v3919_v26, %v3555_v51 }
 0x374   :  { %1893 = vmatpush.bf16.msra.mxu1 %v3640_v10  ;;  %v3557_v46 = vld [vmem:[#allocation4 + $0x48] sm:$0xf0]  ;;  %v3934_v47 = vld [vmem:[#allocation4 + $0xc4] sm:$0xf]  ;;  %v3620_v27 = vor.u32 %v3935_v19, %v3619_v12  ;;  %v3547_v41 = vld [vmem:[#allocation4 + $0x30] sm:$0xf] }
 0x375   :  { %v3621_v31 = vld [vmem:[#allocation4 + $0xc8] sm:$0xf0]  ;;  %1627 = vmatpush.bf16.msrb.mxu2 %v3564_v35  ;;  %v3560_v14 = vor.u32 %v3918_v56, %v3557_v46  ;;  %v3917_v53 = vld [vmem:[#allocation4 + $0x34] sm:$0xf0]  ;;  %v3611_v32 = vld [vmem:[#allocation4 + $0xb0] sm:$0xf] }
 0x376   :  { %1716 = vmatpush.bf16.msrb.mxu3 %v3628_v8  ;;  %v3624_v54 = vor.u32 %v3934_v47, %v3621_v31  ;;  %v3933_v61 = vld [vmem:[#allocation4 + $0xb4] sm:$0xf0]  ;;  %v3916_v28 = vld [vmem:[#allocation4 + $0x34] sm:$0xf]  ;;  %v3549_v62 = vld [vmem:[#allocation4 + $0x38] sm:$0xf0]  ;;  %v3548_v23 = vor.u32 %v3917_v53, %v3547_v41 }
 0x377   :  { %1805 = vmatpush.bf16.msra.mxu0 %v3568_v3  ;;  %v3932_v29 = vld [vmem:[#allocation4 + $0xb4] sm:$0xf]  ;;  %v3613_v57 = vld [vmem:[#allocation4 + $0xb8] sm:$0xf0]  ;;  %v3612_v10 = vor.u32 %v3933_v61, %v3611_v32  ;;  %v3552_v63 = vor.u32 %v3916_v28, %v3549_v62  ;;  %v3539_v33 = vld [vmem:[#allocation4 + $0x20] sm:$0xf] }
 0x378   :  { %1894 = vmatpush.bf16.msra.mxu1 %v3632_v0  ;;  %v3915_v48 = vld [vmem:[#allocation4 + $0x24] sm:$0xf0]  ;;  %v3603_v35 = vld [vmem:[#allocation4 + $0xa0] sm:$0xf]  ;;  %v3616_v37 = vor.u32 %v3932_v29, %v3613_v57  ;;  %v3914_v60 = vld [vmem:[#allocation4 + $0x24] sm:$0xf] }
 0x379   :  { %1628 = vmatpush.bf16.msrb.mxu2 %v3556_v5  ;;  %v3931_v39 = vld [vmem:[#allocation4 + $0xa4] sm:$0xf0]  ;;  %v3541_v8 = vld [vmem:[#allocation4 + $0x28] sm:$0xf0]  ;;  %v3930_v3 = vld [vmem:[#allocation4 + $0xa4] sm:$0xf]  ;;  %v3540_v26 = vor.u32 %v3915_v48, %v3539_v33 }
 0x37a   :  { %1717 = vmatpush.bf16.msrb.mxu3 %v3620_v27  ;;  %v3605_v51 = vld [vmem:[#allocation4 + $0xa8] sm:$0xf0]  ;;  %v3604_v12 = vor.u32 %v3931_v39, %v3603_v35  ;;  %v3544_v0 = vor.u32 %v3914_v60, %v3541_v8  ;;  %v3531_v19 = vld [vmem:[#allocation4 + $0x10] sm:$0xf]  ;;  %v3913_v56 = vld [vmem:[#allocation4 + $0x14] sm:$0xf0] }
 0x37b   :  { %1806 = vmatpush.bf16.msra.mxu0 %v3560_v14  ;;  %v3595_v46 = vld [vmem:[#allocation4 + $0x90] sm:$0xf]  ;;  %v3608_v47 = vor.u32 %v3930_v3, %v3605_v51  ;;  %v3929_v31 = vld [vmem:[#allocation4 + $0x94] sm:$0xf0]  ;;  %v3912_v5 = vld [vmem:[#allocation4 + $0x14] sm:$0xf]  ;;  %v3532_v53 = vor.u32 %v3913_v56, %v3531_v19 }
 0x37c   :  { %1895 = vmatpush.bf16.msra.mxu1 %v3624_v54  ;;  %v3533_v27 = vld [vmem:[#allocation4 + $0x18] sm:$0xf0]  ;;  %v3928_v14 = vld [vmem:[#allocation4 + $0x94] sm:$0xf]  ;;  %v3596_v32 = vor.u32 %v3929_v31, %v3595_v46  ;;  %v3523_v61 = vld [vmem:[#allocation4] sm:$0xf] }
 0x37d   :  { %1629 = vmatpush.bf16.msrb.mxu2 %v3548_v23  ;;  %v3597_v41 = vld [vmem:[#allocation4 + $0x98] sm:$0xf0]  ;;  %v3536_v54 = vor.u32 %v3912_v5, %v3533_v27  ;;  %v3911_v28 = vld [vmem:[#allocation4 + $0x4] sm:$0xf0]  ;;  %v3587_v62 = vld [vmem:[#allocation4 + $0x80] sm:$0xf] }
 0x37e   :  { %1718 = vmatpush.bf16.msrb.mxu3 %v3612_v10  ;;  %v3600_v29 = vor.u32 %v3928_v14, %v3597_v41  ;;  %v3927_v57 = vld [vmem:[#allocation4 + $0x84] sm:$0xf0]  ;;  %v3910_v23 = vld [vmem:[#allocation4 + $0x4] sm:$0xf]  ;;  %v3525_v10 = vld [vmem:[#allocation4 + $0x8] sm:$0xf0]  ;;  %v3524_v48 = vor.u32 %v3911_v28, %v3523_v61 }
 0x37f   :  { %1807 = vmatpush.bf16.msra.mxu0 %v3552_v63  ;;  %v3926_v63 = vld [vmem:[#allocation4 + $0x84] sm:$0xf]  ;;  %v3589_v33 = vld [vmem:[#allocation4 + $0x88] sm:$0xf0]  ;;  %v3588_v35 = vor.u32 %v3927_v57, %v3587_v62 }
 0x380   :  { %1896 = vmatpush.bf16.msra.mxu1 %v3616_v37  ;;  %v3528_v37 = vor.u32 %v3910_v23, %v3525_v10  ;;  %v3592_v39 = vor.u32 %v3926_v63, %v3589_v33 }
 0x381   :  { %1630 = vmatpush.bf16.msrb.mxu2 %v3540_v26 }
 0x382   :  { %1719 = vmatpush.bf16.msrb.mxu3 %v3604_v12 }
 0x383   :  { %1808 = vmatpush.bf16.msra.mxu0 %v3544_v0 }
 0x384   :  { %1897 = vmatpush.bf16.msra.mxu1 %v3608_v47 }
 0x385   :  { %1631 = vmatpush.bf16.msrb.mxu2 %v3532_v53 }
 0x386   :  { %1720 = vmatpush.bf16.msrb.mxu3 %v3596_v32 }
 0x387   :  { %1809 = vmatpush.bf16.msra.mxu0 %v3536_v54 }
 0x388   :  { %1898 = vmatpush.bf16.msra.mxu1 %v3600_v29 }
 0x389   :  { %1632 = vmatpush.bf16.msrb.mxu2 %v3524_v48 }
 0x38a   :  { %1721 = vmatpush.bf16.msrb.mxu3 %v3588_v35 }
 0x38b   :  { %1810 = vmatpush.bf16.msra.mxu0 %v3528_v37 }
 0x38c   :  { %1899 = vmatpush.bf16.msra.mxu1 %v3592_v39  ;;  %1633 = vmatmul.bf16.vlgmr.msrb.gmra.mxu2 %v4569_v49 }
 0x38d   :  { %1722 = vmatmul.bf16.vlgmr.msrb.gmra.mxu3 %v4562_v9 }
 0x38e   :  { %1811 = vmatmul.bf16.vlgmr.msra.gmra.mxu0 %v4569_v49 }
 0x38f   :  { %1900 = vmatmul.bf16.vlgmr.msra.gmra.mxu1 %v4562_v9  ;;  %v1459_v9 = vld [vmem:[#allocation11 + $0x2] ss:$8 sm:$0x3] }
 0x390   :  { %v4746_v49 = vperm.slane %v1459_v9, 1 }
 0x39c   :  { %1638 = vmatmul.bf16.gmra.mxu2 %v4581_v50 }
 0x39d   :  { %1727 = vmatmul.bf16.gmra.mxu3 %v4574_v59 }
 0x39e   :  { %1816 = vmatmul.bf16.gmra.mxu0 %v4581_v50 }
 0x39f   :  { %1905 = vmatmul.bf16.gmra.mxu1 %v4574_v59 }
 0x3ac   :  { %1643 = vmatmul.bf16.gmra.mxu2 %v4593_v21 }
 0x3ad   :  { %1732 = vmatmul.bf16.gmra.mxu3 %v4586_v24 }
 0x3ae   :  { %1821 = vmatmul.bf16.gmra.mxu0 %v4593_v21  ;;  %v4750_v21 = vperm.slane %v1459_v9, 0 }
 0x3af   :  { %1910 = vmatmul.bf16.gmra.mxu1 %v4586_v24 }
 0x3bc   :  { %1648 = vmatmul.bf16.gmra.mxu2 %v4605_v16 }
 0x3bd   :  { %1737 = vmatmul.bf16.gmra.mxu3 %v4598_v58 }
 0x3be   :  { %1826 = vmatmul.bf16.gmra.mxu0 %v4605_v16 }
 0x3bf   :  { %1915 = vmatmul.bf16.gmra.mxu1 %v4598_v58 }
 0x3cc   :  { %1653 = vmatmul.bf16.gmra.mxu2 %v4617_v6 }
 0x3cd   :  { %1742 = vmatmul.bf16.gmra.mxu3 %v4610_v25 }
 0x3ce   :  { %1831 = vmatmul.bf16.gmra.mxu0 %v4617_v6 }
 0x3cf   :  { %1920 = vmatmul.bf16.gmra.mxu1 %v4610_v25 }
 0x3dc   :  { %1658 = vmatmul.bf16.gmra.mxu2 %v4629_v38 }
 0x3dd   :  { %1747 = vmatmul.bf16.gmra.mxu3 %v4622_v43 }
 0x3de   :  { %1836 = vmatmul.bf16.gmra.mxu0 %v4629_v38 }
 0x3df   :  { %1925 = vmatmul.bf16.gmra.mxu1 %v4622_v43 }
 0x3ec   :  { %1663 = vmatmul.bf16.gmra.mxu2 %v4641_v11 }
 0x3ed   :  { %1752 = vmatmul.bf16.gmra.mxu3 %v4634_v44 }
 0x3ee   :  { %1841 = vmatmul.bf16.gmra.mxu0 %v4641_v11 }
 0x3ef   :  { %1930 = vmatmul.bf16.gmra.mxu1 %v4634_v44 }
 0x3fc   :  { %1668 = vmatmul.bf16.gmra.mxu2 %v4649_v2 }
 0x3fd   :  { %1757 = vmatmul.bf16.gmra.mxu3 %v4646_v45 }
 0x3fe   :  { %1846 = vmatmul.bf16.gmra.mxu0 %v4649_v2 }
 0x3ff   :  { %1935 = vmatmul.bf16.gmra.mxu1 %v4646_v45 }
 0x40b   :  { %v1812_v59 = vpop.f32.mrf.mxu0 }
 0x40c   :  { %v1813_v50 = vadd.f32 %v1812_v59, %v4746_v49  ;;  %v1901_v24 = vpop.f32.mrf.mxu1  ;;  %1673 = vmatmul.bf16.gmra.mxu2 %v4657_v17 }
 0x40d   :  { %1762 = vmatmul.bf16.gmra.mxu3 %v4654_v30 }
 0x40e   :  { %v1902_v58 = vadd.f32 %v1901_v24, %v1813_v50  ;;  %1851 = vmatmul.bf16.gmra.mxu0 %v4657_v17 }
 0x40f   :  { %1940 = vmatmul.bf16.gmra.mxu1 %v4654_v30  ;;  %v1634_v16 = vpop.f32.mrf.mxu2 }
 0x410   :  { %v1635_v25 = vadd.f32 %v1634_v16, %v4750_v21  ;;  %v1723_v6 = vpop.f32.mrf.mxu3  ;;  %v1982_v45 = vmul.f32 0.2, %v1902_v58 }
 0x412   :  { %v1724_v43 = vadd.f32 %v1723_v6, %v1635_v25  ;;  %v2046_v26 = vmax.f32 %v1902_v58, %v1982_v45 }
 0x413   :  { %v1814_v38 = vpop.f32.mrf.mxu0 }
 0x414   :  { %v1815_v44 = vadd.f32 %v1814_v38, %v4746_v49  ;;  %v1903_v11 = vpop.f32.mrf.mxu1  ;;  %v1981_v12 = vmul.f32 0.2, %v1724_v43 }
 0x416   :  { %v1904_v2 = vadd.f32 %v1903_v11, %v1815_v44  ;;  %v2045_v5 = vmax.f32 %v1724_v43, %v1981_v12 }
 0x417   :  { %v1636_v8 = vpop.f32.mrf.mxu2 }
 0x418   :  { %v1984_v60 = vmul.f32 0.2, %v1904_v2  ;;  %v1637_v3 = vadd.f32 %v1636_v8, %v4750_v21  ;;  %v1725_v51 = vpop.f32.mrf.mxu3 }
 0x41a   :  { %v2048_v17 = vmax.f32 %v1904_v2, %v1984_v60  ;;  %v1726_v30 = vadd.f32 %v1725_v51, %v1637_v3 }
 0x41b   :  { %v1817_v0 = vpop.f32.mrf.mxu0 }
 0x41c   :  { %v4758_v19 = vpack.c.bf16 %v2048_v17, %v2046_v26  ;;  %v1818_v56 = vadd.f32 %v1817_v0, %v4746_v49  ;;  %v1906_v46 = vpop.f32.mrf.mxu1  ;;  %v1983_v47 = vmul.f32 0.2, %v1726_v30  ;;  %1678 = vmatmul.bf16.gmra.mxu2 %v4665_v18 }
 0x41d   :  { %1767 = vmatmul.bf16.gmra.mxu3 %v4662_v15 }
 0x41e   :  { %v1907_v31 = vadd.f32 %v1906_v46, %v1818_v56  ;;  %1856 = vmatmul.bf16.gmra.mxu0 %v4665_v18  ;;  %v2047_v27 = vmax.f32 %v1726_v30, %v1983_v47 }
 0x41f   :  { %1945 = vmatmul.bf16.gmra.mxu1 %v4662_v15  ;;  %v1639_v14 = vpop.f32.mrf.mxu2 }
 0x420   :  { %v4765_v41 = vpack.c.bf16 %v2047_v27, %v2045_v5  ;;  %v1640_v53 = vadd.f32 %v1639_v14, %v4750_v21  ;;  %v1728_v32 = vpop.f32.mrf.mxu3  ;;  %v1986_v29 = vmul.f32 0.2, %v1907_v31 }
 0x422   :  { %v1729_v54 = vadd.f32 %v1728_v32, %v1640_v53  ;;  %v2050_v33 = vmax.f32 %v1907_v31, %v1986_v29 }
 0x423   :  { %v1819_v61 = vpop.f32.mrf.mxu0 }
 0x424   :  { %v1820_v28 = vadd.f32 %v1819_v61, %v4746_v49  ;;  %v1908_v62 = vpop.f32.mrf.mxu1  ;;  %v1985_v48 = vmul.f32 0.2, %v1729_v54 }
 0x426   :  { %v1909_v57 = vadd.f32 %v1908_v62, %v1820_v28  ;;  %v2049_v58 = vmax.f32 %v1729_v54, %v1985_v48 }
 0x427   :  { %v1641_v10 = vpop.f32.mrf.mxu2 }
 0x428   :  { %v1988_v23 = vmul.f32 0.2, %v1909_v57  ;;  %v1642_v18 = vadd.f32 %v1641_v10, %v4750_v21  ;;  %v1730_v63 = vpop.f32.mrf.mxu3 }
 0x42a   :  { %v2052_v15 = vmax.f32 %v1909_v57, %v1988_v23  ;;  %v1731_v35 = vadd.f32 %v1730_v63, %v1642_v18 }
 0x42b   :  { %v1822_v37 = vpop.f32.mrf.mxu0 }
 0x42c   :  { %v4770_v39 = vpack.c.bf16 %v2052_v15, %v2050_v33  ;;  %v1823_v9 = vadd.f32 %v1822_v37, %v4746_v49  ;;  %v1911_v59 = vpop.f32.mrf.mxu1  ;;  %v1987_v50 = vmul.f32 0.2, %v1731_v35  ;;  %1683 = vmatmul.bf16.gmra.mxu2 %v4673_v34 }
 0x42d   :  { %1772 = vmatmul.bf16.gmra.mxu3 %v4670_v52 }
 0x42e   :  { %v1912_v24 = vadd.f32 %v1911_v59, %v1823_v9  ;;  %1861 = vmatmul.bf16.gmra.mxu0 %v4673_v34  ;;  %v2051_v16 = vmax.f32 %v1731_v35, %v1987_v50 }
 0x42f   :  { %1950 = vmatmul.bf16.gmra.mxu1 %v4670_v52  ;;  %v1644_v25 = vpop.f32.mrf.mxu2 }
 0x430   :  { %v4777_v6 = vpack.c.bf16 %v2051_v16, %v2049_v58  ;;  %v1645_v43 = vadd.f32 %v1644_v25, %v4750_v21  ;;  %v1733_v38 = vpop.f32.mrf.mxu3  ;;  %v1990_v60 = vmul.f32 0.2, %v1912_v24 }
 0x432   :  { %v1734_v44 = vadd.f32 %v1733_v38, %v1645_v43  ;;  %v2054_v17 = vmax.f32 %v1912_v24, %v1990_v60 }
 0x433   :  { %v1824_v11 = vpop.f32.mrf.mxu0 }
 0x434   :  { %v1825_v45 = vadd.f32 %v1824_v11, %v4746_v49  ;;  %v1913_v2 = vpop.f32.mrf.mxu1  ;;  %v1989_v12 = vmul.f32 0.2, %v1734_v44 }
 0x436   :  { %v1914_v8 = vadd.f32 %v1913_v2, %v1825_v45  ;;  %v2053_v27 = vmax.f32 %v1734_v44, %v1989_v12 }
 0x437   :  { %v1646_v51 = vpop.f32.mrf.mxu2 }
 0x438   :  { %v1992_v3 = vmul.f32 0.2, %v1914_v8  ;;  %v1647_v34 = vadd.f32 %v1646_v51, %v4750_v21  ;;  %v1735_v26 = vpop.f32.mrf.mxu3 }
 0x43a   :  { %v2056_v52 = vmax.f32 %v1914_v8, %v1992_v3  ;;  %v1736_v30 = vadd.f32 %v1735_v26, %v1647_v34 }
 0x43b   :  { %v1827_v0 = vpop.f32.mrf.mxu0 }
 0x43c   :  { %v4782_v56 = vpack.c.bf16 %v2056_v52, %v2054_v17  ;;  %v1828_v46 = vadd.f32 %v1827_v0, %v4746_v49  ;;  %v1916_v47 = vpop.f32.mrf.mxu1  ;;  %v1991_v31 = vmul.f32 0.2, %v1736_v30  ;;  %1688 = vmatmul.bf16.gmra.mxu2 %v4681_v40 }
 0x43d   :  { %1777 = vmatmul.bf16.gmra.mxu3 %v4678_v55 }
 0x43e   :  { %v1917_v5 = vadd.f32 %v1916_v47, %v1828_v46  ;;  %1866 = vmatmul.bf16.gmra.mxu0 %v4681_v40  ;;  %v2055_v14 = vmax.f32 %v1736_v30, %v1991_v31 }
 0x43f   :  { %1955 = vmatmul.bf16.gmra.mxu1 %v4678_v55  ;;  %v1649_v53 = vpop.f32.mrf.mxu2 }
 0x440   :  { %v4789_v32 = vpack.c.bf16 %v2055_v14, %v2053_v27  ;;  %v1650_v54 = vadd.f32 %v1649_v53, %v4750_v21  ;;  %v1738_v61 = vpop.f32.mrf.mxu3  ;;  %v1994_v23 = vmul.f32 0.2, %v1917_v5 }
 0x442   :  { %v1739_v28 = vadd.f32 %v1738_v61, %v1650_v54  ;;  %v2058_v15 = vmax.f32 %v1917_v5, %v1994_v23 }
 0x443   :  { %v1829_v62 = vpop.f32.mrf.mxu0 }
 0x444   :  { %v1830_v29 = vadd.f32 %v1829_v62, %v4746_v49  ;;  %v1918_v57 = vpop.f32.mrf.mxu1  ;;  %v1993_v48 = vmul.f32 0.2, %v1739_v28 }
 0x446   :  { %v1919_v10 = vadd.f32 %v1918_v57, %v1830_v29  ;;  %v2057_v16 = vmax.f32 %v1739_v28, %v1993_v48 }
 0x447   :  { %v1651_v63 = vpop.f32.mrf.mxu2 }
 0x448   :  { %v1996_v18 = vmul.f32 0.2, %v1919_v10  ;;  %v1652_v40 = vadd.f32 %v1651_v63, %v4750_v21  ;;  %v1740_v33 = vpop.f32.mrf.mxu3 }
 0x44a   :  { %v2060_v55 = vmax.f32 %v1919_v10, %v1996_v18  ;;  %v1741_v35 = vadd.f32 %v1740_v33, %v1652_v40 }
 0x44b   :  { %v1832_v37 = vpop.f32.mrf.mxu0 }
 0x44c   :  { %v4794_v9 = vpack.c.bf16 %v2060_v55, %v2058_v15  ;;  %v1833_v59 = vadd.f32 %v1832_v37, %v4746_v49  ;;  %v1921_v50 = vpop.f32.mrf.mxu1  ;;  %v1995_v24 = vmul.f32 0.2, %v1741_v35  ;;  %1693 = vmatmul.bf16.gmra.mxu2 %v4689_v1 }
 0x44d   :  { %1782 = vmatmul.bf16.gmra.mxu3 %v4686_v22 }
 0x44e   :  { %v1922_v58 = vadd.f32 %v1921_v50, %v1833_v59  ;;  %1871 = vmatmul.bf16.gmra.mxu0 %v4689_v1  ;;  %v2059_v25 = vmax.f32 %v1741_v35, %v1995_v24 }
 0x44f   :  { %1960 = vmatmul.bf16.gmra.mxu1 %v4686_v22  ;;  %v1654_v43 = vpop.f32.mrf.mxu2 }
 0x450   :  { %v4801_v38 = vpack.c.bf16 %v2059_v25, %v2057_v16  ;;  %v1655_v44 = vadd.f32 %v1654_v43, %v4750_v21  ;;  %v1743_v11 = vpop.f32.mrf.mxu3  ;;  %v1998_v3 = vmul.f32 0.2, %v1922_v58 }
 0x452   :  { %v1744_v45 = vadd.f32 %v1743_v11, %v1655_v44  ;;  %v2062_v52 = vmax.f32 %v1922_v58, %v1998_v3 }
 0x453   :  { %v1834_v2 = vpop.f32.mrf.mxu0 }
 0x454   :  { %v1835_v60 = vadd.f32 %v1834_v2, %v4746_v49  ;;  %v1923_v8 = vpop.f32.mrf.mxu1  ;;  %v1997_v12 = vmul.f32 0.2, %v1744_v45 }
 0x456   :  { %v1924_v51 = vadd.f32 %v1923_v8, %v1835_v60  ;;  %v2061_v14 = vmax.f32 %v1744_v45, %v1997_v12 }
 0x457   :  { %v1656_v26 = vpop.f32.mrf.mxu2 }
 0x458   :  { %v2000_v34 = vmul.f32 0.2, %v1924_v51  ;;  %v1657_v1 = vadd.f32 %v1656_v26, %v4750_v21  ;;  %v1745_v17 = vpop.f32.mrf.mxu3 }
 0x45a   :  { %v2064_v22 = vmax.f32 %v1924_v51, %v2000_v34  ;;  %v1746_v30 = vadd.f32 %v1745_v17, %v1657_v1 }
 0x45b   :  { %v1837_v0 = vpop.f32.mrf.mxu0 }
 0x45c   :  { %v4806_v46 = vpack.c.bf16 %v2064_v22, %v2062_v52  ;;  %v1838_v47 = vadd.f32 %v1837_v0, %v4746_v49  ;;  %v1926_v31 = vpop.f32.mrf.mxu1  ;;  %v1999_v5 = vmul.f32 0.2, %v1746_v30  ;;  %1698 = vmatmul.bf16.gmra.mxu2 %v4697_v42 }
 0x45d   :  { %1787 = vmatmul.bf16.gmra.mxu3 %v4694_v13 }
 0x45e   :  { %v1927_v27 = vadd.f32 %v1926_v31, %v1838_v47  ;;  %1876 = vmatmul.bf16.gmra.mxu0 %v4697_v42  ;;  %v2063_v53 = vmax.f32 %v1746_v30, %v1999_v5 }
 0x45f   :  { %1965 = vmatmul.bf16.gmra.mxu1 %v4694_v13  ;;  %v1659_v54 = vpop.f32.mrf.mxu2 }
 0x460   :  { %v4813_v61 = vpack.c.bf16 %v2063_v53, %v2061_v14  ;;  %v1660_v28 = vadd.f32 %v1659_v54, %v4750_v21  ;;  %v1748_v62 = vpop.f32.mrf.mxu3  ;;  %v2002_v18 = vmul.f32 0.2, %v1927_v27 }
 0x462   :  { %v1749_v29 = vadd.f32 %v1748_v62, %v1660_v28  ;;  %v2066_v55 = vmax.f32 %v1927_v27, %v2002_v18 }
 0x463   :  { %v1839_v57 = vpop.f32.mrf.mxu0 }
 0x464   :  { %v1840_v23 = vadd.f32 %v1839_v57, %v4746_v49  ;;  %v1928_v10 = vpop.f32.mrf.mxu1  ;;  %v2001_v48 = vmul.f32 0.2, %v1749_v29 }
 0x466   :  { %v1929_v63 = vadd.f32 %v1928_v10, %v1840_v23  ;;  %v2065_v25 = vmax.f32 %v1749_v29, %v2001_v48 }
 0x467   :  { %v1661_v33 = vpop.f32.mrf.mxu2 }
 0x468   :  { %v2004_v40 = vmul.f32 0.2, %v1929_v63  ;;  %v1662_v42 = vadd.f32 %v1661_v33, %v4750_v21  ;;  %v1750_v15 = vpop.f32.mrf.mxu3 }
 0x46a   :  { %v2068_v13 = vmax.f32 %v1929_v63, %v2004_v40  ;;  %v1751_v35 = vadd.f32 %v1750_v15, %v1662_v42 }
 0x46b   :  { %v1842_v37 = vpop.f32.mrf.mxu0 }
 0x46c   :  { %v4818_v59 = vpack.c.bf16 %v2068_v13, %v2066_v55  ;;  %v1843_v50 = vadd.f32 %v1842_v37, %v4746_v49  ;;  %v1931_v24 = vpop.f32.mrf.mxu1  ;;  %v2003_v58 = vmul.f32 0.2, %v1751_v35  ;;  %1703 = vmatmul.bf16.gmra.mxu2 %v4705_v20 }
 0x46d   :  { %1792 = vmatmul.bf16.gmra.mxu3 %v4702_v4 }
 0x46e   :  { %v1932_v16 = vadd.f32 %v1931_v24, %v1843_v50  ;;  %1881 = vmatmul.bf16.gmra.mxu0 %v4705_v20  ;;  %v2067_v43 = vmax.f32 %v1751_v35, %v2003_v58 }
 0x46f   :  { %1970 = vmatmul.bf16.gmra.mxu1 %v4702_v4  ;;  %v1664_v44 = vpop.f32.mrf.mxu2 }
 0x470   :  { %v4825_v11 = vpack.c.bf16 %v2067_v43, %v2065_v25  ;;  %v1665_v45 = vadd.f32 %v1664_v44, %v4750_v21  ;;  %v1753_v2 = vpop.f32.mrf.mxu3  ;;  %v2006_v34 = vmul.f32 0.2, %v1932_v16 }
 0x472   :  { %v1754_v60 = vadd.f32 %v1753_v2, %v1665_v45  ;;  %v2070_v22 = vmax.f32 %v1932_v16, %v2006_v34 }
 0x473   :  { %v1844_v8 = vpop.f32.mrf.mxu0 }
 0x474   :  { %v1845_v3 = vadd.f32 %v1844_v8, %v4746_v49  ;;  %v1933_v51 = vpop.f32.mrf.mxu1  ;;  %v2005_v12 = vmul.f32 0.2, %v1754_v60 }
 0x476   :  { %v1934_v26 = vadd.f32 %v1933_v51, %v1845_v3  ;;  %v2069_v53 = vmax.f32 %v1754_v60, %v2005_v12 }
 0x477   :  { %v1666_v17 = vpop.f32.mrf.mxu2 }
 0x478   :  { %v2008_v1 = vmul.f32 0.2, %v1934_v26  ;;  %v1667_v20 = vadd.f32 %v1666_v17, %v4750_v21  ;;  %v1755_v52 = vpop.f32.mrf.mxu3 }
 0x47a   :  { %v2072_v4 = vmax.f32 %v1934_v26, %v2008_v1  ;;  %v1756_v30 = vadd.f32 %v1755_v52, %v1667_v20 }
 0x47b   :  { %v1847_v0 = vpop.f32.mrf.mxu0 }
 0x47c   :  { %v4830_v47 = vpack.c.bf16 %v2072_v4, %v2070_v22  ;;  %v1848_v31 = vadd.f32 %v1847_v0, %v4746_v49  ;;  %v1936_v5 = vpop.f32.mrf.mxu1  ;;  %v2007_v27 = vmul.f32 0.2, %v1756_v30  ;;  %1708 = vmatmul.bf16.gmra.mxu2 %v4712_v7 }
 0x47d   :  { %1797 = vmatmul.bf16.gmra.mxu3 %v4710_v36 }
 0x47e   :  { %v1937_v14 = vadd.f32 %v1936_v5, %v1848_v31  ;;  %1886 = vmatmul.bf16.gmra.mxu0 %v4712_v7  ;;  %v2071_v54 = vmax.f32 %v1756_v30, %v2007_v27 }
 0x47f   :  { %1975 = vmatmul.bf16.gmra.mxu1 %v4710_v36  ;;  %v1669_v28 = vpop.f32.mrf.mxu2 }
 0x480   :  { %v4837_v62 = vpack.c.bf16 %v2071_v54, %v2069_v53  ;;  %v1670_v29 = vadd.f32 %v1669_v28, %v4750_v21  ;;  %v1758_v57 = vpop.f32.mrf.mxu3  ;;  %v2010_v40 = vmul.f32 0.2, %v1937_v14 }
 0x482   :  { %v1759_v23 = vadd.f32 %v1758_v57, %v1670_v29  ;;  %v2074_v13 = vmax.f32 %v1937_v14, %v2010_v40 }
 0x483   :  { %v1849_v10 = vpop.f32.mrf.mxu0 }
 0x484   :  { %v1850_v18 = vadd.f32 %v1849_v10, %v4746_v49  ;;  %v1938_v63 = vpop.f32.mrf.mxu1  ;;  %v2009_v48 = vmul.f32 0.2, %v1759_v23 }
 0x486   :  { %v1939_v33 = vadd.f32 %v1938_v63, %v1850_v18  ;;  %v2073_v43 = vmax.f32 %v1759_v23, %v2009_v48 }
 0x487   :  { %v1671_v15 = vpop.f32.mrf.mxu2 }
 0x488   :  { %v2012_v42 = vmul.f32 0.2, %v1939_v33  ;;  %v1672_v7 = vadd.f32 %v1671_v15, %v4750_v21  ;;  %v1760_v55 = vpop.f32.mrf.mxu3 }
 0x48a   :  { %v2076_v36 = vmax.f32 %v1939_v33, %v2012_v42  ;;  %v1761_v35 = vadd.f32 %v1760_v55, %v1672_v7 }
 0x48b   :  { %v1852_v37 = vpop.f32.mrf.mxu0 }
 0x48c   :  { %v4842_v50 = vpack.c.bf16 %v2076_v36, %v2074_v13  ;;  %v1853_v24 = vadd.f32 %v1852_v37, %v4746_v49  ;;  %v1941_v58 = vpop.f32.mrf.mxu1  ;;  %v2011_v16 = vmul.f32 0.2, %v1761_v35 }
 0x48e   :  { %v1942_v25 = vadd.f32 %v1941_v58, %v1853_v24  ;;  %v2075_v44 = vmax.f32 %v1761_v35, %v2011_v16 }
 0x48f   :  { %v1674_v45 = vpop.f32.mrf.mxu2 }
 0x490   :  { %v4845_v2 = vpack.c.bf16 %v2075_v44, %v2073_v43  ;;  %v1675_v60 = vadd.f32 %v1674_v45, %v4750_v21  ;;  %v1763_v8 = vpop.f32.mrf.mxu3  ;;  %v2014_v1 = vmul.f32 0.2, %v1942_v25 }
 0x492   :  { %v1764_v3 = vadd.f32 %v1763_v8, %v1675_v60  ;;  %v2078_v12 = vmax.f32 %v1942_v25, %v2014_v1 }
 0x493   :  { %v1854_v51 = vpop.f32.mrf.mxu0 }
 0x494   :  { %v1855_v34 = vadd.f32 %v1854_v51, %v4746_v49  ;;  %v1943_v26 = vpop.f32.mrf.mxu1  ;;  %v2013_v0 = vmul.f32 0.2, %v1764_v3 }
 0x496   :  { %v1944_v17 = vadd.f32 %v1943_v26, %v1855_v34  ;;  %v2077_v29 = vmax.f32 %v1764_v3, %v2013_v0 }
 0x497   :  { %v1676_v52 = vpop.f32.mrf.mxu2 }
 0x498   :  { %v2016_v20 = vmul.f32 0.2, %v1944_v17  ;;  %v1677_v22 = vadd.f32 %v1676_v52, %v4750_v21  ;;  %v1765_v4 = vpop.f32.mrf.mxu3 }
 0x49a   :  { %v2080_v30 = vmax.f32 %v1944_v17, %v2016_v20  ;;  %v1766_v31 = vadd.f32 %v1765_v4, %v1677_v22 }
 0x49b   :  { %v1857_v5 = vpop.f32.mrf.mxu0 }
 0x49c   :  { %v4850_v27 = vpack.c.bf16 %v2080_v30, %v2078_v12  ;;  %v1858_v14 = vadd.f32 %v1857_v5, %v4746_v49  ;;  %v1946_v53 = vpop.f32.mrf.mxu1  ;;  %v2015_v54 = vmul.f32 0.2, %v1766_v31 }
 0x49e   :  { %v1947_v28 = vadd.f32 %v1946_v53, %v1858_v14  ;;  %v2079_v57 = vmax.f32 %v1766_v31, %v2015_v54 }
 0x49f   :  { %v1679_v23 = vpop.f32.mrf.mxu2 }
 0x4a0   :  { %v4853_v10 = vpack.c.bf16 %v2079_v57, %v2077_v29  ;;  %v1680_v18 = vadd.f32 %v1679_v23, %v4750_v21  ;;  %v1768_v63 = vpop.f32.mrf.mxu3  ;;  %v2018_v7 = vmul.f32 0.2, %v1947_v28 }
 0x4a2   :  { %v1769_v40 = vadd.f32 %v1768_v63, %v1680_v18  ;;  %v2082_v37 = vmax.f32 %v1947_v28, %v2018_v7 }
 0x4a3   :  { %v1859_v33 = vpop.f32.mrf.mxu0 }
 0x4a4   :  { %v1860_v42 = vadd.f32 %v1859_v33, %v4746_v49  ;;  %v1948_v15 = vpop.f32.mrf.mxu1  ;;  %v2017_v58 = vmul.f32 0.2, %v1769_v40 }
 0x4a6   :  { %v1949_v55 = vadd.f32 %v1948_v15, %v1860_v42  ;;  %v2081_v3 = vmax.f32 %v1769_v40, %v2017_v58 }
 0x4a7   :  { %v1681_v36 = vpop.f32.mrf.mxu2 }
 0x4a8   :  { %v2020_v13 = vmul.f32 0.2, %v1949_v55  ;;  %v1682_v48 = vadd.f32 %v1681_v36, %v4750_v21  ;;  %v1770_v35 = vpop.f32.mrf.mxu3 }
 0x4aa   :  { %v2084_v24 = vmax.f32 %v1949_v55, %v2020_v13  ;;  %v1771_v16 = vadd.f32 %v1770_v35, %v1682_v48 }
 0x4ab   :  { %v1862_v25 = vpop.f32.mrf.mxu0 }
 0x4ac   :  { %v4858_v43 = vpack.c.bf16 %v2084_v24, %v2082_v37  ;;  %v1863_v44 = vadd.f32 %v1862_v25, %v4746_v49  ;;  %v1951_v45 = vpop.f32.mrf.mxu1  ;;  %v2019_v60 = vmul.f32 0.2, %v1771_v16 }
 0x4ae   :  { %v1952_v8 = vadd.f32 %v1951_v45, %v1863_v44  ;;  %v2083_v51 = vmax.f32 %v1771_v16, %v2019_v60 }
 0x4af   :  { %v1684_v34 = vpop.f32.mrf.mxu2 }
 0x4b0   :  { %v4861_v26 = vpack.c.bf16 %v2083_v51, %v2081_v3  ;;  %v1685_v1 = vadd.f32 %v1684_v34, %v4750_v21  ;;  %v1773_v17 = vpop.f32.mrf.mxu3  ;;  %v2022_v12 = vmul.f32 0.2, %v1952_v8 }
 0x4b2   :  { %v1774_v20 = vadd.f32 %v1773_v17, %v1685_v1  ;;  %v2086_v53 = vmax.f32 %v1952_v8, %v2022_v12 }
 0x4b3   :  { %v1864_v52 = vpop.f32.mrf.mxu0 }
 0x4b4   :  { %v1865_v22 = vadd.f32 %v1864_v52, %v4746_v49  ;;  %v1953_v4 = vpop.f32.mrf.mxu1  ;;  %v2021_v28 = vmul.f32 0.2, %v1774_v20 }
 0x4b6   :  { %v1954_v30 = vadd.f32 %v1953_v4, %v1865_v22  ;;  %v2085_v42 = vmax.f32 %v1774_v20, %v2021_v28 }
 0x4b7   :  { %v1686_v31 = vpop.f32.mrf.mxu2 }
 0x4b8   :  { %v2024_v0 = vmul.f32 0.2, %v1954_v30  ;;  %v1687_v5 = vadd.f32 %v1686_v31, %v4750_v21  ;;  %v1775_v14 = vpop.f32.mrf.mxu3 }
 0x4ba   :  { %v2088_v54 = vmax.f32 %v1954_v30, %v2024_v0  ;;  %v1776_v29 = vadd.f32 %v1775_v14, %v1687_v5 }
 0x4bb   :  { %v1867_v57 = vpop.f32.mrf.mxu0 }
 0x4bc   :  { %v4866_v23 = vpack.c.bf16 %v2088_v54, %v2086_v53  ;;  %v1868_v18 = vadd.f32 %v1867_v57, %v4746_v49  ;;  %v1956_v63 = vpop.f32.mrf.mxu1  ;;  %v2023_v40 = vmul.f32 0.2, %v1776_v29 }
 0x4be   :  { %v1957_v33 = vadd.f32 %v1956_v63, %v1868_v18  ;;  %v2087_v15 = vmax.f32 %v1776_v29, %v2023_v40 }
 0x4bf   :  { %v1689_v7 = vpop.f32.mrf.mxu2 }
 0x4c0   :  { %v4869_v55 = vpack.c.bf16 %v2087_v15, %v2085_v42  ;;  %v1690_v13 = vadd.f32 %v1689_v7, %v4750_v21  ;;  %v1778_v36 = vpop.f32.mrf.mxu3  ;;  %v2026_v58 = vmul.f32 0.2, %v1957_v33 }
 0x4c2   :  { %v1779_v48 = vadd.f32 %v1778_v36, %v1690_v13  ;;  %v2090_v8 = vmax.f32 %v1957_v33, %v2026_v58 }
 0x4c3   :  { %v1869_v35 = vpop.f32.mrf.mxu0 }
 0x4c4   :  { %v1870_v37 = vadd.f32 %v1869_v35, %v4746_v49  ;;  %v1958_v24 = vpop.f32.mrf.mxu1  ;;  %v2025_v51 = vmul.f32 0.2, %v1779_v48 }
 0x4c6   :  { %v1959_v16 = vadd.f32 %v1958_v24, %v1870_v37  ;;  %v2089_v4 = vmax.f32 %v1779_v48, %v2025_v51 }
 0x4c7   :  { %v1691_v44 = vpop.f32.mrf.mxu2 }
 0x4c8   :  { %v2028_v25 = vmul.f32 0.2, %v1959_v16  ;;  %v1692_v45 = vadd.f32 %v1691_v44, %v4750_v21  ;;  %v1780_v60 = vpop.f32.mrf.mxu3 }
 0x4ca   :  { %v2092_v3 = vmax.f32 %v1959_v16, %v2028_v25  ;;  %v1781_v34 = vadd.f32 %v1780_v60, %v1692_v45 }
 0x4cb   :  { %v1872_v1 = vpop.f32.mrf.mxu0 }
 0x4cc   :  { %v4874_v17 = vpack.c.bf16 %v2092_v3, %v2090_v8  ;;  %v1961_v20 = vpop.f32.mrf.mxu1  ;;  %v2027_v52 = vmul.f32 0.2, %v1781_v34  ;;  %v1873_v22 = vadd.f32 %v1872_v1, %v4746_v49 }
 0x4ce   :  { %v2091_v12 = vmax.f32 %v1781_v34, %v2027_v52  ;;  %v1962_v5 = vadd.f32 %v1961_v20, %v1873_v22 }
 0x4cf   :  { %v1694_v30 = vpop.f32.mrf.mxu2 }
 0x4d0   :  { %v4877_v0 = vpack.c.bf16 %v2091_v12, %v2089_v4  ;;  %v1783_v31 = vpop.f32.mrf.mxu3  ;;  %v1695_v14 = vadd.f32 %v1694_v30, %v4750_v21  ;;  %v2030_v29 = vmul.f32 0.2, %v1962_v5 }
 0x4d2   :  { %v1784_v18 = vadd.f32 %v1783_v31, %v1695_v14  ;;  %v2094_v15 = vmax.f32 %v1962_v5, %v2030_v29 }
 0x4d3   :  { %v1874_v53 = vpop.f32.mrf.mxu0 }
 0x4d4   :  { %v1875_v54 = vadd.f32 %v1874_v53, %v4746_v49  ;;  %v1963_v28 = vpop.f32.mrf.mxu1  ;;  %v2029_v13 = vmul.f32 0.2, %v1784_v18 }
 0x4d6   :  { %v1964_v57 = vadd.f32 %v1963_v28, %v1875_v54  ;;  %v2093_v16 = vmax.f32 %v1784_v18, %v2029_v13 }
 0x4d7   :  { %v1696_v40 = vpop.f32.mrf.mxu2 }
 0x4d8   :  { %v2032_v63 = vmul.f32 0.2, %v1964_v57  ;;  %v1697_v33 = vadd.f32 %v1696_v40, %v4750_v21  ;;  %v1785_v42 = vpop.f32.mrf.mxu3 }
 0x4da   :  { %v2096_v7 = vmax.f32 %v1964_v57, %v2032_v63  ;;  %v1786_v36 = vadd.f32 %v1785_v42, %v1697_v33 }
 0x4db   :  { %v1877_v48 = vpop.f32.mrf.mxu0 }
 0x4dc   :  { %v4882_v35 = vpack.c.bf16 %v2096_v7, %v2094_v15  ;;  %v1966_v37 = vpop.f32.mrf.mxu1  ;;  %v2031_v24 = vmul.f32 0.2, %v1786_v36  ;;  %v1878_v58 = vadd.f32 %v1877_v48, %v4746_v49 }
 0x4de   :  { %v2095_v25 = vmax.f32 %v1786_v36, %v2031_v24  ;;  %v1967_v8 = vadd.f32 %v1966_v37, %v1878_v58 }
 0x4df   :  { %v1699_v44 = vpop.f32.mrf.mxu2 }
 0x4e0   :  { %v4885_v45 = vpack.c.bf16 %v2095_v25, %v2093_v16  ;;  %v1788_v60 = vpop.f32.mrf.mxu3  ;;  %v1700_v3 = vadd.f32 %v1699_v44, %v4750_v21  ;;  %v2034_v20 = vmul.f32 0.2, %v1967_v8 }
 0x4e2   :  { %v1789_v22 = vadd.f32 %v1788_v60, %v1700_v3  ;;  %v2098_v5 = vmax.f32 %v1967_v8, %v2034_v20 }
 0x4e3   :  { %v1879_v51 = vpop.f32.mrf.mxu0 }
 0x4e4   :  { %v1880_v34 = vadd.f32 %v1879_v51, %v4746_v49  ;;  %v1968_v1 = vpop.f32.mrf.mxu1  ;;  %v2033_v53 = vmul.f32 0.2, %v1789_v22 }
 0x4e6   :  { %v1969_v52 = vadd.f32 %v1968_v1, %v1880_v34  ;;  %v2097_v40 = vmax.f32 %v1789_v22, %v2033_v53 }
 0x4e7   :  { %v1701_v12 = vpop.f32.mrf.mxu2 }
 0x4e8   :  { %v2036_v4 = vmul.f32 0.2, %v1969_v52  ;;  %v1702_v30 = vadd.f32 %v1701_v12, %v4750_v21  ;;  %v1790_v31 = vpop.f32.mrf.mxu3 }
 0x4ea   :  { %v2100_v14 = vmax.f32 %v1969_v52, %v2036_v4  ;;  %v1791_v54 = vadd.f32 %v1790_v31, %v1702_v30 }
 0x4eb   :  { %v1882_v28 = vpop.f32.mrf.mxu0 }
 0x4ec   :  { %v4890_v29 = vpack.c.bf16 %v2100_v14, %v2098_v5  ;;  %v1971_v57 = vpop.f32.mrf.mxu1  ;;  %v2035_v18 = vmul.f32 0.2, %v1791_v54  ;;  %v1883_v63 = vadd.f32 %v1882_v28, %v4746_v49 }
 0x4ee   :  { %v2099_v33 = vmax.f32 %v1791_v54, %v2035_v18  ;;  %v1972_v13 = vadd.f32 %v1971_v57, %v1883_v63 }
 0x4ef   :  { %v1704_v42 = vpop.f32.mrf.mxu2 }
 0x4f0   :  { %v4893_v15 = vpack.c.bf16 %v2099_v33, %v2097_v40  ;;  %v1793_v7 = vpop.f32.mrf.mxu3  ;;  %v1705_v36 = vadd.f32 %v1704_v42, %v4750_v21  ;;  %v2038_v58 = vmul.f32 0.2, %v1972_v13 }
 0x4f2   :  { %v1794_v25 = vadd.f32 %v1793_v7, %v1705_v36  ;;  %v2102_v51 = vmax.f32 %v1972_v13, %v2038_v58 }
 0x4f3   :  { %v1884_v48 = vpop.f32.mrf.mxu0 }
 0x4f4   :  { %v1885_v37 = vadd.f32 %v1884_v48, %v4746_v49  ;;  %v1973_v24 = vpop.f32.mrf.mxu1  ;;  %v2037_v1 = vmul.f32 0.2, %v1794_v25 }
 0x4f6   :  { %v1974_v16 = vadd.f32 %v1973_v24, %v1885_v37  ;;  %v2101_v31 = vmax.f32 %v1794_v25, %v2037_v1 }
 0x4f7   :  { %v1706_v60 = vpop.f32.mrf.mxu2 }
 0x4f8   :  { %v2040_v44 = vmul.f32 0.2, %v1974_v16  ;;  %v1707_v8 = vadd.f32 %v1706_v60, %v4750_v21  ;;  %v1795_v3 = vpop.f32.mrf.mxu3 }
 0x4fa   :  { %v2104_v34 = vmax.f32 %v1974_v16, %v2040_v44  ;;  %v1796_v20 = vadd.f32 %v1795_v3, %v1707_v8 }
 0x4fb   :  { %v1887_v52 = vpop.f32.mrf.mxu0 }
 0x4fc   :  { %v4898_v22 = vpack.c.bf16 %v2104_v34, %v2102_v51  ;;  %v1976_v4 = vpop.f32.mrf.mxu1  ;;  %v2039_v12 = vmul.f32 0.2, %v1796_v20  ;;  %v1888_v30 = vadd.f32 %v1887_v52, %v4746_v49 }
 0x4fe   :  { %v2103_v5 = vmax.f32 %v1796_v20, %v2039_v12  ;;  %v1977_v28 = vadd.f32 %v1976_v4, %v1888_v30 }
 0x4ff   :  { %v1709_v14 = vpop.f32.mrf.mxu2 }
 0x500   :  { %v4901_v53 = vpack.c.bf16 %v2103_v5, %v2101_v31  ;;  %v1798_v54 = vpop.f32.mrf.mxu3  ;;  %v1710_v57 = vadd.f32 %v1709_v14, %v4750_v21  ;;  %v2042_v33 = vmul.f32 0.2, %v1977_v28 }
 0x502   :  { %v1799_v7 = vadd.f32 %v1798_v54, %v1710_v57  ;;  %v2106_v37 = vmax.f32 %v1977_v28, %v2042_v33 }
 0x503   :  { %v1889_v18 = vpop.f32.mrf.mxu0 }
 0x504   :  { %v1890_v63 = vadd.f32 %v1889_v18, %v4746_v49  ;;  %v1978_v40 = vpop.f32.mrf.mxu1  ;;  %v2041_v16 = vmul.f32 0.2, %v1799_v7 }
 0x506   :  { %v1979_v42 = vadd.f32 %v1978_v40, %v1890_v63  ;;  %v2105_v8 = vmax.f32 %v1799_v7, %v2041_v16 }
 0x507   :  { %v1711_v36 = vpop.f32.mrf.mxu2 }
 0x508   :  { %v2044_v13 = vmul.f32 0.2, %v1979_v42  ;;  %v1712_v48 = vadd.f32 %v1711_v36, %v4750_v21  ;;  %v1800_v58 = vpop.f32.mrf.mxu3 }
 0x50a   :  { %v2108_v24 = vmax.f32 %v1979_v42, %v2044_v13  ;;  %v1801_v25 = vadd.f32 %v1800_v58, %v1712_v48 }
 0x50c   :  { %v4906_v44 = vpack.c.bf16 %v2108_v24, %v2106_v37  ;;  %v2043_v60 = vmul.f32 0.2, %v1801_v25 }
 0x50e   :  { %v2107_v3 = vmax.f32 %v1801_v25, %v2043_v60 }
 0x510   :  { %v4908_v51 = vpack.c.bf16 %v2107_v3, %v2105_v8 }
 0x511   :  { %4204 = dma.done.wait [#allocation7 + $0x3], 4096 }
 0x512   :  { %4205 = vsyncadd [#allocation7 + $0x3], 4294963200  ;;  %v3707_v49 = vld [vmem:[#allocation5 + $0x70] sm:$0xf]  ;;  %v3957_v34 = vld [vmem:[#allocation5 + $0x74] sm:$0xf0] }
 0x513   :  { %v3771_v1 = vld [vmem:[#allocation5 + $0xf0] sm:$0xf]  ;;  %v3708_v20 = vor.u32 %v3957_v34, %v3707_v49  ;;  %v3973_v52 = vld [vmem:[#allocation5 + $0xf4] sm:$0xf0]  ;;  %v3956_v21 = vld [vmem:[#allocation5 + $0x74] sm:$0xf] }
 0x514   :  { %v3709_v4 = vld [vmem:[#allocation5 + $0x78] sm:$0xf0]  ;;  %v3772_v12 = vor.u32 %v3973_v52, %v3771_v1  ;;  %v3972_v31 = vld [vmem:[#allocation5 + $0xf4] sm:$0xf]  ;;  %v3699_v14 = vld [vmem:[#allocation5 + $0x60] sm:$0xf] }
 0x515   :  { %v3712_v30 = vor.u32 %v3956_v21, %v3709_v4  ;;  %v3773_v5 = vld [vmem:[#allocation5 + $0xf8] sm:$0xf0]  ;;  %2348 = vmatpush.bf16.msra.mxu2 %v3708_v20  ;;  %v3955_v28 = vld [vmem:[#allocation5 + $0x64] sm:$0xf0]  ;;  %v3763_v57 = vld [vmem:[#allocation5 + $0xe0] sm:$0xf] }
 0x516   :  { %v3776_v54 = vor.u32 %v3972_v31, %v3773_v5  ;;  %v3971_v18 = vld [vmem:[#allocation5 + $0xe4] sm:$0xf0]  ;;  %2437 = vmatpush.bf16.msra.mxu3 %v3772_v12  ;;  %v3700_v63 = vor.u32 %v3955_v28, %v3699_v14  ;;  %v3954_v33 = vld [vmem:[#allocation5 + $0x64] sm:$0xf]  ;;  %v3701_v42 = vld [vmem:[#allocation5 + $0x68] sm:$0xf0] }
 0x517   :  { %2526 = vmatpush.bf16.msrb.mxu0 %v3712_v30  ;;  %v3764_v40 = vor.u32 %v3971_v18, %v3763_v57  ;;  %v3970_v7 = vld [vmem:[#allocation5 + $0xe4] sm:$0xf]  ;;  %v3704_v13 = vor.u32 %v3954_v33, %v3701_v42  ;;  %v3765_v36 = vld [vmem:[#allocation5 + $0xe8] sm:$0xf0]  ;;  %v3691_v48 = vld [vmem:[#allocation5 + $0x50] sm:$0xf] }
 0x518   :  { %2615 = vmatpush.bf16.msrb.mxu1 %v3776_v54  ;;  %v3953_v37 = vld [vmem:[#allocation5 + $0x54] sm:$0xf0]  ;;  %v3768_v24 = vor.u32 %v3970_v7, %v3765_v36  ;;  %v3755_v58 = vld [vmem:[#allocation5 + $0xd0] sm:$0xf]  ;;  %v3952_v25 = vld [vmem:[#allocation5 + $0x54] sm:$0xf] }
 0x519   :  { %v3969_v16 = vld [vmem:[#allocation5 + $0xd4] sm:$0xf0]  ;;  %2349 = vmatpush.bf16.msra.mxu2 %v3700_v63  ;;  %v3692_v60 = vor.u32 %v3953_v37, %v3691_v48  ;;  %v3693_v8 = vld [vmem:[#allocation5 + $0x58] sm:$0xf0]  ;;  %v3968_v3 = vld [vmem:[#allocation5 + $0xd4] sm:$0xf] }
 0x51a   :  { %v3757_v49 = vld [vmem:[#allocation5 + $0xd8] sm:$0xf0]  ;;  %2438 = vmatpush.bf16.msra.mxu3 %v3764_v40  ;;  %v3756_v34 = vor.u32 %v3969_v16, %v3755_v58  ;;  %v3696_v1 = vor.u32 %v3952_v25, %v3693_v8  ;;  %v3683_v20 = vld [vmem:[#allocation5 + $0x40] sm:$0xf]  ;;  %v3951_v52 = vld [vmem:[#allocation5 + $0x44] sm:$0xf0] }
 0x51b   :  { %2527 = vmatpush.bf16.msrb.mxu0 %v3704_v13  ;;  %v3747_v21 = vld [vmem:[#allocation5 + $0xc0] sm:$0xf]  ;;  %v3760_v4 = vor.u32 %v3968_v3, %v3757_v49  ;;  %v3967_v12 = vld [vmem:[#allocation5 + $0xc4] sm:$0xf0]  ;;  %v3950_v30 = vld [vmem:[#allocation5 + $0x44] sm:$0xf]  ;;  %v3684_v54 = vor.u32 %v3951_v52, %v3683_v20 }
 0x51c   :  { %2616 = vmatpush.bf16.msrb.mxu1 %v3768_v24  ;;  %v3685_v31 = vld [vmem:[#allocation5 + $0x48] sm:$0xf0]  ;;  %v3966_v5 = vld [vmem:[#allocation5 + $0xc4] sm:$0xf]  ;;  %v3748_v28 = vor.u32 %v3967_v12, %v3747_v21  ;;  %v3675_v18 = vld [vmem:[#allocation5 + $0x30] sm:$0xf] }
 0x51d   :  { %v3749_v14 = vld [vmem:[#allocation5 + $0xc8] sm:$0xf0]  ;;  %2350 = vmatpush.bf16.msra.mxu2 %v3692_v60  ;;  %v3688_v57 = vor.u32 %v3950_v30, %v3685_v31  ;;  %v3949_v63 = vld [vmem:[#allocation5 + $0x34] sm:$0xf0]  ;;  %v3739_v40 = vld [vmem:[#allocation5 + $0xb0] sm:$0xf] }
 0x51e   :  { %2439 = vmatpush.bf16.msra.mxu3 %v3756_v34  ;;  %v3752_v33 = vor.u32 %v3966_v5, %v3749_v14  ;;  %v3965_v42 = vld [vmem:[#allocation5 + $0xb4] sm:$0xf0]  ;;  %v3948_v7 = vld [vmem:[#allocation5 + $0x34] sm:$0xf]  ;;  %v3677_v13 = vld [vmem:[#allocation5 + $0x38] sm:$0xf0]  ;;  %v3676_v37 = vor.u32 %v3949_v63, %v3675_v18 }
 0x51f   :  { %2528 = vmatpush.bf16.msrb.mxu0 %v3696_v1  ;;  %v3964_v36 = vld [vmem:[#allocation5 + $0xb4] sm:$0xf]  ;;  %v3741_v48 = vld [vmem:[#allocation5 + $0xb8] sm:$0xf0]  ;;  %v3740_v24 = vor.u32 %v3965_v42, %v3739_v40  ;;  %v3680_v58 = vor.u32 %v3948_v7, %v3677_v13  ;;  %v3667_v16 = vld [vmem:[#allocation5 + $0x20] sm:$0xf] }
 0x520   :  { %2617 = vmatpush.bf16.msrb.mxu1 %v3760_v4  ;;  %v3947_v25 = vld [vmem:[#allocation5 + $0x24] sm:$0xf0]  ;;  %v3731_v60 = vld [vmem:[#allocation5 + $0xa0] sm:$0xf]  ;;  %v3744_v8 = vor.u32 %v3964_v36, %v3741_v48  ;;  %v3946_v49 = vld [vmem:[#allocation5 + $0x24] sm:$0xf] }
 0x521   :  { %2351 = vmatpush.bf16.msra.mxu2 %v3684_v54  ;;  %v3963_v3 = vld [vmem:[#allocation5 + $0xa4] sm:$0xf0]  ;;  %v3669_v34 = vld [vmem:[#allocation5 + $0x28] sm:$0xf0]  ;;  %v3962_v1 = vld [vmem:[#allocation5 + $0xa4] sm:$0xf]  ;;  %v3668_v52 = vor.u32 %v3947_v25, %v3667_v16 }
 0x522   :  { %2440 = vmatpush.bf16.msra.mxu3 %v3748_v28  ;;  %v3733_v20 = vld [vmem:[#allocation5 + $0xa8] sm:$0xf0]  ;;  %v3732_v21 = vor.u32 %v3963_v3, %v3731_v60  ;;  %v3672_v4 = vor.u32 %v3946_v49, %v3669_v34  ;;  %v3659_v12 = vld [vmem:[#allocation5 + $0x10] sm:$0xf]  ;;  %v3945_v30 = vld [vmem:[#allocation5 + $0x14] sm:$0xf0] }
 0x523   :  { %2529 = vmatpush.bf16.msrb.mxu0 %v3688_v57  ;;  %v3723_v31 = vld [vmem:[#allocation5 + $0x90] sm:$0xf]  ;;  %v3736_v5 = vor.u32 %v3962_v1, %v3733_v20  ;;  %v3961_v14 = vld [vmem:[#allocation5 + $0x94] sm:$0xf0]  ;;  %v3944_v54 = vld [vmem:[#allocation5 + $0x14] sm:$0xf]  ;;  %v3660_v63 = vor.u32 %v3945_v30, %v3659_v12 }
 0x524   :  { %2618 = vmatpush.bf16.msrb.mxu1 %v3752_v33  ;;  %v3661_v28 = vld [vmem:[#allocation5 + $0x18] sm:$0xf0]  ;;  %v3960_v57 = vld [vmem:[#allocation5 + $0x94] sm:$0xf]  ;;  %v3724_v40 = vor.u32 %v3961_v14, %v3723_v31  ;;  %v3651_v42 = vld [vmem:[#allocation5] sm:$0xf] }
 0x525   :  { %2352 = vmatpush.bf16.msra.mxu2 %v3676_v37  ;;  %v3725_v18 = vld [vmem:[#allocation5 + $0x98] sm:$0xf0]  ;;  %v3664_v33 = vor.u32 %v3944_v54, %v3661_v28  ;;  %v3943_v7 = vld [vmem:[#allocation5 + $0x4] sm:$0xf0]  ;;  %v3715_v13 = vld [vmem:[#allocation5 + $0x80] sm:$0xf] }
 0x526   :  { %2441 = vmatpush.bf16.msra.mxu3 %v3740_v24  ;;  %v3728_v36 = vor.u32 %v3960_v57, %v3725_v18  ;;  %v3959_v48 = vld [vmem:[#allocation5 + $0x84] sm:$0xf0]  ;;  %v3942_v37 = vld [vmem:[#allocation5 + $0x4] sm:$0xf]  ;;  %v3653_v24 = vld [vmem:[#allocation5 + $0x8] sm:$0xf0]  ;;  %v3652_v25 = vor.u32 %v3943_v7, %v3651_v42 }
 0x527   :  { %2530 = vmatpush.bf16.msrb.mxu0 %v3680_v58  ;;  %v3958_v58 = vld [vmem:[#allocation5 + $0x84] sm:$0xf]  ;;  %v3717_v16 = vld [vmem:[#allocation5 + $0x88] sm:$0xf0]  ;;  %v3716_v60 = vor.u32 %v3959_v48, %v3715_v13 }
 0x528   :  { %2619 = vmatpush.bf16.msrb.mxu1 %v3744_v8  ;;  %v3656_v8 = vor.u32 %v3942_v37, %v3653_v24  ;;  %v3720_v3 = vor.u32 %v3958_v58, %v3717_v16 }
 0x529   :  { %2353 = vmatpush.bf16.msra.mxu2 %v3668_v52 }
 0x52a   :  { %2442 = vmatpush.bf16.msra.mxu3 %v3732_v21 }
 0x52b   :  { %2531 = vmatpush.bf16.msrb.mxu0 %v3672_v4 }
 0x52c   :  { %2620 = vmatpush.bf16.msrb.mxu1 %v3736_v5 }
 0x52d   :  { %2354 = vmatpush.bf16.msra.mxu2 %v3660_v63 }
 0x52e   :  { %2443 = vmatpush.bf16.msra.mxu3 %v3724_v40 }
 0x52f   :  { %2532 = vmatpush.bf16.msrb.mxu0 %v3664_v33 }
 0x530   :  { %2621 = vmatpush.bf16.msrb.mxu1 %v3728_v36 }
 0x531   :  { %2355 = vmatpush.bf16.msra.mxu2 %v3652_v25 }
 0x532   :  { %2444 = vmatpush.bf16.msra.mxu3 %v3716_v60 }
 0x533   :  { %2533 = vmatpush.bf16.msrb.mxu0 %v3656_v8 }
 0x534   :  { %2622 = vmatpush.bf16.msrb.mxu1 %v3720_v3  ;;  %2356 = vmatmul.bf16.vlgmr.msra.gmra.mxu2 %v4765_v41 }
 0x535   :  { %2445 = vmatmul.bf16.vlgmr.msra.gmra.mxu3 %v4758_v19 }
 0x536   :  { %2534 = vmatmul.bf16.vlgmr.msrb.gmra.mxu0 %v4765_v41 }
 0x537   :  { %2623 = vmatmul.bf16.vlgmr.msrb.gmra.mxu1 %v4758_v19  ;;  %v2182_v19 = vld [vmem:[#allocation11 + $0x3] ss:$8 sm:$0x3] }
 0x538   :  { %v4942_v41 = vperm.slane %v2182_v19, 1 }
 0x544   :  { %2361 = vmatmul.bf16.gmra.mxu2 %v4777_v6 }
 0x545   :  { %2450 = vmatmul.bf16.gmra.mxu3 %v4770_v39 }
 0x546   :  { %2539 = vmatmul.bf16.gmra.mxu0 %v4777_v6 }
 0x547   :  { %2628 = vmatmul.bf16.gmra.mxu1 %v4770_v39 }
 0x554   :  { %2366 = vmatmul.bf16.gmra.mxu2 %v4789_v32 }
 0x555   :  { %2455 = vmatmul.bf16.gmra.mxu3 %v4782_v56 }
 0x556   :  { %2544 = vmatmul.bf16.gmra.mxu0 %v4789_v32  ;;  %v4946_v32 = vperm.slane %v2182_v19, 0 }
 0x557   :  { %2633 = vmatmul.bf16.gmra.mxu1 %v4782_v56 }
 0x564   :  { %2371 = vmatmul.bf16.gmra.mxu2 %v4801_v38 }
 0x565   :  { %2460 = vmatmul.bf16.gmra.mxu3 %v4794_v9 }
 0x566   :  { %2549 = vmatmul.bf16.gmra.mxu0 %v4801_v38 }
 0x567   :  { %2638 = vmatmul.bf16.gmra.mxu1 %v4794_v9 }
 0x574   :  { %2376 = vmatmul.bf16.gmra.mxu2 %v4813_v61 }
 0x575   :  { %2465 = vmatmul.bf16.gmra.mxu3 %v4806_v46 }
 0x576   :  { %2554 = vmatmul.bf16.gmra.mxu0 %v4813_v61 }
 0x577   :  { %2643 = vmatmul.bf16.gmra.mxu1 %v4806_v46 }
 0x584   :  { %2381 = vmatmul.bf16.gmra.mxu2 %v4825_v11 }
 0x585   :  { %2470 = vmatmul.bf16.gmra.mxu3 %v4818_v59 }
 0x586   :  { %2559 = vmatmul.bf16.gmra.mxu0 %v4825_v11 }
 0x587   :  { %2648 = vmatmul.bf16.gmra.mxu1 %v4818_v59 }
 0x594   :  { %2386 = vmatmul.bf16.gmra.mxu2 %v4837_v62 }
 0x595   :  { %2475 = vmatmul.bf16.gmra.mxu3 %v4830_v47 }
 0x596   :  { %2564 = vmatmul.bf16.gmra.mxu0 %v4837_v62 }
 0x597   :  { %2653 = vmatmul.bf16.gmra.mxu1 %v4830_v47 }
 0x5a4   :  { %2391 = vmatmul.bf16.gmra.mxu2 %v4845_v2 }
 0x5a5   :  { %2480 = vmatmul.bf16.gmra.mxu3 %v4842_v50 }
 0x5a6   :  { %2569 = vmatmul.bf16.gmra.mxu0 %v4845_v2 }
 0x5a7   :  { %2658 = vmatmul.bf16.gmra.mxu1 %v4842_v50 }
 0x5b3   :  { %v2535_v39 = vpop.f32.mrf.mxu0 }
 0x5b4   :  { %v2536_v6 = vadd.f32 %v2535_v39, %v4942_v41  ;;  %v2624_v56 = vpop.f32.mrf.mxu1  ;;  %2396 = vmatmul.bf16.gmra.mxu2 %v4853_v10 }
 0x5b5   :  { %2485 = vmatmul.bf16.gmra.mxu3 %v4850_v27 }
 0x5b6   :  { %v2625_v9 = vadd.f32 %v2624_v56, %v2536_v6  ;;  %2574 = vmatmul.bf16.gmra.mxu0 %v4853_v10 }
 0x5b7   :  { %2663 = vmatmul.bf16.gmra.mxu1 %v4850_v27  ;;  %v2357_v38 = vpop.f32.mrf.mxu2 }
 0x5b8   :  { %v2358_v46 = vadd.f32 %v2357_v38, %v4946_v32  ;;  %v2446_v61 = vpop.f32.mrf.mxu3  ;;  %v2705_v50 = vmul.f32 0.2, %v2625_v9 }
 0x5ba   :  { %v2447_v59 = vadd.f32 %v2446_v61, %v2358_v46  ;;  %v2769_v52 = vmax.f32 %v2625_v9, %v2705_v50 }
 0x5bb   :  { %v2537_v11 = vpop.f32.mrf.mxu0 }
 0x5bc   :  { %v2538_v47 = vadd.f32 %v2537_v11, %v4942_v41  ;;  %v2626_v62 = vpop.f32.mrf.mxu1  ;;  %v2704_v21 = vmul.f32 0.2, %v2447_v59 }
 0x5be   :  { %v2627_v2 = vadd.f32 %v2626_v62, %v2538_v47  ;;  %v2768_v54 = vmax.f32 %v2447_v59, %v2704_v21 }
 0x5bf   :  { %v2359_v34 = vpop.f32.mrf.mxu2 }
 0x5c0   :  { %v2707_v49 = vmul.f32 0.2, %v2627_v2  ;;  %v2360_v1 = vadd.f32 %v2359_v34, %v4946_v32  ;;  %v2448_v20 = vpop.f32.mrf.mxu3 }
 0x5c2   :  { %v2771_v10 = vmax.f32 %v2627_v2, %v2707_v49  ;;  %v2449_v27 = vadd.f32 %v2448_v20, %v2360_v1 }
 0x5c3   :  { %v2540_v4 = vpop.f32.mrf.mxu0 }
 0x5c4   :  { %v4954_v12 = vpack.c.bf16 %v2771_v10, %v2769_v52  ;;  %v2541_v30 = vadd.f32 %v2540_v4, %v4942_v41  ;;  %v2629_v31 = vpop.f32.mrf.mxu1  ;;  %v2706_v5 = vmul.f32 0.2, %v2449_v27  ;;  %2401 = vmatmul.bf16.gmra.mxu2 %v4861_v26 }
 0x5c5   :  { %2490 = vmatmul.bf16.gmra.mxu3 %v4858_v43 }
 0x5c6   :  { %v2630_v14 = vadd.f32 %v2629_v31, %v2541_v30  ;;  %2579 = vmatmul.bf16.gmra.mxu0 %v4861_v26  ;;  %v2770_v28 = vmax.f32 %v2449_v27, %v2706_v5 }
 0x5c7   :  { %2668 = vmatmul.bf16.gmra.mxu1 %v4858_v43  ;;  %v2362_v57 = vpop.f32.mrf.mxu2 }
 0x5c8   :  { %v4961_v18 = vpack.c.bf16 %v2770_v28, %v2768_v54  ;;  %v2363_v63 = vadd.f32 %v2362_v57, %v4946_v32  ;;  %v2451_v40 = vpop.f32.mrf.mxu3  ;;  %v2709_v36 = vmul.f32 0.2, %v2630_v14 }
 0x5ca   :  { %v2452_v33 = vadd.f32 %v2451_v40, %v2363_v63  ;;  %v2773_v16 = vmax.f32 %v2630_v14, %v2709_v36 }
 0x5cb   :  { %v2542_v42 = vpop.f32.mrf.mxu0 }
 0x5cc   :  { %v2543_v7 = vadd.f32 %v2542_v42, %v4942_v41  ;;  %v2631_v13 = vpop.f32.mrf.mxu1  ;;  %v2708_v25 = vmul.f32 0.2, %v2452_v33 }
 0x5ce   :  { %v2632_v48 = vadd.f32 %v2631_v13, %v2543_v7  ;;  %v2772_v9 = vmax.f32 %v2452_v33, %v2708_v25 }
 0x5cf   :  { %v2364_v24 = vpop.f32.mrf.mxu2 }
 0x5d0   :  { %v2711_v37 = vmul.f32 0.2, %v2632_v48  ;;  %v2365_v26 = vadd.f32 %v2364_v24, %v4946_v32  ;;  %v2453_v58 = vpop.f32.mrf.mxu3 }
 0x5d2   :  { %v2775_v43 = vmax.f32 %v2632_v48, %v2711_v37  ;;  %v2454_v60 = vadd.f32 %v2453_v58, %v2365_v26 }
 0x5d3   :  { %v2545_v8 = vpop.f32.mrf.mxu0 }
 0x5d4   :  { %v4966_v3 = vpack.c.bf16 %v2775_v43, %v2773_v16  ;;  %v2546_v19 = vadd.f32 %v2545_v8, %v4942_v41  ;;  %v2634_v39 = vpop.f32.mrf.mxu1  ;;  %v2710_v6 = vmul.f32 0.2, %v2454_v60  ;;  %2406 = vmatmul.bf16.gmra.mxu2 %v4869_v55 }
 0x5d5   :  { %2495 = vmatmul.bf16.gmra.mxu3 %v4866_v23 }
 0x5d6   :  { %v2635_v56 = vadd.f32 %v2634_v39, %v2546_v19  ;;  %2584 = vmatmul.bf16.gmra.mxu0 %v4869_v55  ;;  %v2774_v38 = vmax.f32 %v2454_v60, %v2710_v6 }
 0x5d7   :  { %2673 = vmatmul.bf16.gmra.mxu1 %v4866_v23  ;;  %v2367_v46 = vpop.f32.mrf.mxu2 }
 0x5d8   :  { %v4973_v61 = vpack.c.bf16 %v2774_v38, %v2772_v9  ;;  %v2368_v59 = vadd.f32 %v2367_v46, %v4946_v32  ;;  %v2456_v11 = vpop.f32.mrf.mxu3  ;;  %v2713_v49 = vmul.f32 0.2, %v2635_v56 }
 0x5da   :  { %v2457_v47 = vadd.f32 %v2456_v11, %v2368_v59  ;;  %v2777_v10 = vmax.f32 %v2635_v56, %v2713_v49 }
 0x5db   :  { %v2547_v62 = vpop.f32.mrf.mxu0 }
 0x5dc   :  { %v2548_v50 = vadd.f32 %v2547_v62, %v4942_v41  ;;  %v2636_v2 = vpop.f32.mrf.mxu1  ;;  %v2712_v21 = vmul.f32 0.2, %v2457_v47 }
 0x5de   :  { %v2637_v34 = vadd.f32 %v2636_v2, %v2548_v50  ;;  %v2776_v28 = vmax.f32 %v2457_v47, %v2712_v21 }
 0x5df   :  { %v2369_v20 = vpop.f32.mrf.mxu2 }
 0x5e0   :  { %v2715_v1 = vmul.f32 0.2, %v2637_v34  ;;  %v2370_v55 = vadd.f32 %v2369_v20, %v4946_v32  ;;  %v2458_v52 = vpop.f32.mrf.mxu3 }
 0x5e2   :  { %v2779_v23 = vmax.f32 %v2637_v34, %v2715_v1  ;;  %v2459_v27 = vadd.f32 %v2458_v52, %v2370_v55 }
 0x5e3   :  { %v2550_v4 = vpop.f32.mrf.mxu0 }
 0x5e4   :  { %v4978_v30 = vpack.c.bf16 %v2779_v23, %v2777_v10  ;;  %v2551_v31 = vadd.f32 %v2550_v4, %v4942_v41  ;;  %v2639_v5 = vpop.f32.mrf.mxu1  ;;  %v2714_v14 = vmul.f32 0.2, %v2459_v27  ;;  %2411 = vmatmul.bf16.gmra.mxu2 %v4877_v0 }
 0x5e5   :  { %2500 = vmatmul.bf16.gmra.mxu3 %v4874_v17 }
 0x5e6   :  { %v2640_v54 = vadd.f32 %v2639_v5, %v2551_v31  ;;  %2589 = vmatmul.bf16.gmra.mxu0 %v4877_v0  ;;  %v2778_v57 = vmax.f32 %v2459_v27, %v2714_v14 }
 0x5e7   :  { %2678 = vmatmul.bf16.gmra.mxu1 %v4874_v17  ;;  %v2372_v63 = vpop.f32.mrf.mxu2 }
 0x5e8   :  { %v4985_v40 = vpack.c.bf16 %v2778_v57, %v2776_v28  ;;  %v2373_v33 = vadd.f32 %v2372_v63, %v4946_v32  ;;  %v2461_v42 = vpop.f32.mrf.mxu3  ;;  %v2717_v37 = vmul.f32 0.2, %v2640_v54 }
 0x5ea   :  { %v2462_v7 = vadd.f32 %v2461_v42, %v2373_v33  ;;  %v2781_v43 = vmax.f32 %v2640_v54, %v2717_v37 }
 0x5eb   :  { %v2552_v13 = vpop.f32.mrf.mxu0 }
 0x5ec   :  { %v2553_v36 = vadd.f32 %v2552_v13, %v4942_v41  ;;  %v2641_v48 = vpop.f32.mrf.mxu1  ;;  %v2716_v25 = vmul.f32 0.2, %v2462_v7 }
 0x5ee   :  { %v2642_v24 = vadd.f32 %v2641_v48, %v2553_v36  ;;  %v2780_v38 = vmax.f32 %v2462_v7, %v2716_v25 }
 0x5ef   :  { %v2374_v58 = vpop.f32.mrf.mxu2 }
 0x5f0   :  { %v2719_v26 = vmul.f32 0.2, %v2642_v24  ;;  %v2375_v0 = vadd.f32 %v2374_v58, %v4946_v32  ;;  %v2463_v16 = vpop.f32.mrf.mxu3 }
 0x5f2   :  { %v2783_v17 = vmax.f32 %v2642_v24, %v2719_v26  ;;  %v2464_v60 = vadd.f32 %v2463_v16, %v2375_v0 }
 0x5f3   :  { %v2555_v8 = vpop.f32.mrf.mxu0 }
 0x5f4   :  { %v4990_v19 = vpack.c.bf16 %v2783_v17, %v2781_v43  ;;  %v2556_v39 = vadd.f32 %v2555_v8, %v4942_v41  ;;  %v2644_v6 = vpop.f32.mrf.mxu1  ;;  %v2718_v56 = vmul.f32 0.2, %v2464_v60  ;;  %2416 = vmatmul.bf16.gmra.mxu2 %v4885_v45 }
 0x5f5   :  { %2505 = vmatmul.bf16.gmra.mxu3 %v4882_v35 }
 0x5f6   :  { %v2645_v9 = vadd.f32 %v2644_v6, %v2556_v39  ;;  %2594 = vmatmul.bf16.gmra.mxu0 %v4885_v45  ;;  %v2782_v46 = vmax.f32 %v2464_v60, %v2718_v56 }
 0x5f7   :  { %2683 = vmatmul.bf16.gmra.mxu1 %v4882_v35  ;;  %v2377_v59 = vpop.f32.mrf.mxu2 }
 0x5f8   :  { %v4997_v11 = vpack.c.bf16 %v2782_v46, %v2780_v38  ;;  %v2378_v47 = vadd.f32 %v2377_v59, %v4946_v32  ;;  %v2466_v62 = vpop.f32.mrf.mxu3  ;;  %v2721_v1 = vmul.f32 0.2, %v2645_v9 }
 0x5fa   :  { %v2467_v50 = vadd.f32 %v2466_v62, %v2378_v47  ;;  %v2785_v23 = vmax.f32 %v2645_v9, %v2721_v1 }
 0x5fb   :  { %v2557_v2 = vpop.f32.mrf.mxu0 }
 0x5fc   :  { %v2558_v49 = vadd.f32 %v2557_v2, %v4942_v41  ;;  %v2646_v34 = vpop.f32.mrf.mxu1  ;;  %v2720_v21 = vmul.f32 0.2, %v2467_v50 }
 0x5fe   :  { %v2647_v20 = vadd.f32 %v2646_v34, %v2558_v49  ;;  %v2784_v57 = vmax.f32 %v2467_v50, %v2720_v21 }
 0x5ff   :  { %v2379_v52 = vpop.f32.mrf.mxu2 }
 0x600   :  { %v2723_v55 = vmul.f32 0.2, %v2647_v20  ;;  %v2380_v45 = vadd.f32 %v2379_v52, %v4946_v32  ;;  %v2468_v10 = vpop.f32.mrf.mxu3 }
 0x602   :  { %v2787_v35 = vmax.f32 %v2647_v20, %v2723_v55  ;;  %v2469_v27 = vadd.f32 %v2468_v10, %v2380_v45 }
 0x603   :  { %v2560_v4 = vpop.f32.mrf.mxu0 }
 0x604   :  { %v5002_v31 = vpack.c.bf16 %v2787_v35, %v2785_v23  ;;  %v2561_v5 = vadd.f32 %v2560_v4, %v4942_v41  ;;  %v2649_v14 = vpop.f32.mrf.mxu1  ;;  %v2722_v54 = vmul.f32 0.2, %v2469_v27  ;;  %2421 = vmatmul.bf16.gmra.mxu2 %v4893_v15 }
 0x605   :  { %2510 = vmatmul.bf16.gmra.mxu3 %v4890_v29 }
 0x606   :  { %v2650_v28 = vadd.f32 %v2649_v14, %v2561_v5  ;;  %2599 = vmatmul.bf16.gmra.mxu0 %v4893_v15  ;;  %v2786_v63 = vmax.f32 %v2469_v27, %v2722_v54 }
 0x607   :  { %2688 = vmatmul.bf16.gmra.mxu1 %v4890_v29  ;;  %v2382_v33 = vpop.f32.mrf.mxu2 }
 0x608   :  { %v5009_v42 = vpack.c.bf16 %v2786_v63, %v2784_v57  ;;  %v2383_v7 = vadd.f32 %v2382_v33, %v4946_v32  ;;  %v2471_v13 = vpop.f32.mrf.mxu3  ;;  %v2725_v26 = vmul.f32 0.2, %v2650_v28 }
 0x60a   :  { %v2472_v36 = vadd.f32 %v2471_v13, %v2383_v7  ;;  %v2789_v17 = vmax.f32 %v2650_v28, %v2725_v26 }
 0x60b   :  { %v2562_v48 = vpop.f32.mrf.mxu0 }
 0x60c   :  { %v2563_v37 = vadd.f32 %v2562_v48, %v4942_v41  ;;  %v2651_v24 = vpop.f32.mrf.mxu1  ;;  %v2724_v25 = vmul.f32 0.2, %v2472_v36 }
 0x60e   :  { %v2652_v58 = vadd.f32 %v2651_v24, %v2563_v37  ;;  %v2788_v46 = vmax.f32 %v2472_v36, %v2724_v25 }
 0x60f   :  { %v2384_v16 = vpop.f32.mrf.mxu2 }
 0x610   :  { %v2727_v0 = vmul.f32 0.2, %v2652_v58  ;;  %v2385_v15 = vadd.f32 %v2384_v16, %v4946_v32  ;;  %v2473_v43 = vpop.f32.mrf.mxu3 }
 0x612   :  { %v2791_v29 = vmax.f32 %v2652_v58, %v2727_v0  ;;  %v2474_v60 = vadd.f32 %v2473_v43, %v2385_v15 }
 0x613   :  { %v2565_v8 = vpop.f32.mrf.mxu0 }
 0x614   :  { %v5014_v39 = vpack.c.bf16 %v2791_v29, %v2789_v17  ;;  %v2566_v6 = vadd.f32 %v2565_v8, %v4942_v41  ;;  %v2654_v56 = vpop.f32.mrf.mxu1  ;;  %v2726_v9 = vmul.f32 0.2, %v2474_v60  ;;  %2426 = vmatmul.bf16.gmra.mxu2 %v4901_v53 }
 0x615   :  { %2515 = vmatmul.bf16.gmra.mxu3 %v4898_v22 }
 0x616   :  { %v2655_v38 = vadd.f32 %v2654_v56, %v2566_v6  ;;  %2604 = vmatmul.bf16.gmra.mxu0 %v4901_v53  ;;  %v2790_v59 = vmax.f32 %v2474_v60, %v2726_v9 }
 0x617   :  { %2693 = vmatmul.bf16.gmra.mxu1 %v4898_v22  ;;  %v2387_v47 = vpop.f32.mrf.mxu2 }
 0x618   :  { %v5021_v62 = vpack.c.bf16 %v2790_v59, %v2788_v46  ;;  %v2388_v50 = vadd.f32 %v2387_v47, %v4946_v32  ;;  %v2476_v2 = vpop.f32.mrf.mxu3  ;;  %v2729_v55 = vmul.f32 0.2, %v2655_v38 }
 0x61a   :  { %v2477_v49 = vadd.f32 %v2476_v2, %v2388_v50  ;;  %v2793_v35 = vmax.f32 %v2655_v38, %v2729_v55 }
 0x61b   :  { %v2567_v34 = vpop.f32.mrf.mxu0 }
 0x61c   :  { %v2568_v1 = vadd.f32 %v2567_v34, %v4942_v41  ;;  %v2656_v20 = vpop.f32.mrf.mxu1  ;;  %v2728_v21 = vmul.f32 0.2, %v2477_v49 }
 0x61e   :  { %v2657_v52 = vadd.f32 %v2656_v20, %v2568_v1  ;;  %v2792_v63 = vmax.f32 %v2477_v49, %v2728_v21 }
 0x61f   :  { %v2389_v10 = vpop.f32.mrf.mxu2 }
 0x620   :  { %v2731_v45 = vmul.f32 0.2, %v2657_v52  ;;  %v2390_v53 = vadd.f32 %v2389_v10, %v4946_v32  ;;  %v2478_v23 = vpop.f32.mrf.mxu3 }
 0x622   :  { %v2795_v22 = vmax.f32 %v2657_v52, %v2731_v45  ;;  %v2479_v27 = vadd.f32 %v2478_v23, %v2390_v53 }
 0x623   :  { %v2570_v4 = vpop.f32.mrf.mxu0 }
 0x624   :  { %v5026_v5 = vpack.c.bf16 %v2795_v22, %v2793_v35  ;;  %v2571_v14 = vadd.f32 %v2570_v4, %v4942_v41  ;;  %v2659_v54 = vpop.f32.mrf.mxu1  ;;  %v2730_v28 = vmul.f32 0.2, %v2479_v27  ;;  %2431 = vmatmul.bf16.gmra.mxu2 %v4908_v51 }
 0x625   :  { %2520 = vmatmul.bf16.gmra.mxu3 %v4906_v44 }
 0x626   :  { %v2660_v57 = vadd.f32 %v2659_v54, %v2571_v14  ;;  %2609 = vmatmul.bf16.gmra.mxu0 %v4908_v51  ;;  %v2794_v33 = vmax.f32 %v2479_v27, %v2730_v28 }
 0x627   :  { %2698 = vmatmul.bf16.gmra.mxu1 %v4906_v44  ;;  %v2392_v7 = vpop.f32.mrf.mxu2 }
 0x628   :  { %v5033_v13 = vpack.c.bf16 %v2794_v33, %v2792_v63  ;;  %v2393_v36 = vadd.f32 %v2392_v7, %v4946_v32  ;;  %v2481_v48 = vpop.f32.mrf.mxu3  ;;  %v2733_v0 = vmul.f32 0.2, %v2660_v57 }
 0x62a   :  { %v2482_v37 = vadd.f32 %v2481_v48, %v2393_v36  ;;  %v2797_v29 = vmax.f32 %v2660_v57, %v2733_v0 }
 0x62b   :  { %v2572_v24 = vpop.f32.mrf.mxu0 }
 0x62c   :  { %v2573_v26 = vadd.f32 %v2572_v24, %v4942_v41  ;;  %v2661_v58 = vpop.f32.mrf.mxu1  ;;  %v2732_v25 = vmul.f32 0.2, %v2482_v37 }
 0x62e   :  { %v2662_v16 = vadd.f32 %v2661_v58, %v2573_v26  ;;  %v2796_v59 = vmax.f32 %v2482_v37, %v2732_v25 }
 0x62f   :  { %v2394_v43 = vpop.f32.mrf.mxu2 }
 0x630   :  { %v2735_v15 = vmul.f32 0.2, %v2662_v16  ;;  %v2395_v51 = vadd.f32 %v2394_v43, %v4946_v32  ;;  %v2483_v17 = vpop.f32.mrf.mxu3 }
 0x632   :  { %v2799_v44 = vmax.f32 %v2662_v16, %v2735_v15  ;;  %v2484_v60 = vadd.f32 %v2483_v17, %v2395_v51 }
 0x633   :  { %v2575_v8 = vpop.f32.mrf.mxu0 }
 0x634   :  { %v5038_v6 = vpack.c.bf16 %v2799_v44, %v2797_v29  ;;  %v2576_v56 = vadd.f32 %v2575_v8, %v4942_v41  ;;  %v2664_v9 = vpop.f32.mrf.mxu1  ;;  %v2734_v38 = vmul.f32 0.2, %v2484_v60 }
 0x636   :  { %v2665_v46 = vadd.f32 %v2664_v9, %v2576_v56  ;;  %v2798_v47 = vmax.f32 %v2484_v60, %v2734_v38 }
 0x637   :  { %v2397_v50 = vpop.f32.mrf.mxu2 }
 0x638   :  { %v5041_v2 = vpack.c.bf16 %v2798_v47, %v2796_v59  ;;  %v2398_v49 = vadd.f32 %v2397_v50, %v4946_v32  ;;  %v2486_v34 = vpop.f32.mrf.mxu3  ;;  %v2737_v45 = vmul.f32 0.2, %v2665_v46 }
 0x63a   :  { %v2487_v1 = vadd.f32 %v2486_v34, %v2398_v49  ;;  %v2801_v21 = vmax.f32 %v2665_v46, %v2737_v45 }
 0x63b   :  { %v2577_v20 = vpop.f32.mrf.mxu0 }
 0x63c   :  { %v2578_v55 = vadd.f32 %v2577_v20, %v4942_v41  ;;  %v2666_v52 = vpop.f32.mrf.mxu1  ;;  %v2736_v4 = vmul.f32 0.2, %v2487_v1 }
 0x63e   :  { %v2667_v10 = vadd.f32 %v2666_v52, %v2578_v55  ;;  %v2800_v36 = vmax.f32 %v2487_v1, %v2736_v4 }
 0x63f   :  { %v2399_v23 = vpop.f32.mrf.mxu2 }
 0x640   :  { %v2739_v53 = vmul.f32 0.2, %v2667_v10  ;;  %v2400_v35 = vadd.f32 %v2399_v23, %v4946_v32  ;;  %v2488_v22 = vpop.f32.mrf.mxu3 }
 0x642   :  { %v2803_v27 = vmax.f32 %v2667_v10, %v2739_v53  ;;  %v2489_v14 = vadd.f32 %v2488_v22, %v2400_v35 }
 0x643   :  { %v2580_v54 = vpop.f32.mrf.mxu0 }
 0x644   :  { %v5046_v28 = vpack.c.bf16 %v2803_v27, %v2801_v21  ;;  %v2581_v57 = vadd.f32 %v2580_v54, %v4942_v41  ;;  %v2669_v63 = vpop.f32.mrf.mxu1  ;;  %v2738_v33 = vmul.f32 0.2, %v2489_v14 }
 0x646   :  { %v2670_v7 = vadd.f32 %v2669_v63, %v2581_v57  ;;  %v2802_v48 = vmax.f32 %v2489_v14, %v2738_v33 }
 0x647   :  { %v2402_v37 = vpop.f32.mrf.mxu2 }
 0x648   :  { %v5049_v24 = vpack.c.bf16 %v2802_v48, %v2800_v36  ;;  %v2403_v26 = vadd.f32 %v2402_v37, %v4946_v32  ;;  %v2491_v58 = vpop.f32.mrf.mxu3  ;;  %v2741_v51 = vmul.f32 0.2, %v2670_v7 }
 0x64a   :  { %v2492_v0 = vadd.f32 %v2491_v58, %v2403_v26  ;;  %v2805_v8 = vmax.f32 %v2670_v7, %v2741_v51 }
 0x64b   :  { %v2582_v16 = vpop.f32.mrf.mxu0 }
 0x64c   :  { %v2583_v15 = vadd.f32 %v2582_v16, %v4942_v41  ;;  %v2671_v43 = vpop.f32.mrf.mxu1  ;;  %v2740_v9 = vmul.f32 0.2, %v2492_v0 }
 0x64e   :  { %v2672_v17 = vadd.f32 %v2671_v43, %v2583_v15  ;;  %v2804_v1 = vmax.f32 %v2492_v0, %v2740_v9 }
 0x64f   :  { %v2404_v44 = vpop.f32.mrf.mxu2 }
 0x650   :  { %v2743_v29 = vmul.f32 0.2, %v2672_v17  ;;  %v2405_v25 = vadd.f32 %v2404_v44, %v4946_v32  ;;  %v2493_v60 = vpop.f32.mrf.mxu3 }
 0x652   :  { %v2807_v56 = vmax.f32 %v2672_v17, %v2743_v29  ;;  %v2494_v38 = vadd.f32 %v2493_v60, %v2405_v25 }
 0x653   :  { %v2585_v46 = vpop.f32.mrf.mxu0 }
 0x654   :  { %v5054_v59 = vpack.c.bf16 %v2807_v56, %v2805_v8  ;;  %v2586_v47 = vadd.f32 %v2585_v46, %v4942_v41  ;;  %v2674_v50 = vpop.f32.mrf.mxu1  ;;  %v2742_v49 = vmul.f32 0.2, %v2494_v38 }
 0x656   :  { %v2675_v34 = vadd.f32 %v2674_v50, %v2586_v47  ;;  %v2806_v20 = vmax.f32 %v2494_v38, %v2742_v49 }
 0x657   :  { %v2407_v55 = vpop.f32.mrf.mxu2 }
 0x658   :  { %v5057_v52 = vpack.c.bf16 %v2806_v20, %v2804_v1  ;;  %v2408_v45 = vadd.f32 %v2407_v55, %v4946_v32  ;;  %v2496_v10 = vpop.f32.mrf.mxu3  ;;  %v2745_v21 = vmul.f32 0.2, %v2675_v34 }
 0x65a   :  { %v2497_v53 = vadd.f32 %v2496_v10, %v2408_v45  ;;  %v2809_v63 = vmax.f32 %v2675_v34, %v2745_v21 }
 0x65b   :  { %v2587_v23 = vpop.f32.mrf.mxu0 }
 0x65c   :  { %v2588_v35 = vadd.f32 %v2587_v23, %v4942_v41  ;;  %v2676_v22 = vpop.f32.mrf.mxu1  ;;  %v2744_v7 = vmul.f32 0.2, %v2497_v53 }
 0x65e   :  { %v2677_v27 = vadd.f32 %v2676_v22, %v2588_v35  ;;  %v2808_v15 = vmax.f32 %v2497_v53, %v2744_v7 }
 0x65f   :  { %v2409_v14 = vpop.f32.mrf.mxu2 }
 0x660   :  { %v2747_v4 = vmul.f32 0.2, %v2677_v27  ;;  %v2410_v54 = vadd.f32 %v2409_v14, %v4946_v32  ;;  %v2498_v57 = vpop.f32.mrf.mxu3 }
 0x662   :  { %v2811_v33 = vmax.f32 %v2677_v27, %v2747_v4  ;;  %v2499_v36 = vadd.f32 %v2498_v57, %v2410_v54 }
 0x663   :  { %v2590_v48 = vpop.f32.mrf.mxu0 }
 0x664   :  { %v5062_v37 = vpack.c.bf16 %v2811_v33, %v2809_v63  ;;  %v2591_v26 = vadd.f32 %v2590_v48, %v4942_v41  ;;  %v2679_v58 = vpop.f32.mrf.mxu1  ;;  %v2746_v0 = vmul.f32 0.2, %v2499_v36 }
 0x666   :  { %v2680_v16 = vadd.f32 %v2679_v58, %v2591_v26  ;;  %v2810_v43 = vmax.f32 %v2499_v36, %v2746_v0 }
 0x667   :  { %v2412_v51 = vpop.f32.mrf.mxu2 }
 0x668   :  { %v5065_v17 = vpack.c.bf16 %v2810_v43, %v2808_v15  ;;  %v2413_v29 = vadd.f32 %v2412_v51, %v4946_v32  ;;  %v2501_v44 = vpop.f32.mrf.mxu3  ;;  %v2749_v9 = vmul.f32 0.2, %v2680_v16 }
 0x66a   :  { %v2502_v25 = vadd.f32 %v2501_v44, %v2413_v29  ;;  %v2813_v34 = vmax.f32 %v2680_v16, %v2749_v9 }
 0x66b   :  { %v2592_v60 = vpop.f32.mrf.mxu0 }
 0x66c   :  { %v2593_v8 = vadd.f32 %v2592_v60, %v4942_v41  ;;  %v2681_v56 = vpop.f32.mrf.mxu1  ;;  %v2748_v20 = vmul.f32 0.2, %v2502_v25 }
 0x66e   :  { %v2682_v38 = vadd.f32 %v2681_v56, %v2593_v8  ;;  %v2812_v22 = vmax.f32 %v2502_v25, %v2748_v20 }
 0x66f   :  { %v2414_v47 = vpop.f32.mrf.mxu2 }
 0x670   :  { %v2751_v46 = vmul.f32 0.2, %v2682_v38  ;;  %v2415_v50 = vadd.f32 %v2414_v47, %v4946_v32  ;;  %v2503_v49 = vpop.f32.mrf.mxu3 }
 0x672   :  { %v2815_v1 = vmax.f32 %v2682_v38, %v2751_v46  ;;  %v2504_v55 = vadd.f32 %v2503_v49, %v2415_v50 }
 0x673   :  { %v2595_v45 = vpop.f32.mrf.mxu0 }
 0x674   :  { %v5070_v10 = vpack.c.bf16 %v2815_v1, %v2813_v34  ;;  %v2684_v53 = vpop.f32.mrf.mxu1  ;;  %v2750_v23 = vmul.f32 0.2, %v2504_v55  ;;  %v2596_v35 = vadd.f32 %v2595_v45, %v4942_v41 }
 0x676   :  { %v2814_v21 = vmax.f32 %v2504_v55, %v2750_v23  ;;  %v2685_v54 = vadd.f32 %v2684_v53, %v2596_v35 }
 0x677   :  { %v2417_v27 = vpop.f32.mrf.mxu2 }
 0x678   :  { %v5073_v4 = vpack.c.bf16 %v2814_v21, %v2812_v22  ;;  %v2506_v14 = vpop.f32.mrf.mxu3  ;;  %v2418_v57 = vadd.f32 %v2417_v27, %v4946_v32  ;;  %v2753_v36 = vmul.f32 0.2, %v2685_v54 }
 0x67a   :  { %v2507_v26 = vadd.f32 %v2506_v14, %v2418_v57  ;;  %v2817_v43 = vmax.f32 %v2685_v54, %v2753_v36 }
 0x67b   :  { %v2597_v63 = vpop.f32.mrf.mxu0 }
 0x67c   :  { %v2598_v33 = vadd.f32 %v2597_v63, %v4942_v41  ;;  %v2686_v7 = vpop.f32.mrf.mxu1  ;;  %v2752_v29 = vmul.f32 0.2, %v2507_v26 }
 0x67e   :  { %v2687_v48 = vadd.f32 %v2686_v7, %v2598_v33  ;;  %v2816_v38 = vmax.f32 %v2507_v26, %v2752_v29 }
 0x67f   :  { %v2419_v0 = vpop.f32.mrf.mxu2 }
 0x680   :  { %v2755_v58 = vmul.f32 0.2, %v2687_v48  ;;  %v2420_v16 = vadd.f32 %v2419_v0, %v4946_v32  ;;  %v2508_v15 = vpop.f32.mrf.mxu3 }
 0x682   :  { %v2819_v51 = vmax.f32 %v2687_v48, %v2755_v58  ;;  %v2509_v44 = vadd.f32 %v2508_v15, %v2420_v16 }
 0x683   :  { %v2600_v25 = vpop.f32.mrf.mxu0 }
 0x684   :  { %v5078_v60 = vpack.c.bf16 %v2819_v51, %v2817_v43  ;;  %v2689_v8 = vpop.f32.mrf.mxu1  ;;  %v2754_v56 = vmul.f32 0.2, %v2509_v44  ;;  %v2601_v9 = vadd.f32 %v2600_v25, %v4942_v41 }
 0x686   :  { %v2818_v46 = vmax.f32 %v2509_v44, %v2754_v56  ;;  %v2690_v34 = vadd.f32 %v2689_v8, %v2601_v9 }
 0x687   :  { %v2422_v47 = vpop.f32.mrf.mxu2 }
 0x688   :  { %v5081_v50 = vpack.c.bf16 %v2818_v46, %v2816_v38  ;;  %v2511_v49 = vpop.f32.mrf.mxu3  ;;  %v2423_v1 = vadd.f32 %v2422_v47, %v4946_v32  ;;  %v2757_v53 = vmul.f32 0.2, %v2690_v34 }
 0x68a   :  { %v2512_v35 = vadd.f32 %v2511_v49, %v2423_v1  ;;  %v2821_v54 = vmax.f32 %v2690_v34, %v2757_v53 }
 0x68b   :  { %v2602_v20 = vpop.f32.mrf.mxu0 }
 0x68c   :  { %v2603_v55 = vadd.f32 %v2602_v20, %v4942_v41  ;;  %v2691_v45 = vpop.f32.mrf.mxu1  ;;  %v2756_v63 = vmul.f32 0.2, %v2512_v35 }
 0x68e   :  { %v2692_v23 = vadd.f32 %v2691_v45, %v2603_v55  ;;  %v2820_v0 = vmax.f32 %v2512_v35, %v2756_v63 }
 0x68f   :  { %v2424_v21 = vpop.f32.mrf.mxu2 }
 0x690   :  { %v2759_v22 = vmul.f32 0.2, %v2692_v23  ;;  %v2425_v27 = vadd.f32 %v2424_v21, %v4946_v32  ;;  %v2513_v14 = vpop.f32.mrf.mxu3 }
 0x692   :  { %v2823_v57 = vmax.f32 %v2692_v23, %v2759_v22  ;;  %v2514_v33 = vadd.f32 %v2513_v14, %v2425_v27 }
 0x693   :  { %v2605_v7 = vpop.f32.mrf.mxu0 }
 0x694   :  { %v5086_v36 = vpack.c.bf16 %v2823_v57, %v2821_v54  ;;  %v2694_v48 = vpop.f32.mrf.mxu1  ;;  %v2758_v26 = vmul.f32 0.2, %v2514_v33  ;;  %v2606_v58 = vadd.f32 %v2605_v7, %v4942_v41 }
 0x696   :  { %v2822_v16 = vmax.f32 %v2514_v33, %v2758_v26  ;;  %v2695_v29 = vadd.f32 %v2694_v48, %v2606_v58 }
 0x697   :  { %v2427_v15 = vpop.f32.mrf.mxu2 }
 0x698   :  { %v5089_v43 = vpack.c.bf16 %v2822_v16, %v2820_v0  ;;  %v2516_v51 = vpop.f32.mrf.mxu3  ;;  %v2428_v44 = vadd.f32 %v2427_v15, %v4946_v32  ;;  %v2761_v9 = vmul.f32 0.2, %v2695_v29 }
 0x69a   :  { %v2517_v46 = vadd.f32 %v2516_v51, %v2428_v44  ;;  %v2825_v20 = vmax.f32 %v2695_v29, %v2761_v9 }
 0x69b   :  { %v2607_v25 = vpop.f32.mrf.mxu0 }
 0x69c   :  { %v2608_v8 = vadd.f32 %v2607_v25, %v4942_v41  ;;  %v2696_v56 = vpop.f32.mrf.mxu1  ;;  %v2760_v45 = vmul.f32 0.2, %v2517_v46 }
 0x69e   :  { %v2697_v38 = vadd.f32 %v2696_v56, %v2608_v8  ;;  %v2824_v14 = vmax.f32 %v2517_v46, %v2760_v45 }
 0x69f   :  { %v2429_v49 = vpop.f32.mrf.mxu2 }
 0x6a0   :  { %v2763_v47 = vmul.f32 0.2, %v2697_v38  ;;  %v2430_v34 = vadd.f32 %v2429_v49, %v4946_v32  ;;  %v2518_v1 = vpop.f32.mrf.mxu3 }
 0x6a2   :  { %v2827_v55 = vmax.f32 %v2697_v38, %v2763_v47  ;;  %v2519_v53 = vadd.f32 %v2518_v1, %v2430_v34 }
 0x6a3   :  { %v2610_v23 = vpop.f32.mrf.mxu0 }
 0x6a4   :  { %v5094_v35 = vpack.c.bf16 %v2827_v55, %v2825_v20  ;;  %v2699_v22 = vpop.f32.mrf.mxu1  ;;  %v2762_v21 = vmul.f32 0.2, %v2519_v53  ;;  %v2611_v27 = vadd.f32 %v2610_v23, %v4942_v41 }
 0x6a6   :  { %v2826_v54 = vmax.f32 %v2519_v53, %v2762_v21  ;;  %v2700_v7 = vadd.f32 %v2699_v22, %v2611_v27 }
 0x6a7   :  { %v2432_v57 = vpop.f32.mrf.mxu2 }
 0x6a8   :  { %v5097_v63 = vpack.c.bf16 %v2826_v54, %v2824_v14  ;;  %v2521_v33 = vpop.f32.mrf.mxu3  ;;  %v2433_v48 = vadd.f32 %v2432_v57, %v4946_v32  ;;  %v2765_v16 = vmul.f32 0.2, %v2700_v7 }
 0x6aa   :  { %v2522_v51 = vadd.f32 %v2521_v33, %v2433_v48  ;;  %v2829_v8 = vmax.f32 %v2700_v7, %v2765_v16 }
 0x6ab   :  { %v2612_v26 = vpop.f32.mrf.mxu0 }
 0x6ac   :  { %v2613_v58 = vadd.f32 %v2612_v26, %v4942_v41  ;;  %v2701_v0 = vpop.f32.mrf.mxu1  ;;  %v2764_v38 = vmul.f32 0.2, %v2522_v51 }
 0x6ae   :  { %v2702_v15 = vadd.f32 %v2701_v0, %v2613_v58  ;;  %v2828_v34 = vmax.f32 %v2522_v51, %v2764_v38 }
 0x6af   :  { %v2434_v44 = vpop.f32.mrf.mxu2 }
 0x6b0   :  { %v2767_v29 = vmul.f32 0.2, %v2702_v15  ;;  %v2435_v25 = vadd.f32 %v2434_v44, %v4946_v32  ;;  %v2523_v9 = vpop.f32.mrf.mxu3 }
 0x6b2   :  { %v2831_v56 = vmax.f32 %v2702_v15, %v2767_v29  ;;  %v2524_v46 = vadd.f32 %v2523_v9, %v2435_v25 }
 0x6b4   :  { %v5102_v47 = vpack.c.bf16 %v2831_v56, %v2829_v8  ;;  %v2766_v49 = vmul.f32 0.2, %v2524_v46 }
 0x6b6   :  { %v2830_v1 = vmax.f32 %v2524_v46, %v2766_v49 }
 0x6b8   :  { %v5104_v20 = vpack.c.bf16 %v2830_v1, %v2828_v34 }
 0x6b9   :  { %4206 = dma.done.wait [#allocation7 + $0x4], 2048 }
 0x6ba   :  { %4207 = vsyncadd [#allocation7 + $0x4], 4294965248  ;;  %v3981_v41 = vld [vmem:[#allocation6 + $0x38] sm:$0xff]  ;;  %v3980_v45 = vld [vmem:[#allocation6 + $0x30] sm:$0xff]  ;;  %s4219_s5 = smov [#allocation13]   ;;  %s3217_s13 = sshll.u32 %s5182_s7, 4  ;;  %s3218_s13 = int_to_ptr.hbm [resolvable:$true] %s3217_s13 }
 0x6bb   :  { %v3989_v55 = vld [vmem:[#allocation6 + $0x78] sm:$0xff]  ;;  %3001 = vmatpush.bf16.msrb.mxu2 %v3981_v41  ;;  %v3988_v32 = vld [vmem:[#allocation6 + $0x70] sm:$0xff]  ;;  %v3979_v53 = vld [vmem:[#allocation6 + $0x28] sm:$0xff]  ;;  %s3215_s6 = sshll.u32 %s4219_s5, 4  ;;  %s4220_s14 = smov 128   ;;  %s3216_s6 = int_to_ptr.vmem [resolvable:$true] %s3215_s6 }
 0x6bc   :  { %3090 = vmatpush.bf16.msrb.mxu3 %v3989_v55  ;;  %v3987_v23 = vld [vmem:[#allocation6 + $0x68] sm:$0xff]  ;;  %v3978_v22 = vld [vmem:[#allocation6 + $0x20] sm:$0xff]  ;;  %v3977_v27 = vld [vmem:[#allocation6 + $0x18] sm:$0xff]  ;;  %s4221_s15 = smov 8  }
 0x6bd   :  { %v3986_v21 = vld [vmem:[#allocation6 + $0x60] sm:$0xff]  ;;  %v3985_v14 = vld [vmem:[#allocation6 + $0x58] sm:$0xff]  ;;  %v3976_v54 = vld [vmem:[#allocation6 + $0x10] sm:$0xff] }
 0x6be   :  { %v3984_v57 = vld [vmem:[#allocation6 + $0x50] sm:$0xff]  ;;  %v3975_v33 = vld [vmem:[#allocation6 + $0x8] sm:$0xff]  ;;  %v3974_v48 = vld [vmem:[#allocation6] sm:$0xff] }
 0x6bf   :  { %3002 = vmatpush.bf16.msrb.mxu2 %v3980_v45  ;;  %v3983_v7 = vld [vmem:[#allocation6 + $0x48] sm:$0xff]  ;;  %v3982_v26 = vld [vmem:[#allocation6 + $0x40] sm:$0xff] }
 0x6c0   :  { %3091 = vmatpush.bf16.msrb.mxu3 %v3988_v32 }
 0x6c3   :  { %3003 = vmatpush.bf16.msrb.mxu2 %v3979_v53 }
 0x6c4   :  { %3092 = vmatpush.bf16.msrb.mxu3 %v3987_v23 }
 0x6c7   :  { %3004 = vmatpush.bf16.msrb.mxu2 %v3978_v22 }
 0x6c8   :  { %3093 = vmatpush.bf16.msrb.mxu3 %v3986_v21 }
 0x6cb   :  { %3005 = vmatpush.bf16.msrb.mxu2 %v3977_v27 }
 0x6cc   :  { %3094 = vmatpush.bf16.msrb.mxu3 %v3985_v14 }
 0x6cf   :  { %3006 = vmatpush.bf16.msrb.mxu2 %v3976_v54 }
 0x6d0   :  { %3095 = vmatpush.bf16.msrb.mxu3 %v3984_v57 }
 0x6d3   :  { %3007 = vmatpush.bf16.msrb.mxu2 %v3975_v33 }
 0x6d4   :  { %3096 = vmatpush.bf16.msrb.mxu3 %v3983_v7 }
 0x6d7   :  { %3008 = vmatpush.bf16.msrb.mxu2 %v3974_v48 }
 0x6d8   :  { %3097 = vmatpush.bf16.msrb.mxu3 %v3982_v26 }
 0x6da   :  { %3009 = vmatmul.bf16.vlgmr.msrb.gmra.mxu2 %v4961_v18 }
 0x6db   :  { %3098 = vmatmul.bf16.vlgmr.msrb.gmra.mxu3 %v4954_v12  ;;  %v5124_v12 = vld [vmem:[#allocation11 + $0x4] ss:$0 sm:$0xff] }
 0x6ea   :  { %3014 = vmatmul.bf16.gmra.mxu2 %v4973_v61 }
 0x6eb   :  { %3103 = vmatmul.bf16.gmra.mxu3 %v4966_v3 }
 0x6fa   :  { %3019 = vmatmul.bf16.gmra.mxu2 %v4985_v40 }
 0x6fb   :  { %3108 = vmatmul.bf16.gmra.mxu3 %v4978_v30 }
 0x70a   :  { %3024 = vmatmul.bf16.gmra.mxu2 %v4997_v11 }
 0x70b   :  { %3113 = vmatmul.bf16.gmra.mxu3 %v4990_v19 }
 0x71a   :  { %3029 = vmatmul.bf16.gmra.mxu2 %v5009_v42 }
 0x71b   :  { %3118 = vmatmul.bf16.gmra.mxu3 %v5002_v31 }
 0x72a   :  { %3034 = vmatmul.bf16.gmra.mxu2 %v5021_v62 }
 0x72b   :  { %3123 = vmatmul.bf16.gmra.mxu3 %v5014_v39 }
 0x73a   :  { %3039 = vmatmul.bf16.gmra.mxu2 %v5033_v13 }
 0x73b   :  { %3128 = vmatmul.bf16.gmra.mxu3 %v5026_v5 }
 0x74a   :  { %3044 = vmatmul.bf16.gmra.mxu2 %v5041_v2 }
 0x74b   :  { %3133 = vmatmul.bf16.gmra.mxu3 %v5038_v6 }
 0x75a   :  { %3049 = vmatmul.bf16.gmra.mxu2 %v5049_v24 }
 0x75b   :  { %3138 = vmatmul.bf16.gmra.mxu3 %v5046_v28 }
 0x75d   :  { %v3010_v18 = vpop.f32.mrf.mxu2 }
 0x75e   :  { %v3099_v3 = vpop.f32.mrf.mxu3  ;;  %v3011_v61 = vadd.f32 %v3010_v18, %v5124_v12 }
 0x760   :  { %v3100_v30 = vadd.f32 %v3099_v3, %v3011_v61 }
 0x762   :  { %3179 = vst [vmem:[#allocation13] sm:$0xff] %v3100_v30 }
 0x765   :  { %v3012_v40 = vpop.f32.mrf.mxu2 }
 0x766   :  { %v3101_v19 = vpop.f32.mrf.mxu3  ;;  %v3013_v11 = vadd.f32 %v3012_v40, %v5124_v12 }
 0x768   :  { %v3102_v31 = vadd.f32 %v3101_v19, %v3013_v11 }
 0x76a   :  { %3180 = vst [vmem:[#allocation13 + $0x8] sm:$0xff] %v3102_v31  ;;  %3054 = vmatmul.bf16.gmra.mxu2 %v5057_v52 }
 0x76b   :  { %3143 = vmatmul.bf16.gmra.mxu3 %v5054_v59 }
 0x76d   :  { %v3015_v42 = vpop.f32.mrf.mxu2 }
 0x76e   :  { %v3104_v39 = vpop.f32.mrf.mxu3  ;;  %v3016_v62 = vadd.f32 %v3015_v42, %v5124_v12 }
 0x770   :  { %v3105_v5 = vadd.f32 %v3104_v39, %v3016_v62 }
 0x772   :  { %3181 = vst [vmem:[#allocation13 + $0x10] sm:$0xff] %v3105_v5 }
 0x775   :  { %v3017_v13 = vpop.f32.mrf.mxu2 }
 0x776   :  { %v3106_v6 = vpop.f32.mrf.mxu3  ;;  %v3018_v2 = vadd.f32 %v3017_v13, %v5124_v12 }
 0x778   :  { %v3107_v28 = vadd.f32 %v3106_v6, %v3018_v2 }
 0x77a   :  { %3182 = vst [vmem:[#allocation13 + $0x18] sm:$0xff] %v3107_v28  ;;  %3059 = vmatmul.bf16.gmra.mxu2 %v5065_v17 }
 0x77b   :  { %3148 = vmatmul.bf16.gmra.mxu3 %v5062_v37 }
 0x77d   :  { %v3020_v24 = vpop.f32.mrf.mxu2 }
 0x77e   :  { %v3109_v52 = vpop.f32.mrf.mxu3  ;;  %v3021_v59 = vadd.f32 %v3020_v24, %v5124_v12 }
 0x780   :  { %v3110_v58 = vadd.f32 %v3109_v52, %v3021_v59 }
 0x782   :  { %3183 = vst [vmem:[#allocation13 + $0x20] sm:$0xff] %v3110_v58 }
 0x785   :  { %v3022_v0 = vpop.f32.mrf.mxu2 }
 0x786   :  { %v3111_v16 = vpop.f32.mrf.mxu3  ;;  %v3023_v15 = vadd.f32 %v3022_v0, %v5124_v12 }
 0x788   :  { %v3112_v51 = vadd.f32 %v3111_v16, %v3023_v15 }
 0x78a   :  { %3184 = vst [vmem:[#allocation13 + $0x28] sm:$0xff] %v3112_v51  ;;  %3064 = vmatmul.bf16.gmra.mxu2 %v5073_v4 }
 0x78b   :  { %3153 = vmatmul.bf16.gmra.mxu3 %v5070_v10 }
 0x78d   :  { %v3025_v29 = vpop.f32.mrf.mxu2 }
 0x78e   :  { %v3114_v17 = vpop.f32.mrf.mxu3  ;;  %v3026_v37 = vadd.f32 %v3025_v29, %v5124_v12 }
 0x790   :  { %v3115_v44 = vadd.f32 %v3114_v17, %v3026_v37 }
 0x792   :  { %3185 = vst [vmem:[#allocation13 + $0x30] sm:$0xff] %v3115_v44 }
 0x795   :  { %v3027_v25 = vpop.f32.mrf.mxu2 }
 0x796   :  { %v3116_v8 = vpop.f32.mrf.mxu3  ;;  %v3028_v56 = vadd.f32 %v3027_v25, %v5124_v12 }
 0x798   :  { %v3117_v9 = vadd.f32 %v3116_v8, %v3028_v56 }
 0x79a   :  { %3186 = vst [vmem:[#allocation13 + $0x38] sm:$0xff] %v3117_v9  ;;  %3069 = vmatmul.bf16.gmra.mxu2 %v5081_v50 }
 0x79b   :  { %3158 = vmatmul.bf16.gmra.mxu3 %v5078_v60 }
 0x79d   :  { %v3030_v38 = vpop.f32.mrf.mxu2 }
 0x79e   :  { %v3119_v4 = vpop.f32.mrf.mxu3  ;;  %v3031_v10 = vadd.f32 %v3030_v38, %v5124_v12 }
 0x7a0   :  { %v3120_v46 = vadd.f32 %v3119_v4, %v3031_v10 }
 0x7a2   :  { %3187 = vst [vmem:[#allocation13 + $0x40] sm:$0xff] %v3120_v46 }
 0x7a5   :  { %v3032_v49 = vpop.f32.mrf.mxu2 }
 0x7a6   :  { %v3121_v34 = vpop.f32.mrf.mxu3  ;;  %v3033_v1 = vadd.f32 %v3032_v49, %v5124_v12 }
 0x7a8   :  { %v3122_v41 = vadd.f32 %v3121_v34, %v3033_v1 }
 0x7aa   :  { %3188 = vst [vmem:[#allocation13 + $0x48] sm:$0xff] %v3122_v41  ;;  %3074 = vmatmul.bf16.gmra.mxu2 %v5089_v43 }
 0x7ab   :  { %3163 = vmatmul.bf16.gmra.mxu3 %v5086_v36 }
 0x7ad   :  { %v3035_v55 = vpop.f32.mrf.mxu2 }
 0x7ae   :  { %v3124_v50 = vpop.f32.mrf.mxu3  ;;  %v3036_v60 = vadd.f32 %v3035_v55, %v5124_v12 }
 0x7b0   :  { %v3125_v45 = vadd.f32 %v3124_v50, %v3036_v60 }
 0x7b2   :  { %3189 = vst [vmem:[#allocation13 + $0x50] sm:$0xff] %v3125_v45 }
 0x7b5   :  { %v3037_v32 = vpop.f32.mrf.mxu2 }
 0x7b6   :  { %v3126_v53 = vpop.f32.mrf.mxu3  ;;  %v3038_v23 = vadd.f32 %v3037_v32, %v5124_v12 }
 0x7b8   :  { %v3127_v22 = vadd.f32 %v3126_v53, %v3038_v23 }
 0x7ba   :  { %3190 = vst [vmem:[#allocation13 + $0x58] sm:$0xff] %v3127_v22  ;;  %3079 = vmatmul.bf16.gmra.mxu2 %v5097_v63 }
 0x7bb   :  { %3168 = vmatmul.bf16.gmra.mxu3 %v5094_v35 }
 0x7bd   :  { %v3040_v21 = vpop.f32.mrf.mxu2 }
 0x7be   :  { %v3129_v43 = vpop.f32.mrf.mxu3  ;;  %v3041_v36 = vadd.f32 %v3040_v21, %v5124_v12 }
 0x7c0   :  { %v3130_v27 = vadd.f32 %v3129_v43, %v3041_v36 }
 0x7c2   :  { %3191 = vst [vmem:[#allocation13 + $0x60] sm:$0xff] %v3130_v27 }
 0x7c5   :  { %v3042_v14 = vpop.f32.mrf.mxu2 }
 0x7c6   :  { %v3131_v54 = vpop.f32.mrf.mxu3  ;;  %v3043_v57 = vadd.f32 %v3042_v14, %v5124_v12 }
 0x7c8   :  { %v3132_v33 = vadd.f32 %v3131_v54, %v3043_v57 }
 0x7ca   :  { %3192 = vst [vmem:[#allocation13 + $0x68] sm:$0xff] %v3132_v33  ;;  %3084 = vmatmul.bf16.gmra.mxu2 %v5104_v20 }
 0x7cb   :  { %3173 = vmatmul.bf16.gmra.mxu3 %v5102_v47 }
 0x7cd   :  { %v3045_v7 = vpop.f32.mrf.mxu2 }
 0x7ce   :  { %v3134_v63 = vpop.f32.mrf.mxu3  ;;  %v3046_v35 = vadd.f32 %v3045_v7, %v5124_v12 }
 0x7d0   :  { %v3135_v48 = vadd.f32 %v3134_v63, %v3046_v35 }
 0x7d2   :  { %3193 = vst [vmem:[#allocation13 + $0x70] sm:$0xff] %v3135_v48 }
 0x7d5   :  { %v3047_v26 = vpop.f32.mrf.mxu2 }
 0x7d6   :  { %v3136_v18 = vpop.f32.mrf.mxu3  ;;  %v3048_v3 = vadd.f32 %v3047_v26, %v5124_v12 }
 0x7d8   :  { %v3137_v61 = vadd.f32 %v3136_v18, %v3048_v3 }
 0x7da   :  { %3194 = vst [vmem:[#allocation13 + $0x78] sm:$0xff] %v3137_v61 }
 0x7dd   :  { %v3050_v30 = vpop.f32.mrf.mxu2 }
 0x7de   :  { %v3139_v40 = vpop.f32.mrf.mxu3  ;;  %v3051_v19 = vadd.f32 %v3050_v30, %v5124_v12 }
 0x7e0   :  { %v3140_v11 = vadd.f32 %v3139_v40, %v3051_v19 }
 0x7e2   :  { %3195 = vst [vmem:[#allocation13 + $0x80] sm:$0xff] %v3140_v11 }
 0x7e5   :  { %v3052_v20 = vpop.f32.mrf.mxu2 }
 0x7e6   :  { %v3141_v47 = vpop.f32.mrf.mxu3  ;;  %v3053_v31 = vadd.f32 %v3052_v20, %v5124_v12 }
 0x7e8   :  { %v3142_v42 = vadd.f32 %v3141_v47, %v3053_v31 }
 0x7ea   :  { %3196 = vst [vmem:[#allocation13 + $0x88] sm:$0xff] %v3142_v42 }
 0x7ed   :  { %v3055_v39 = vpop.f32.mrf.mxu2 }
 0x7ee   :  { %v3144_v62 = vpop.f32.mrf.mxu3  ;;  %v3056_v5 = vadd.f32 %v3055_v39, %v5124_v12 }
 0x7f0   :  { %v3145_v13 = vadd.f32 %v3144_v62, %v3056_v5 }
 0x7f2   :  { %3197 = vst [vmem:[#allocation13 + $0x90] sm:$0xff] %v3145_v13 }
 0x7f5   :  { %v3057_v6 = vpop.f32.mrf.mxu2 }
 0x7f6   :  { %v3146_v2 = vpop.f32.mrf.mxu3  ;;  %v3058_v28 = vadd.f32 %v3057_v6, %v5124_v12 }
 0x7f8   :  { %v3147_v24 = vadd.f32 %v3146_v2, %v3058_v28 }
 0x7fa   :  { %3198 = vst [vmem:[#allocation13 + $0x98] sm:$0xff] %v3147_v24 }
 0x7fd   :  { %v3060_v52 = vpop.f32.mrf.mxu2 }
 0x7fe   :  { %v3149_v59 = vpop.f32.mrf.mxu3  ;;  %v3061_v58 = vadd.f32 %v3060_v52, %v5124_v12 }
 0x800   :  { %v3150_v0 = vadd.f32 %v3149_v59, %v3061_v58 }
 0x802   :  { %3199 = vst [vmem:[#allocation13 + $0xa0] sm:$0xff] %v3150_v0 }
 0x805   :  { %v3062_v16 = vpop.f32.mrf.mxu2 }
 0x806   :  { %v3151_v15 = vpop.f32.mrf.mxu3  ;;  %v3063_v51 = vadd.f32 %v3062_v16, %v5124_v12 }
 0x808   :  { %v3152_v29 = vadd.f32 %v3151_v15, %v3063_v51 }
 0x80a   :  { %3200 = vst [vmem:[#allocation13 + $0xa8] sm:$0xff] %v3152_v29 }
 0x80d   :  { %v3065_v17 = vpop.f32.mrf.mxu2 }
 0x80e   :  { %v3154_v37 = vpop.f32.mrf.mxu3  ;;  %v3066_v44 = vadd.f32 %v3065_v17, %v5124_v12 }
 0x810   :  { %v3155_v25 = vadd.f32 %v3154_v37, %v3066_v44 }
 0x812   :  { %3201 = vst [vmem:[#allocation13 + $0xb0] sm:$0xff] %v3155_v25 }
 0x815   :  { %v3067_v8 = vpop.f32.mrf.mxu2 }
 0x816   :  { %v3156_v56 = vpop.f32.mrf.mxu3  ;;  %v3068_v9 = vadd.f32 %v3067_v8, %v5124_v12 }
 0x818   :  { %v3157_v38 = vadd.f32 %v3156_v56, %v3068_v9 }
 0x81a   :  { %3202 = vst [vmem:[#allocation13 + $0xb8] sm:$0xff] %v3157_v38 }
 0x81d   :  { %v3070_v4 = vpop.f32.mrf.mxu2 }
 0x81e   :  { %v3159_v10 = vpop.f32.mrf.mxu3  ;;  %v3071_v46 = vadd.f32 %v3070_v4, %v5124_v12 }
 0x820   :  { %v3160_v49 = vadd.f32 %v3159_v10, %v3071_v46 }
 0x822   :  { %3203 = vst [vmem:[#allocation13 + $0xc0] sm:$0xff] %v3160_v49 }
 0x825   :  { %v3072_v34 = vpop.f32.mrf.mxu2 }
 0x826   :  { %v3161_v1 = vpop.f32.mrf.mxu3  ;;  %v3073_v41 = vadd.f32 %v3072_v34, %v5124_v12 }
 0x828   :  { %v3162_v55 = vadd.f32 %v3161_v1, %v3073_v41 }
 0x82a   :  { %3204 = vst [vmem:[#allocation13 + $0xc8] sm:$0xff] %v3162_v55 }
 0x82d   :  { %v3075_v50 = vpop.f32.mrf.mxu2 }
 0x82e   :  { %v3164_v60 = vpop.f32.mrf.mxu3  ;;  %v3076_v45 = vadd.f32 %v3075_v50, %v5124_v12 }
 0x830   :  { %v3165_v32 = vadd.f32 %v3164_v60, %v3076_v45 }
 0x832   :  { %3205 = vst [vmem:[#allocation13 + $0xd0] sm:$0xff] %v3165_v32 }
 0x835   :  { %v3077_v53 = vpop.f32.mrf.mxu2 }
 0x836   :  { %v3166_v23 = vpop.f32.mrf.mxu3  ;;  %v3078_v22 = vadd.f32 %v3077_v53, %v5124_v12 }
 0x838   :  { %v3167_v21 = vadd.f32 %v3166_v23, %v3078_v22 }
 0x83a   :  { %3206 = vst [vmem:[#allocation13 + $0xd8] sm:$0xff] %v3167_v21 }
 0x83d   :  { %v3080_v43 = vpop.f32.mrf.mxu2 }
 0x83e   :  { %v3169_v36 = vpop.f32.mrf.mxu3  ;;  %v3081_v27 = vadd.f32 %v3080_v43, %v5124_v12 }
 0x840   :  { %v3170_v14 = vadd.f32 %v3169_v36, %v3081_v27 }
 0x842   :  { %3207 = vst [vmem:[#allocation13 + $0xe0] sm:$0xff] %v3170_v14 }
 0x845   :  { %v3082_v54 = vpop.f32.mrf.mxu2 }
 0x846   :  { %v3171_v57 = vpop.f32.mrf.mxu3  ;;  %v3083_v33 = vadd.f32 %v3082_v54, %v5124_v12 }
 0x848   :  { %v3172_v7 = vadd.f32 %v3171_v57, %v3083_v33 }
 0x84a   :  { %3208 = vst [vmem:[#allocation13 + $0xe8] sm:$0xff] %v3172_v7 }
 0x84d   :  { %v3085_v63 = vpop.f32.mrf.mxu2 }
 0x84e   :  { %v3174_v35 = vpop.f32.mrf.mxu3  ;;  %v3086_v48 = vadd.f32 %v3085_v63, %v5124_v12 }
 0x850   :  { %v3175_v26 = vadd.f32 %v3174_v35, %v3086_v48 }
 0x852   :  { %3209 = vst [vmem:[#allocation13 + $0xf0] sm:$0xff] %v3175_v26 }
 0x855   :  { %v3087_v18 = vpop.f32.mrf.mxu2 }
 0x856   :  { %v3088_v3 = vadd.f32 %v3087_v18, %v5124_v12  ;;  %v3176_v61 = vpop.f32.mrf.mxu3 }
 0x858   :  { %v3177_v30 = vadd.f32 %v3176_v61, %v3088_v3 }
 0x85a   :  { %3210 = vst [vmem:[#allocation13 + $0xf8] sm:$0xff] %v3177_v30 }
 0x85b   :  { %3223 = dma.vmem_to_hbm [thread:$0]  %s3216_s6, 4096, %s3218_s13, [#allocation10], %s4220_s14, %s4220_s14, %s4221_s15  }
 0x85c   :  { %4208 = dma.done.wait [#allocation10], 4096  }
 0x85d   :  { %4209 = vsyncadd [#allocation10], 4294963200 }
 0x85e   :  { %3228 = vsyncpa [#allocation9], 1 }
 0x85f   :  { %3229 = vsyncpa [#allocation12], 1 }
 0x860   :  { %3230 = vsyncpa [#allocation10], 1 }
 0x861   :  { %3231 = vsyncmov [#allocation7] }
 0x864   :  { %s3232_s16 = vpop.sfrf %3231 }
 0x865   :  { %p3841_p0 = scmp.ne.s32.totalorder %s3232_s16, 0 }
 0x867   :  { %3236 = shalt.err (%p3841_p0)  }
 0x868   :  { %3238 = vsyncmov [#allocation7 + $0x1] }
 0x86b   :  { %s3239_s7 = vpop.sfrf %3238 }
 0x86c   :  { %p3842_p1 = scmp.ne.s32.totalorder %s3239_s7, 0 }
 0x86e   :  { %3243 = shalt.err (%p3842_p1)  }
 0x86f   :  { %3245 = vsyncmov [#allocation7 + $0x2] }
 0x872   :  { %s3246_s1 = vpop.sfrf %3245 }
 0x873   :  { %p3843_p2 = scmp.ne.s32.totalorder %s3246_s1, 0 }
 0x875   :  { %3250 = shalt.err (%p3843_p2)  }
 0x876   :  { %3252 = vsyncmov [#allocation7 + $0x3] }
 0x879   :  { %s3253_s17 = vpop.sfrf %3252 }
 0x87a   :  { %p3844_p3 = scmp.ne.s32.totalorder %s3253_s17, 0 }
 0x87c   :  { %3257 = shalt.err (%p3844_p3)  }
 0x87d   :  { %3259 = vsyncmov [#allocation7 + $0x4] }
 0x880   :  { %s3260_s18 = vpop.sfrf %3259 }
 0x881   :  { %p3845_p4 = scmp.ne.s32.totalorder %s3260_s18, 0 }
 0x883   :  { %3264 = shalt.err (%p3845_p4)  }

</bundles_post_ra>
